<compile_context>
chip_gen: v7x
topology: tpu7x:2x2x1
jax: 0.10.0
libtpu: 0.0.40
codegen_flags: <defaults>
</compile_context>

<pallas_src>
import functools

import jax
import jax.numpy as jnp
from jax.experimental import pallas as pl
from jax.experimental.pallas import tpu as pltpu

LANE = 128


def _round_up(x, m):
    return ((x + m - 1) // m) * m


# ----------------------------- Pallas kernels -----------------------------

def _proj_kernel(x_ref, w_ref, o_ref):
    """XW1 = x @ W1  (hoisted feature projection, row-tiled, bf16 out)."""
    o_ref[...] = jnp.dot(
        x_ref[...], w_ref[...], preferred_element_type=jnp.float32
    ).astype(o_ref.dtype)


def _conv1_proj2_kernel(a_ref, xw1_ref, b1_ref, w2_ref, xw2_ref):
    """conv1 + fused W2 projection:
       h = relu(A_row_stripe @ XW1 + b1);  XW2_stripe = h @ W2  (bf16 out).
       XW1 / W2 are VMEM-resident (constant block index)."""
    h = jnp.dot(a_ref[...], xw1_ref[...], preferred_element_type=jnp.float32)
    h = jnp.maximum(h + b1_ref[...], 0.0)
    xw2_ref[...] = jnp.dot(
        h, w2_ref[...], preferred_element_type=jnp.float32
    ).astype(xw2_ref.dtype)


def _conv2_q_kernel(a_ref, xw2_ref, b2_ref, ct_ref, z_ref, q_ref, *, v,
                    num_clusters):
    """conv2 aggregation with get_Q fused into the epilogue."""
    z = jnp.dot(a_ref[...], xw2_ref[...], preferred_element_type=jnp.float32)
    z = z + b2_ref[...]                                  # (tile_m, F_pad) f32
    z_ref[...] = z.astype(z_ref.dtype)

    ct = ct_ref[...]                                     # (F_pad, K_pad) f32
    z2 = jnp.sum(z * z, axis=1, keepdims=True)           # (tile_m, 1)
    c2 = jnp.sum(ct * ct, axis=0, keepdims=True)         # (1, K_pad)
    cross = jnp.dot(z, ct, preferred_element_type=jnp.float32)
    d2 = jnp.maximum(z2 + c2 - 2.0 * cross, 0.0)

    q = 1.0 / (1.0 + d2 * (1.0 / v))
    if float(v) == 2.0:
        q = q * jnp.sqrt(q)                               # q ** 1.5
    else:
        q = q ** ((v + 1.0) / 2.0)

    # mask padded cluster columns, then row-normalize (exact: rows sum to 1)
    col = jax.lax.broadcasted_iota(jnp.int32, q.shape, 1)
    q = jnp.where(col < num_clusters, q, 0.0)
    q = q / jnp.sum(q, axis=1, keepdims=True)
    q_ref[...] = q.astype(q_ref.dtype)


# ----------------------------- pallas_call wrappers -------------------------

def _vmem_limit_bytes(tile_m, n_pad, f=LANE):
    a_bytes = 2 * tile_m * n_pad * 2            # double-buffered bf16 A stripe
    resident = n_pad * f * 2 + 2 * f * f * 4    # resident XW + weights/centers
    outs = 2 * 2 * tile_m * f * 4               # double-buffered f32 z + q
    need = a_bytes + resident + outs + (4 << 20)
    # >= 32 MiB (above v5e's 16 MiB scoped default), <= 48 MiB (fits v7x's 64 MiB)
    return int(min(max(need, 32 << 20), 48 << 20))


def _project(x, w, tile_m, out_dtype=jnp.bfloat16):
    n, f_in = x.shape
    f_out = w.shape[1]
    return pl.pallas_call(
        _proj_kernel,
        out_shape=jax.ShapeDtypeStruct((n, f_out), out_dtype),
        grid_spec=pltpu.PrefetchScalarGridSpec(
            num_scalar_prefetch=0,
            grid=(n // tile_m,),
            in_specs=[
                pl.BlockSpec((tile_m, f_in), lambda i: (i, 0)),
                pl.BlockSpec((f_in, f_out), lambda i: (0, 0)),
            ],
            out_specs=pl.BlockSpec((tile_m, f_out), lambda i: (i, 0)),
        ),
        compiler_params=pltpu.CompilerParams(dimension_semantics=("parallel",)),
    )(x, w)


def _conv1_fused(a_bf, xw1_bf, b1, w2, *, tile_m):
    n_pad = a_bf.shape[0]
    hid = xw1_bf.shape[1]
    out = w2.shape[1]
    return pl.pallas_call(
        _conv1_proj2_kernel,
        out_shape=jax.ShapeDtypeStruct((n_pad, out), jnp.bfloat16),
        grid_spec=pltpu.PrefetchScalarGridSpec(
            num_scalar_prefetch=0,
            grid=(n_pad // tile_m,),
            in_specs=[
                pl.BlockSpec((tile_m, n_pad), lambda i: (i, 0)),   # A row-stripe
                pl.BlockSpec((n_pad, hid), lambda i: (0, 0)),      # XW1 resident
                pl.BlockSpec((1, hid), lambda i: (0, 0)),          # b1
                pl.BlockSpec((hid, out), lambda i: (0, 0)),        # W2 resident
            ],
            out_specs=pl.BlockSpec((tile_m, out), lambda i: (i, 0)),
        ),
        compiler_params=pltpu.CompilerParams(
            dimension_semantics=("parallel",),
            vmem_limit_bytes=_vmem_limit_bytes(tile_m, n_pad)),
    )(a_bf, xw1_bf, b1, w2)


def _conv2_with_q(a_bf, xw2_bf, b2, ct, *, tile_m, v, num_clusters):
    n_pad = a_bf.shape[0]
    f = xw2_bf.shape[1]
    k_pad = ct.shape[1]
    return pl.pallas_call(
        functools.partial(_conv2_q_kernel, v=float(v),
                          num_clusters=num_clusters),
        out_shape=(jax.ShapeDtypeStruct((n_pad, f), jnp.float32),
                   jax.ShapeDtypeStruct((n_pad, k_pad), jnp.float32)),
        grid_spec=pltpu.PrefetchScalarGridSpec(
            num_scalar_prefetch=0,
            grid=(n_pad // tile_m,),
            in_specs=[
                pl.BlockSpec((tile_m, n_pad), lambda i: (i, 0)),   # A row-stripe
                pl.BlockSpec((n_pad, f), lambda i: (0, 0)),        # XW2 resident
                pl.BlockSpec((1, f), lambda i: (0, 0)),            # b2
                pl.BlockSpec((f, k_pad), lambda i: (0, 0)),        # centers^T
            ],
            out_specs=(pl.BlockSpec((tile_m, f), lambda i: (i, 0)),
                       pl.BlockSpec((tile_m, k_pad), lambda i: (i, 0))),
        ),
        compiler_params=pltpu.CompilerParams(
            dimension_semantics=("parallel",),
            vmem_limit_bytes=_vmem_limit_bytes(tile_m, n_pad)),
    )(a_bf, xw2_bf, b2, ct)


# ----------------------------- Encoder forward ------------------------------

def encoder_forward(params, x, a_bf, *, v=2.0, tile_m=256):
    """Pallas forward of the PyTorch Encoder.

    `a_bf` is the GCN-normalized adjacency, already zero-padded to
    (n_pad, n_pad) and cast to bfloat16 (constant per graph — cache it).
    Returns (feature, q)."""
    assert tile_m % LANE == 0
    n, f_in = x.shape
    n_pad = a_bf.shape[0]
    assert n_pad % tile_m == 0 and a_bf.dtype == jnp.bfloat16

    k_clusters, out_ch = params["cluster_layer"].shape
    hidden = params["w1"].shape[1]
    hid_pad = _round_up(hidden, LANE)
    out_pad = _round_up(out_ch, LANE)
    k_pad = _round_up(k_clusters, LANE)

    f32 = jnp.float32
    # zero-pad to lane-dense / tile-aligned shapes (sliced off at the end)
    x_p = jnp.pad(x.astype(f32), ((0, n_pad - n), (0, 0)))
    w1_p = jnp.pad(params["w1"].astype(f32), ((0, 0), (0, hid_pad - hidden)))
    b1_p = jnp.pad(params["b1"].astype(f32).reshape(1, -1),
                   ((0, 0), (0, hid_pad - hidden)))
    w2_p = jnp.pad(params["w2"].astype(f32),
                   ((0, hid_pad - hidden), (0, out_pad - out_ch)))
    b2_p = jnp.pad(params["b2"].astype(f32).reshape(1, -1),
                   ((0, 0), (0, out_pad - out_ch)))
    ct_p = jnp.pad(params["cluster_layer"].astype(f32).T,
                   ((0, out_pad - out_ch), (0, k_pad - k_clusters)))

    # projection 1: XW1 = x @ W1  (bf16)
    xw1 = _project(x_p, w1_p, tile_m)

    # conv1 + fused W2 projection: XW2 = relu(A @ XW1 + b1) @ W2  (bf16, h never hits HBM)
    xw2 = _conv1_fused(a_bf, xw1, b1_p, w2_p, tile_m=tile_m)

    # conv2 (+ fused get_Q): z = A @ XW2 + b2 ; q = student-t(z)
    z_pad, q_pad = _conv2_with_q(a_bf, xw2, b2_p, ct_p, tile_m=tile_m, v=v,
                                 num_clusters=k_clusters)

    return z_pad[:n, :out_ch], q_pad[:n, :k_clusters]


# ----------------------------- glue (plain JAX) ----------------------------

def gcn_norm_dense(edge_index, num_nodes):
    """Dense D^-1/2 (A+I) D^-1/2 from an edge_index [2, E] (no self loops)."""
    row, col = edge_index[0], edge_index[1]
    a = jnp.zeros((num_nodes, num_nodes), jnp.float32).at[row, col].set(1.0)
    a = a + jnp.eye(num_nodes, dtype=jnp.float32)
    deg = jnp.sum(a, axis=1)
    d_inv_sqrt = jnp.where(deg > 0, 1.0 / jnp.sqrt(deg), 0.0)
    return a * d_inv_sqrt[:, None] * d_inv_sqrt[None, :]


def prepare_adjacency(edge_index, num_nodes, n_pad):
    """Build the padded bf16 A_hat once per graph (cache outside the step)."""
    a_hat = gcn_norm_dense(edge_index, num_nodes)
    pad = n_pad - num_nodes
    return jnp.pad(a_hat.astype(jnp.bfloat16), ((0, pad), (0, pad)))


def init_params(key, in_channels, out_channels, K):
    k1, k2, k3, k4, k5 = jax.random.split(key, 5)
    hidden = 2 * out_channels

    def glorot_normal(k, shape):
        std = jnp.sqrt(2.0 / (shape[0] + shape[1]))
        return std * jax.random.normal(k, shape, dtype=jnp.float32)

    return {
        "w1": glorot_normal(k1, (in_channels, hidden)),
        "b1": 0.05 * jax.random.normal(k4, (hidden,), jnp.float32),
        "w2": glorot_normal(k2, (hidden, out_channels)),
        "b2": 0.05 * jax.random.normal(k5, (out_channels,), jnp.float32),
        "cluster_layer": glorot_normal(k3, (K, out_channels)),  # xavier_normal_
    }


# ----------------------------- demo / check --------------------------------

if __name__ == "__main__":
    N = 500           # number of graph nodes (padded to 512 internally)
    IN_CH = 16
    OUT_CH = 8
    K = 4
    V = 2.0
    TILE_M = 256      # 2 row-stripes -> both megacore / v7x TCs get work

    key = jax.random.PRNGKey(0)
    kx, kp = jax.random.split(key)

    x = jax.random.normal(kx, (N, IN_CH), dtype=jnp.float32)

    # deterministic symmetric ring graph edge_index [2, E]
    src = jnp.arange(N, dtype=jnp.int32)
    dst = (src + 1) % N
    edge_index = jnp.stack(
        [jnp.concatenate([src, dst]), jnp.concatenate([dst, src])], axis=0
    )

    n_pad = _round_up(N, max(TILE_M, LANE))
    a_bf = prepare_adjacency(edge_index, N, n_pad)   # built once, in bf16
    jax.block_until_ready(a_bf)
    params = init_params(kp, IN_CH, OUT_CH, K)

    fwd = jax.jit(functools.partial(encoder_forward, v=V, tile_m=TILE_M))
    feature, q = fwd(params, x, a_bf)
    jax.block_until_ready((feature, q))

    # reference mirrors the bf16 casts used on the A_hat matmul inputs
    a32 = a_bf[:N, :N].astype(jnp.float32)
    xw1_ref = (x @ params["w1"]).astype(jnp.bfloat16).astype(jnp.float32)
    h_ref = jnp.maximum(a32 @ xw1_ref + params["b1"], 0.0)
    xw2_ref = (h_ref @ params["w2"]).astype(jnp.bfloat16).astype(jnp.float32)
    z_ref = a32 @ xw2_ref + params["b2"]
    d2 = jnp.sum((z_ref[:, None, :] - params["cluster_layer"][None, :, :]) ** 2, axis=2)
    q_ref = 1.0 / (1.0 + d2 / V)
    q_ref = q_ref ** ((V + 1.0) / 2.0)
    q_ref = q_ref / jnp.sum(q_ref, axis=1, keepdims=True)

    assert feature.shape == (N, OUT_CH) and q.shape == (N, K)
    assert jnp.allclose(feature, z_ref, atol=1e-2, rtol=1e-2), "feature mismatch"
    assert jnp.allclose(q, q_ref, atol=1e-2, rtol=1e-2), "q mismatch"

    print("KERNEL_OK")
</pallas_src>

<mosaic_0001>
module attributes {stable_mosaic.version = 11 : i64} {
  func.func @_proj_kernel(%arg0: i32, %arg1: memref<256x16xf32, #tpu.memory_space<vmem>>, %arg2: memref<16x128xf32, #tpu.memory_space<vmem>>, %arg3: memref<256x128xbf16, #tpu.memory_space<vmem>>) attributes {dimension_semantics = [#tpu.dimension_semantics<parallel>], iteration_bounds = array<i64: 2>, scalar_prefetch = 0 : i64, scratch_operands = 0 : i64, tpu.core_type = #tpu.core_type<tc>, window_params = [{transform_indices = @transform_0, window_bounds = array<i64: 256, 16>}, {pipeline_mode = #tpu.pipeline_mode<synchronous>, transform_indices = @transform_1, window_bounds = array<i64: 16, 128>}, {transform_indices = @transform_2, window_bounds = array<i64: 256, 128>}]} {
    %c0 = arith.constant 0 : index
    %c0_0 = arith.constant 0 : index
    %0 = vector.load %arg1[%c0, %c0_0] : memref<256x16xf32, #tpu.memory_space<vmem>>, vector<256x16xf32>
    %c0_1 = arith.constant 0 : index
    %c0_2 = arith.constant 0 : index
    %1 = vector.load %arg2[%c0_1, %c0_2] : memref<16x128xf32, #tpu.memory_space<vmem>>, vector<16x128xf32>
    %cst = arith.constant dense<0.000000e+00> : vector<256x128xf32>
    %2 = tpu.matmul %0, %1, %cst {dimension_numbers = #tpu.dot_dimension_numbers<[1], [0], [0], [1], [0, 0, 1, 1], [], []>} : vector<256x16xf32>, vector<16x128xf32>, vector<256x128xf32> -> vector<256x128xf32>
    %3 = arith.truncf %2 : vector<256x128xf32> to vector<256x128xbf16>
    %c0_3 = arith.constant 0 : index
    %c0_4 = arith.constant 0 : index
    %4 = vector.load %arg3[%c0_3, %c0_4] : memref<256x128xbf16, #tpu.memory_space<vmem>>, vector<256x128xbf16>
    tpu.vector_store %arg3[%c0_3, %c0_4], %3 {strides = array<i32>} : memref<256x128xbf16, #tpu.memory_space<vmem>>, vector<256x128xbf16>,
    return
  }
  func.func @transform_0(%arg0: i32) -> (i32, i32) {
    %c0_i32 = arith.constant 0 : i32
    %c0_i32_0 = arith.constant 0 : i32
    return %arg0, %c0_i32 : i32, i32
  }
  func.func @transform_1(%arg0: i32) -> (i32, i32) {
    %c0_i32 = arith.constant 0 : i32
    %c0_i32_0 = arith.constant 0 : i32
    %c0_i32_1 = arith.constant 0 : i32
    return %c0_i32, %c0_i32_0 : i32, i32
  }
  func.func @transform_2(%arg0: i32) -> (i32, i32) {
    %c0_i32 = arith.constant 0 : i32
    %c0_i32_0 = arith.constant 0 : i32
    return %arg0, %c0_i32 : i32, i32
  }
}

module attributes {stable_mosaic.version = 11 : i64} {
  func.func @_conv2_q_kernel(%arg0: i32, %arg1: memref<256x512xbf16, #tpu.memory_space<vmem>>, %arg2: memref<512x128xbf16, #tpu.memory_space<vmem>>, %arg3: memref<1x128xf32, #tpu.memory_space<vmem>>, %arg4: memref<128x128xf32, #tpu.memory_space<vmem>>, %arg5: memref<256x128xf32, #tpu.memory_space<vmem>>, %arg6: memref<256x128xf32, #tpu.memory_space<vmem>>) attributes {dimension_semantics = [#tpu.dimension_semantics<parallel>], iteration_bounds = array<i64: 2>, scalar_prefetch = 0 : i64, scratch_operands = 0 : i64, tpu.core_type = #tpu.core_type<tc>, window_params = [{transform_indices = @transform_0, window_bounds = array<i64: 256, 512>}, {pipeline_mode = #tpu.pipeline_mode<synchronous>, transform_indices = @transform_1, window_bounds = array<i64: 512, 128>}, {pipeline_mode = #tpu.pipeline_mode<synchronous>, transform_indices = @transform_2, window_bounds = array<i64: 1, 128>}, {pipeline_mode = #tpu.pipeline_mode<synchronous>, transform_indices = @transform_3, window_bounds = array<i64: 128, 128>}, {transform_indices = @transform_4, window_bounds = array<i64: 256, 128>}, {transform_indices = @transform_5, window_bounds = array<i64: 256, 128>}]} {
    %c0 = arith.constant 0 : index
    %c0_0 = arith.constant 0 : index
    %0 = vector.load %arg1[%c0, %c0_0] : memref<256x512xbf16, #tpu.memory_space<vmem>>, vector<256x512xbf16>
    %c0_1 = arith.constant 0 : index
    %c0_2 = arith.constant 0 : index
    %1 = vector.load %arg2[%c0_1, %c0_2] : memref<512x128xbf16, #tpu.memory_space<vmem>>, vector<512x128xbf16>
    %cst = arith.constant dense<0.000000e+00> : vector<256x128xf32>
    %2 = tpu.matmul %0, %1, %cst {dimension_numbers = #tpu.dot_dimension_numbers<[1], [0], [0], [1], [0, 0, 1, 1], [], []>} : vector<256x512xbf16>, vector<512x128xbf16>, vector<256x128xf32> -> vector<256x128xf32>
    %c0_3 = arith.constant 0 : index
    %c0_4 = arith.constant 0 : index
    %3 = vector.load %arg3[%c0_3, %c0_4] : memref<1x128xf32, #tpu.memory_space<vmem>>, vector<1x128xf32>
    %4 = vector.broadcast %3 : vector<1x128xf32> to vector<256x128xf32>
    %5 = arith.addf %2, %4 : vector<256x128xf32>
    %c0_5 = arith.constant 0 : index
    %c0_6 = arith.constant 0 : index
    %6 = vector.load %arg5[%c0_5, %c0_6] : memref<256x128xf32, #tpu.memory_space<vmem>>, vector<256x128xf32>
    tpu.vector_store %arg5[%c0_5, %c0_6], %5 {strides = array<i32>} : memref<256x128xf32, #tpu.memory_space<vmem>>, vector<256x128xf32>,
    %c0_7 = arith.constant 0 : index
    %c0_8 = arith.constant 0 : index
    %7 = vector.load %arg4[%c0_7, %c0_8] : memref<128x128xf32, #tpu.memory_space<vmem>>, vector<128x128xf32>
    %8 = arith.mulf %5, %5 : vector<256x128xf32>
    %cst_9 = arith.constant dense<0.000000e+00> : vector<256xf32>
    %9 = vector.multi_reduction <add>, %8, %cst_9 [1] : vector<256x128xf32> to vector<256xf32>
    %10 = vector.shape_cast %9 : vector<256xf32> to vector<256x1xf32>
    %11 = arith.mulf %7, %7 : vector<128x128xf32>
    %cst_10 = arith.constant dense<0.000000e+00> : vector<128xf32>
    %12 = vector.multi_reduction <add>, %11, %cst_10 [0] : vector<128x128xf32> to vector<128xf32>
    %13 = vector.shape_cast %12 : vector<128xf32> to vector<1x128xf32>
    %cst_11 = arith.constant dense<0.000000e+00> : vector<256x128xf32>
    %14 = tpu.matmul %5, %7, %cst_11 {dimension_numbers = #tpu.dot_dimension_numbers<[1], [0], [0], [1], [0, 0, 1, 1], [], []>} : vector<256x128xf32>, vector<128x128xf32>, vector<256x128xf32> -> vector<256x128xf32>
    %15 = vector.broadcast %10 : vector<256x1xf32> to vector<256x128xf32>
    %16 = vector.broadcast %13 : vector<1x128xf32> to vector<256x128xf32>
    %17 = arith.addf %15, %16 : vector<256x128xf32>
    %cst_12 = arith.constant 2.000000e+00 : f32
    %18 = vector.broadcast %cst_12 : f32 to vector<256x128xf32>
    %19 = arith.mulf %18, %14 : vector<256x128xf32>
    %20 = arith.subf %17, %19 : vector<256x128xf32>
    %cst_13 = arith.constant 0.000000e+00 : f32
    %21 = vector.broadcast %cst_13 : f32 to vector<256x128xf32>
    %22 = arith.maximumf %20, %21 : vector<256x128xf32>
    %cst_14 = arith.constant 5.000000e-01 : f32
    %23 = vector.broadcast %cst_14 : f32 to vector<256x128xf32>
    %24 = arith.mulf %22, %23 : vector<256x128xf32>
    %cst_15 = arith.constant 1.000000e+00 : f32
    %25 = vector.broadcast %cst_15 : f32 to vector<256x128xf32>
    %26 = arith.addf %25, %24 : vector<256x128xf32>
    %cst_16 = arith.constant 1.000000e+00 : f32
    %27 = vector.broadcast %cst_16 : f32 to vector<256x128xf32>
    %28 = arith.divf %27, %26 : vector<256x128xf32>
    %29 = math.sqrt %28 : vector<256x128xf32>
    %30 = arith.mulf %28, %29 : vector<256x128xf32>
    %31 = tpu.iota {dimensions = array<i32: 1>} : vector<256x128xi32>
    %c4_i32 = arith.constant 4 : i32
    %32 = vector.broadcast %c4_i32 : i32 to vector<256x128xi32>
    %33 = arith.cmpi slt, %31, %32 : vector<256x128xi32>
    %cst_17 = arith.constant 0.000000e+00 : f32
    %34 = vector.broadcast %cst_17 : f32 to vector<256x128xf32>
    %35 = arith.select %33, %30, %34 : vector<256x128xi1>, vector<256x128xf32>
    %cst_18 = arith.constant dense<0.000000e+00> : vector<256xf32>
    %36 = vector.multi_reduction <add>, %35, %cst_18 [1] : vector<256x128xf32> to vector<256xf32>
    %37 = vector.shape_cast %36 : vector<256xf32> to vector<256x1xf32>
    %38 = vector.broadcast %37 : vector<256x1xf32> to vector<256x128xf32>
    %39 = arith.divf %35, %38 : vector<256x128xf32>
    %c0_19 = arith.constant 0 : index
    %c0_20 = arith.constant 0 : index
    %40 = vector.load %arg6[%c0_19, %c0_20] : memref<256x128xf32, #tpu.memory_space<vmem>>, vector<256x128xf32>
    tpu.vector_store %arg6[%c0_19, %c0_20], %39 {strides = array<i32>} : memref<256x128xf32, #tpu.memory_space<vmem>>, vector<256x128xf32>,
    return
  }
  func.func @transform_0(%arg0: i32) -> (i32, i32) {
    %c0_i32 = arith.constant 0 : i32
    %c0_i32_0 = arith.constant 0 : i32
    return %arg0, %c0_i32 : i32, i32
  }
  func.func @transform_1(%arg0: i32) -> (i32, i32) {
    %c0_i32 = arith.constant 0 : i32
    %c0_i32_0 = arith.constant 0 : i32
    %c0_i32_1 = arith.constant 0 : i32
    return %c0_i32, %c0_i32_0 : i32, i32
  }
  func.func @transform_2(%arg0: i32) -> (i32, i32) {
    %c0_i32 = arith.constant 0 : i32
    %c0_i32_0 = arith.constant 0 : i32
    %c0_i32_1 = arith.constant 0 : i32
    return %c0_i32, %c0_i32_0 : i32, i32
  }
  func.func @transform_3(%arg0: i32) -> (i32, i32) {
    %c0_i32 = arith.constant 0 : i32
    %c0_i32_0 = arith.constant 0 : i32
    %c0_i32_1 = arith.constant 0 : i32
    return %c0_i32, %c0_i32_0 : i32, i32
  }
  func.func @transform_4(%arg0: i32) -> (i32, i32) {
    %c0_i32 = arith.constant 0 : i32
    %c0_i32_0 = arith.constant 0 : i32
    return %arg0, %c0_i32 : i32, i32
  }
  func.func @transform_5(%arg0: i32) -> (i32, i32) {
    %c0_i32 = arith.constant 0 : i32
    %c0_i32_0 = arith.constant 0 : i32
    return %arg0, %c0_i32 : i32, i32
  }
}

module attributes {stable_mosaic.version = 11 : i64} {
  func.func @_conv1_proj2_kernel(%arg0: i32, %arg1: memref<256x512xbf16, #tpu.memory_space<vmem>>, %arg2: memref<512x128xbf16, #tpu.memory_space<vmem>>, %arg3: memref<1x128xf32, #tpu.memory_space<vmem>>, %arg4: memref<128x128xf32, #tpu.memory_space<vmem>>, %arg5: memref<256x128xbf16, #tpu.memory_space<vmem>>) attributes {dimension_semantics = [#tpu.dimension_semantics<parallel>], iteration_bounds = array<i64: 2>, scalar_prefetch = 0 : i64, scratch_operands = 0 : i64, tpu.core_type = #tpu.core_type<tc>, window_params = [{transform_indices = @transform_0, window_bounds = array<i64: 256, 512>}, {pipeline_mode = #tpu.pipeline_mode<synchronous>, transform_indices = @transform_1, window_bounds = array<i64: 512, 128>}, {pipeline_mode = #tpu.pipeline_mode<synchronous>, transform_indices = @transform_2, window_bounds = array<i64: 1, 128>}, {pipeline_mode = #tpu.pipeline_mode<synchronous>, transform_indices = @transform_3, window_bounds = array<i64: 128, 128>}, {transform_indices = @transform_4, window_bounds = array<i64: 256, 128>}]} {
    %c0 = arith.constant 0 : index
    %c0_0 = arith.constant 0 : index
    %0 = vector.load %arg1[%c0, %c0_0] : memref<256x512xbf16, #tpu.memory_space<vmem>>, vector<256x512xbf16>
    %c0_1 = arith.constant 0 : index
    %c0_2 = arith.constant 0 : index
    %1 = vector.load %arg2[%c0_1, %c0_2] : memref<512x128xbf16, #tpu.memory_space<vmem>>, vector<512x128xbf16>
    %cst = arith.constant dense<0.000000e+00> : vector<256x128xf32>
    %2 = tpu.matmul %0, %1, %cst {dimension_numbers = #tpu.dot_dimension_numbers<[1], [0], [0], [1], [0, 0, 1, 1], [], []>} : vector<256x512xbf16>, vector<512x128xbf16>, vector<256x128xf32> -> vector<256x128xf32>
    %c0_3 = arith.constant 0 : index
    %c0_4 = arith.constant 0 : index
    %3 = vector.load %arg3[%c0_3, %c0_4] : memref<1x128xf32, #tpu.memory_space<vmem>>, vector<1x128xf32>
    %4 = vector.broadcast %3 : vector<1x128xf32> to vector<256x128xf32>
    %5 = arith.addf %2, %4 : vector<256x128xf32>
    %cst_5 = arith.constant 0.000000e+00 : f32
    %6 = vector.broadcast %cst_5 : f32 to vector<256x128xf32>
    %7 = arith.maximumf %5, %6 : vector<256x128xf32>
    %c0_6 = arith.constant 0 : index
    %c0_7 = arith.constant 0 : index
    %8 = vector.load %arg4[%c0_6, %c0_7] : memref<128x128xf32, #tpu.memory_space<vmem>>, vector<128x128xf32>
    %cst_8 = arith.constant dense<0.000000e+00> : vector<256x128xf32>
    %9 = tpu.matmul %7, %8, %cst_8 {dimension_numbers = #tpu.dot_dimension_numbers<[1], [0], [0], [1], [0, 0, 1, 1], [], []>} : vector<256x128xf32>, vector<128x128xf32>, vector<256x128xf32> -> vector<256x128xf32>
    %10 = arith.truncf %9 : vector<256x128xf32> to vector<256x128xbf16>
    %c0_9 = arith.constant 0 : index
    %c0_10 = arith.constant 0 : index
    %11 = vector.load %arg5[%c0_9, %c0_10] : memref<256x128xbf16, #tpu.memory_space<vmem>>, vector<256x128xbf16>
    tpu.vector_store %arg5[%c0_9, %c0_10], %10 {strides = array<i32>} : memref<256x128xbf16, #tpu.memory_space<vmem>>, vector<256x128xbf16>,
    return
  }
  func.func @transform_0(%arg0: i32) -> (i32, i32) {
    %c0_i32 = arith.constant 0 : i32
    %c0_i32_0 = arith.constant 0 : i32
    return %arg0, %c0_i32 : i32, i32
  }
  func.func @transform_1(%arg0: i32) -> (i32, i32) {
    %c0_i32 = arith.constant 0 : i32
    %c0_i32_0 = arith.constant 0 : i32
    %c0_i32_1 = arith.constant 0 : i32
    return %c0_i32, %c0_i32_0 : i32, i32
  }
  func.func @transform_2(%arg0: i32) -> (i32, i32) {
    %c0_i32 = arith.constant 0 : i32
    %c0_i32_0 = arith.constant 0 : i32
    %c0_i32_1 = arith.constant 0 : i32
    return %c0_i32, %c0_i32_0 : i32, i32
  }
  func.func @transform_3(%arg0: i32) -> (i32, i32) {
    %c0_i32 = arith.constant 0 : i32
    %c0_i32_0 = arith.constant 0 : i32
    %c0_i32_1 = arith.constant 0 : i32
    return %c0_i32, %c0_i32_0 : i32, i32
  }
  func.func @transform_4(%arg0: i32) -> (i32, i32) {
    %c0_i32 = arith.constant 0 : i32
    %c0_i32_0 = arith.constant 0 : i32
    return %arg0, %c0_i32 : i32, i32
  }
}

</mosaic_0001>

<bundles_post_ra>
// kernel: encoder_forward.3
= control target key start
LH: loop header
LB: loop body
LE: loop exit
PB: predicated region body
PF: predicated region fallthrough
CT: control target
= control target key end

     0   :  { %s1044_s9 = smov 0   ;;  %s1155_s0 = inlined_call_operand.vmem [shape: f32[512,16], index: 0, kind: input, shape index: {}]   ;;  %s1156_s1 = inlined_call_operand.vmem [shape: f32[16,128], index: 1, kind: input, shape index: {}]   ;;  %s1157_s2 = inlined_call_operand.vmem [shape: bf16[512,128], index: 2, kind: output, shape index: {}]  }
   0x1 LB: > { %s719_s10 = sadd.s32 4294967295, %s1027_s9   ;;  %p723_p0 = scmp.ge.s32.totalorder %s1027_s9, 1  ;;  %s1027_s9 = sphi %s1044_s9, %s12_s9  }
   0x2   : > { %p113_p1 = scmp.lt.s32.totalorder %s1027_s9, 3 }
   0x4   : > { %p114_p2 = pnand %p723_p0, %p113_p1 }
   0x5   : > { %v179_v0 = vld [vmem:[%s1156_s1] sm:$0xff] (!%p114_p2)  ;;  %v180_v1 = vld [vmem:[%s1156_s1 + $0x8] sm:$0xff] (!%p114_p2)  ;;  %s724_s15 = sshll.u32 (!%p114_p2), %s719_s10, 5  ;;  %vm181_vm0 = vcmask (!%p114_p2), 130048  }
   0x6   : > { %117 = sbr.rel (%p114_p2) target bundleno = 263 (0x107), region = 28  ;;  %v1007_v2 = vpack.c.bf16 (!%p114_p2), %v180_v1, %v179_v0  ;;  %p136_p3 = scmp.lt.s32.totalorder (!%p114_p2), %s724_s15, 63 }
   0x8   : > { %1008 = vmatprep.subr.bf16.mxu0 (!%p114_p2), %v1007_v2  ;;  %1011 = vmatprep.subr.bf16.mxu1 (!%p114_p2), %v1007_v2 }
   0x9   : > { %1010 = vmatpush3.bf16.msra.mxu0 (!%p114_p2), %v1007_v2  ;;  %1012 = vmatpush3.bf16.msra.mxu1 (!%p114_p2), %v1007_v2 }
   0xd   : > { %s1159_s15 = smov (!%p136_p3, %s724_s15), 63 }
   0xe   : > { %s725_s16 = sshll.u32 %s1159_s15, 3  ;;  %s727_s20 = sshll.u32 %s1159_s15, 2 }
   0xf   : > { %s1064_s19 = scalar_lea.vmem %s1155_s0, %s725_s16  ;;  %s1134_s23 = scalar_lea.vmem %s1157_s2, %s727_s20 }
  0x10   : > { %v147_v3 = vld [vmem:[%s1064_s19] sm:$0xff]  ;;  %v148_v5 = vld [vmem:[%s1064_s19 + $0x8] sm:$0xff]  ;;  %v149_v7 = vld [vmem:[%s1064_s19 + $0x10] sm:$0xff] }
  0x11   : > { %v163_v4 = vld [vmem:[%s1064_s19 + $0x80] sm:$0xff]  ;;  %959 = vmatprep.mubr.msk.f32.mxu0 %vm181_vm0, %v147_v3  ;;  %v164_v6 = vld [vmem:[%s1064_s19 + $0x88] sm:$0xff]  ;;  %v165_v8 = vld [vmem:[%s1064_s19 + $0x90] sm:$0xff] }
  0x12   : > { %983 = vmatprep.mubr.msk.f32.mxu1 %vm181_vm0, %v163_v4  ;;  %960 = vmatmul.mubr.msk.f32.vlgmr.msra.gmra.mrb[0].mxu0 %vm181_vm0, %v148_v5  ;;  %v150_v9 = vld [vmem:[%s1064_s19 + $0x18] sm:$0xff]  ;;  %v151_v11 = vld [vmem:[%s1064_s19 + $0x20] sm:$0xff]  ;;  %v152_v13 = vld [vmem:[%s1064_s19 + $0x28] sm:$0xff] }
  0x13   : > { %984 = vmatmul.mubr.msk.f32.vlgmr.msra.gmra.mrb[0].mxu1 %vm181_vm0, %v164_v6  ;;  %962 = vmatprep.mubr.msk.f32.mxu0 %vm181_vm0, %v149_v7  ;;  %v166_v10 = vld [vmem:[%s1064_s19 + $0x98] sm:$0xff]  ;;  %v167_v12 = vld [vmem:[%s1064_s19 + $0xa0] sm:$0xff]  ;;  %v168_v14 = vld [vmem:[%s1064_s19 + $0xa8] sm:$0xff] }
  0x14   : > { %986 = vmatprep.mubr.msk.f32.mxu1 %vm181_vm0, %v165_v8  ;;  %v153_v15 = vld [vmem:[%s1064_s19 + $0x30] sm:$0xff]  ;;  %v154_v17 = vld [vmem:[%s1064_s19 + $0x38] sm:$0xff]  ;;  %v155_v19 = vld [vmem:[%s1064_s19 + $0x40] sm:$0xff] }
  0x15   : > { %v169_v16 = vld [vmem:[%s1064_s19 + $0xb0] sm:$0xff]  ;;  %v170_v18 = vld [vmem:[%s1064_s19 + $0xb8] sm:$0xff]  ;;  %v171_v20 = vld [vmem:[%s1064_s19 + $0xc0] sm:$0xff] }
  0x16   : > { %963 = vmatmul.mubr.msk.f32.gmra.mrb[2].mxu0 %vm181_vm0, %v150_v9  ;;  %v156_v21 = vld [vmem:[%s1064_s19 + $0x48] sm:$0xff]  ;;  %v157_v23 = vld [vmem:[%s1064_s19 + $0x50] sm:$0xff]  ;;  %v158_v25 = vld [vmem:[%s1064_s19 + $0x58] sm:$0xff] }
  0x17   : > { %987 = vmatmul.mubr.msk.f32.gmra.mrb[2].mxu1 %vm181_vm0, %v166_v10  ;;  %965 = vmatprep.mubr.msk.f32.mxu0 %vm181_vm0, %v151_v11  ;;  %v172_v22 = vld [vmem:[%s1064_s19 + $0xc8] sm:$0xff]  ;;  %v173_v24 = vld [vmem:[%s1064_s19 + $0xd0] sm:$0xff]  ;;  %v174_v26 = vld [vmem:[%s1064_s19 + $0xd8] sm:$0xff] }
  0x18   : > { %989 = vmatprep.mubr.msk.f32.mxu1 %vm181_vm0, %v167_v12  ;;  %v159_v27 = vld [vmem:[%s1064_s19 + $0x60] sm:$0xff]  ;;  %v160_v29 = vld [vmem:[%s1064_s19 + $0x68] sm:$0xff]  ;;  %v161_v31 = vld [vmem:[%s1064_s19 + $0x70] sm:$0xff] }
  0x19   : > { %v175_v28 = vld [vmem:[%s1064_s19 + $0xe0] sm:$0xff]  ;;  %v176_v30 = vld [vmem:[%s1064_s19 + $0xe8] sm:$0xff]  ;;  %v177_v32 = vld [vmem:[%s1064_s19 + $0xf0] sm:$0xff] }
  0x1a   : > { %966 = vmatmul.mubr.msk.f32.gmra.mrb[4].mxu0 %vm181_vm0, %v152_v13  ;;  %v162_v33 = vld [vmem:[%s1064_s19 + $0x78] sm:$0xff] }
  0x1b   : > { %990 = vmatmul.mubr.msk.f32.gmra.mrb[4].mxu1 %vm181_vm0, %v168_v14  ;;  %968 = vmatprep.mubr.msk.f32.mxu0 %vm181_vm0, %v153_v15  ;;  %v178_v34 = vld [vmem:[%s1064_s19 + $0xf8] sm:$0xff] }
  0x1c   : > { %992 = vmatprep.mubr.msk.f32.mxu1 %vm181_vm0, %v169_v16 }
  0x1e   : > { %969 = vmatmul.mubr.msk.f32.gmra.mrb[6].mxu0 %vm181_vm0, %v154_v17 }
  0x1f   : > { %993 = vmatmul.mubr.msk.f32.gmra.mrb[6].mxu1 %vm181_vm0, %v170_v18  ;;  %971 = vmatprep.mubr.msk.f32.mxu0 %vm181_vm0, %v155_v19 }
  0x20   : > { %995 = vmatprep.mubr.msk.f32.mxu1 %vm181_vm0, %v171_v20 }
  0x22   : > { %972 = vmatmul.mubr.msk.f32.gmra.mrb[8].mxu0 %vm181_vm0, %v156_v21 }
  0x23   : > { %996 = vmatmul.mubr.msk.f32.gmra.mrb[8].mxu1 %vm181_vm0, %v172_v22  ;;  %974 = vmatprep.mubr.msk.f32.mxu0 %vm181_vm0, %v157_v23 }
  0x24   : > { %998 = vmatprep.mubr.msk.f32.mxu1 %vm181_vm0, %v173_v24 }
  0x26   : > { %975 = vmatmul.mubr.msk.f32.gmra.mrb[10].mxu0 %vm181_vm0, %v158_v25 }
  0x27   : > { %999 = vmatmul.mubr.msk.f32.gmra.mrb[10].mxu1 %vm181_vm0, %v174_v26  ;;  %977 = vmatprep.mubr.msk.f32.mxu0 %vm181_vm0, %v159_v27 }
  0x28   : > { %1001 = vmatprep.mubr.msk.f32.mxu1 %vm181_vm0, %v175_v28 }
  0x2a   : > { %978 = vmatmul.mubr.msk.f32.gmra.mrb[12].mxu0 %vm181_vm0, %v160_v29 }
  0x2b   : > { %1002 = vmatmul.mubr.msk.f32.gmra.mrb[12].mxu1 %vm181_vm0, %v176_v30  ;;  %980 = vmatprep.mubr.msk.f32.mxu0 %vm181_vm0, %v161_v31 }
  0x2c   : > { %1004 = vmatprep.mubr.msk.f32.mxu1 %vm181_vm0, %v177_v32 }
  0x2e   : > { %981 = vmatmul.mubr.msk.f32.gmra.mrb[14].mxu0 %vm181_vm0, %v162_v33 }
  0x2f   : > { %1005 = vmatmul.mubr.msk.f32.gmra.mrb[14].mxu1 %vm181_vm0, %v178_v34 }
  0xe5   : > { %v961_v35 = vpop.f32.mrb[0].mxu0 }
  0xe6   : > { %v985_v36 = vpop.f32.mrb[0].mxu1  ;;  %v344_v37 = vpop.f32.mrb[1].mxu0 }
  0xe7   : > { %v424_v38 = vpop.f32.mrb[1].mxu1  ;;  %v829_v39 = vpack.c.bf16 %v961_v35, %v344_v37 }
  0xe8   : > { %v869_v40 = vpack.c.bf16 %v985_v36, %v424_v38 }
  0xe9   : > { %830 = vst [vmem:[%s1134_s23] sm:$0xff] %v829_v39   ;;  %v964_v41 = vpop.f32.mrb[2].mxu0 }
  0xea   : > { %913 = vst [vmem:[%s1134_s23 + $0x40] sm:$0xff] %v869_v40   ;;  %v988_v42 = vpop.f32.mrb[2].mxu1  ;;  %v354_v43 = vpop.f32.mrb[3].mxu0 }
  0xeb   : > { %v434_v44 = vpop.f32.mrb[3].mxu1  ;;  %v834_v45 = vpack.c.bf16 %v964_v41, %v354_v43 }
  0xec   : > { %v874_v46 = vpack.c.bf16 %v988_v42, %v434_v44 }
  0xed   : > { %906 = vst [vmem:[%s1134_s23 + $0x8] sm:$0xff] %v834_v45   ;;  %v967_v47 = vpop.f32.mrb[4].mxu0 }
  0xee   : > { %914 = vst [vmem:[%s1134_s23 + $0x48] sm:$0xff] %v874_v46   ;;  %v991_v48 = vpop.f32.mrb[4].mxu1  ;;  %v364_v49 = vpop.f32.mrb[5].mxu0 }
  0xef   : > { %v444_v50 = vpop.f32.mrb[5].mxu1  ;;  %v839_v51 = vpack.c.bf16 %v967_v47, %v364_v49 }
  0xf0   : > { %v879_v52 = vpack.c.bf16 %v991_v48, %v444_v50 }
  0xf1   : > { %907 = vst [vmem:[%s1134_s23 + $0x10] sm:$0xff] %v839_v51   ;;  %v970_v53 = vpop.f32.mrb[6].mxu0 }
  0xf2   : > { %915 = vst [vmem:[%s1134_s23 + $0x50] sm:$0xff] %v879_v52   ;;  %v994_v54 = vpop.f32.mrb[6].mxu1  ;;  %v374_v55 = vpop.f32.mrb[7].mxu0 }
  0xf3   : > { %v454_v56 = vpop.f32.mrb[7].mxu1  ;;  %v844_v57 = vpack.c.bf16 %v970_v53, %v374_v55 }
  0xf4   : > { %v884_v58 = vpack.c.bf16 %v994_v54, %v454_v56 }
  0xf5   : > { %908 = vst [vmem:[%s1134_s23 + $0x18] sm:$0xff] %v844_v57   ;;  %v973_v59 = vpop.f32.mrb[8].mxu0 }
  0xf6   : > { %916 = vst [vmem:[%s1134_s23 + $0x58] sm:$0xff] %v884_v58   ;;  %v997_v60 = vpop.f32.mrb[8].mxu1  ;;  %v384_v61 = vpop.f32.mrb[9].mxu0 }
  0xf7   : > { %v464_v62 = vpop.f32.mrb[9].mxu1  ;;  %v849_v63 = vpack.c.bf16 %v973_v59, %v384_v61 }
  0xf8   : > { %v889_v0 = vpack.c.bf16 %v997_v60, %v464_v62 }
  0xf9   : > { %909 = vst [vmem:[%s1134_s23 + $0x20] sm:$0xff] %v849_v63   ;;  %v976_v1 = vpop.f32.mrb[10].mxu0 }
  0xfa   : > { %917 = vst [vmem:[%s1134_s23 + $0x60] sm:$0xff] %v889_v0   ;;  %v1000_v2 = vpop.f32.mrb[10].mxu1  ;;  %v394_v3 = vpop.f32.mrb[11].mxu0 }
  0xfb   : > { %v474_v4 = vpop.f32.mrb[11].mxu1  ;;  %v854_v5 = vpack.c.bf16 %v976_v1, %v394_v3 }
  0xfc   : > { %v894_v6 = vpack.c.bf16 %v1000_v2, %v474_v4 }
  0xfd   : > { %910 = vst [vmem:[%s1134_s23 + $0x28] sm:$0xff] %v854_v5   ;;  %v979_v7 = vpop.f32.mrb[12].mxu0 }
  0xfe   : > { %918 = vst [vmem:[%s1134_s23 + $0x68] sm:$0xff] %v894_v6   ;;  %v1003_v8 = vpop.f32.mrb[12].mxu1  ;;  %v404_v9 = vpop.f32.mrb[13].mxu0 }
  0xff   : > { %v484_v10 = vpop.f32.mrb[13].mxu1  ;;  %v859_v11 = vpack.c.bf16 %v979_v7, %v404_v9 }
 0x100   : > { %v899_v12 = vpack.c.bf16 %v1003_v8, %v484_v10 }
 0x101   : > { %911 = vst [vmem:[%s1134_s23 + $0x30] sm:$0xff] %v859_v11   ;;  %v982_v13 = vpop.f32.mrb[14].mxu0 }
 0x102   : > { %919 = vst [vmem:[%s1134_s23 + $0x70] sm:$0xff] %v899_v12   ;;  %v1006_v14 = vpop.f32.mrb[14].mxu1  ;;  %v414_v15 = vpop.f32.mrb[15].mxu0 }
 0x103   : > { %v494_v16 = vpop.f32.mrb[15].mxu1  ;;  %v864_v17 = vpack.c.bf16 %v982_v13, %v414_v15 }
 0x104   : > { %v904_v18 = vpack.c.bf16 %v1006_v14, %v494_v16 }
 0x105   : > { %912 = vst [vmem:[%s1134_s23 + $0x38] sm:$0xff] %v864_v17  }
 0x106   : > { %920 = vst [vmem:[%s1134_s23 + $0x78] sm:$0xff] %v904_v18  }
 0x107 PF: > { %s12_s9 = sadd.s32 1, %s1027_s9  }
 0x108   : > { %p9_p4 = scmp.ge.s32.totalorder %s12_s9, 4  }
 0x10a   :  { %11 = sbr.rel (!%p9_p4) target bundleno = 1 (0x1), region = 58 }

// kernel: encoder_forward.5
= control target key start
LH: loop header
LB: loop body
LE: loop exit
PB: predicated region body
PF: predicated region fallthrough
CT: control target
= control target key end

     0   :  { %s3296_s18 = smov 0   ;;  %s4219_s0 = inlined_call_operand.vmem [shape: bf16[512,512], index: 0, kind: input, shape index: {}]   ;;  %s4220_s1 = inlined_call_operand.vmem [shape: bf16[512,128], index: 1, kind: input, shape index: {}]   ;;  %s4221_s2 = inlined_call_operand.vmem [shape: f32[1,128], index: 2, kind: input, shape index: {}]   ;;  %s4222_s3 = inlined_call_operand.vmem [shape: f32[128,128], index: 3, kind: input, shape index: {}]   ;;  %s4223_s4 = inlined_call_operand.vmem [shape: f32[512,128], index: 4, kind: output, shape index: {0}]   ;;  %s4224_s5 = inlined_call_operand.vmem [shape: f32[512,128], index: 5, kind: output, shape index: {1}]  }
   0x1 LB: > { %s2418_s19 = sadd.s32 4294967295, %s3264_s18   ;;  %p2422_p0 = scmp.ge.s32.totalorder %s3264_s18, 1  ;;  %s3264_s18 = sphi %s3296_s18, %s16_s18  }
   0x2   : > { %p192_p1 = scmp.lt.s32.totalorder %s3264_s18, 3 }
   0x4   : > { %p193_p2 = pnand %p2422_p0, %p192_p1 }
   0x5   : > { %v2938_v0 = vld [vmem:[%s4220_s1 + $0x40] sm:$0xff] (!%p193_p2)   ;;  %s2423_s22 = sshll.u32 (!%p193_p2), %s2418_s19, 5  ;;  %v2940_v2 = vld [vmem:[%s4220_s1 + $0x48] sm:$0xff] (!%p193_p2)   ;;  %v2942_v4 = vld [vmem:[%s4220_s1 + $0x50] sm:$0xff] (!%p193_p2)  }
   0x6   : > { %196 = sbr.rel (%p193_p2) target bundleno = 817 (0x331), region = 36  ;;  %v2939_v1 = vld [vmem:[%s4220_s1] sm:$0xff] (!%p193_p2)   ;;  %2914 = vmatprep.subr.bf16.mxu1 (!%p193_p2), %v2938_v0  ;;  %2530 = vmatprep.subr.bf16.mxu0 (!%p193_p2), %v2938_v0  ;;  %v2941_v3 = vld [vmem:[%s4220_s1 + $0x8] sm:$0xff] (!%p193_p2)   ;;  %p227_p3 = scmp.lt.s32.totalorder (!%p193_p2), %s2423_s22, 63  ;;  %v2943_v5 = vld [vmem:[%s4220_s1 + $0x10] sm:$0xff] (!%p193_p2)  }
   0x7   : > { %2922 = vmatpush3.bf16.msra.mxu1 (!%p193_p2), %v2939_v1  ;;  %2531 = vmatpush3.bf16.msra.mxu0 (!%p193_p2), %v2939_v1  ;;  %v2944_v6 = vld [vmem:[%s4220_s1 + $0x58] sm:$0xff] (!%p193_p2)   ;;  %v2946_v8 = vld [vmem:[%s4220_s1 + $0x60] sm:$0xff] (!%p193_p2)   ;;  %v2948_v10 = vld [vmem:[%s4220_s1 + $0x68] sm:$0xff] (!%p193_p2)  }
   0x8   : > { %2915 = vmatprep.subr.bf16.mxu1 (!%p193_p2), %v2940_v2  ;;  %2532 = vmatprep.subr.bf16.mxu0 (!%p193_p2), %v2940_v2  ;;  %v2945_v7 = vld [vmem:[%s4220_s1 + $0x18] sm:$0xff] (!%p193_p2)   ;;  %v2947_v9 = vld [vmem:[%s4220_s1 + $0x20] sm:$0xff] (!%p193_p2)   ;;  %v2949_v12 = vld [vmem:[%s4220_s1 + $0x28] sm:$0xff] (!%p193_p2)  }
   0x9   : > { %v2950_v13 = vld [vmem:[%s4220_s1 + $0x70] sm:$0xff] (!%p193_p2)   ;;  %v2952_v15 = vld [vmem:[%s4220_s1 + $0x78] sm:$0xff] (!%p193_p2)   ;;  %v2957_v17 = vld [vmem:[%s4220_s1 + $0xc0] sm:$0xff] (!%p193_p2)  }
   0xa   : > { %v2951_v14 = vld [vmem:[%s4220_s1 + $0x30] sm:$0xff] (!%p193_p2)   ;;  %v2953_v16 = vld [vmem:[%s4220_s1 + $0x38] sm:$0xff] (!%p193_p2)   ;;  %v2958_v19 = vld [vmem:[%s4220_s1 + $0x80] sm:$0xff] (!%p193_p2)  }
   0xb   : > { %2923 = vmatpush3.bf16.msra.mxu1 (!%p193_p2), %v2941_v3  ;;  %2533 = vmatpush3.bf16.msra.mxu0 (!%p193_p2), %v2941_v3  ;;  %v2959_v21 = vld [vmem:[%s4220_s1 + $0xc8] sm:$0xff] (!%p193_p2)   ;;  %v2964_v24 = vld [vmem:[%s4220_s1 + $0xd0] sm:$0xff] (!%p193_p2)   ;;  %v2966_v28 = vld [vmem:[%s4220_s1 + $0xd8] sm:$0xff] (!%p193_p2)  }
   0xc   : > { %2916 = vmatprep.subr.bf16.mxu1 (!%p193_p2), %v2942_v4  ;;  %2534 = vmatprep.subr.bf16.mxu0 (!%p193_p2), %v2942_v4  ;;  %v2960_v22 = vld [vmem:[%s4220_s1 + $0x88] sm:$0xff] (!%p193_p2)   ;;  %v2965_v27 = vld [vmem:[%s4220_s1 + $0x90] sm:$0xff] (!%p193_p2)   ;;  %v2967_v31 = vld [vmem:[%s4220_s1 + $0x98] sm:$0xff] (!%p193_p2)  }
   0xd   : > { %s4226_s22 = smov (!%p227_p3, %s2423_s22), 63  ;;  %v2971_v32 = vld [vmem:[%s4220_s1 + $0xe0] sm:$0xff]   ;;  %v2973_v38 = vld [vmem:[%s4220_s1 + $0xe8] sm:$0xff]   ;;  %v2978_v40 = vld [vmem:[%s4220_s1 + $0xf0] sm:$0xff]  }
   0xe   : > { %s2529_s12 = sshll.u32 %s4226_s22, 4  ;;  %v2972_v36 = vld [vmem:[%s4220_s1 + $0xa0] sm:$0xff]   ;;  %v2974_v39 = vld [vmem:[%s4220_s1 + $0xa8] sm:$0xff]   ;;  %v2979_v44 = vld [vmem:[%s4220_s1 + $0xb0] sm:$0xff]   ;;  %s2427_s8 = sshll.u32 %s4226_s22, 3 }
   0xf   : > { %2924 = vmatpush3.bf16.msra.mxu1 %v2943_v5  ;;  %2535 = vmatpush3.bf16.msra.mxu0 %v2943_v5  ;;  %s3337_s17 = scalar_lea.vmem %s4219_s0, %s2529_s12  ;;  %v2980_v46 = vld [vmem:[%s4220_s1 + $0xf8] sm:$0xff]   ;;  %s3555_s11 = scalar_lea.vmem %s4223_s4, %s2427_s8 }
  0x10   : > { %2917 = vmatprep.subr.bf16.mxu1 %v2944_v6  ;;  %2536 = vmatprep.subr.bf16.mxu0 %v2944_v6  ;;  %v2956_v11 = vld [vmem:[%s3337_s17 + $0x184] ss:$16 sps:$4 sm:$0xff]   ;;  %v2954_v18 = vld [vmem:[%s3337_s17 + $0x180] ss:$16 sps:$4 sm:$0xff]   ;;  %v2987_v45 = vld [vmem:[%s3337_s17 + $0xc] ss:$16 sps:$4 sm:$0xff]   ;;  %s4150_s14 = scalar_lea.vmem %s4224_s5, %s2427_s8 }
  0x11   : > { %1021 = vmatprep.mubr.bf16.mxu1 %v2956_v11  ;;  %v2961_v20 = vld [vmem:[%s3337_s17 + $0x1a4] ss:$16 sps:$4 sm:$0xff]   ;;  %v2963_v23 = vld [vmem:[%s3337_s17 + $0x1a0] ss:$16 sps:$4 sm:$0xff]   ;;  %v2984_v47 = vld [vmem:[%s4220_s1 + $0xb8] sm:$0xff]  }
  0x12   : > { %v2981_v25 = vld [vmem:[%s3337_s17] ss:$16 sps:$4 sm:$0xff]   ;;  %v2983_v26 = vld [vmem:[%s3337_s17 + $0x4] ss:$16 sps:$4 sm:$0xff]   ;;  %v2985_v50 = vld [vmem:[%s3337_s17 + $0x8] ss:$16 sps:$4 sm:$0xff]  }
  0x13   : > { %2925 = vmatpush3.bf16.msra.mxu1 %v2945_v7  ;;  %2537 = vmatpush3.bf16.msra.mxu0 %v2945_v7  ;;  %v2968_v29 = vld [vmem:[%s3337_s17 + $0x1c4] ss:$16 sps:$4 sm:$0xff]   ;;  %v2990_v33 = vld [vmem:[%s3337_s17 + $0x20] ss:$16 sps:$4 sm:$0xff]   ;;  %v2991_v51 = vld [vmem:[%s3337_s17 + $0x2c] ss:$16 sps:$4 sm:$0xff]  }
  0x14   : > { %2918 = vmatprep.subr.bf16.mxu1 %v2946_v8  ;;  %2538 = vmatprep.subr.bf16.mxu0 %v2946_v8  ;;  %v2988_v30 = vld [vmem:[%s3337_s17 + $0x24] ss:$16 sps:$4 sm:$0xff]   ;;  %v2970_v35 = vld [vmem:[%s3337_s17 + $0x1c0] ss:$16 sps:$4 sm:$0xff]   ;;  %v2993_v54 = vld [vmem:[%s3337_s17 + $0x28] ss:$16 sps:$4 sm:$0xff]  }
  0x15   : > { %925 = vmatprep.mubr.bf16.mxu0 %v2983_v26  ;;  %v2994_v34 = vld [vmem:[%s3337_s17 + $0x44] ss:$16 sps:$4 sm:$0xff]   ;;  %v2996_v41 = vld [vmem:[%s3337_s17 + $0x40] ss:$16 sps:$4 sm:$0xff]   ;;  %v2997_v55 = vld [vmem:[%s3337_s17 + $0x4c] ss:$16 sps:$4 sm:$0xff]  }
  0x16   : > { %v2975_v37 = vld [vmem:[%s3337_s17 + $0x1e4] ss:$16 sps:$4 sm:$0xff]   ;;  %v2977_v43 = vld [vmem:[%s3337_s17 + $0x1e0] ss:$16 sps:$4 sm:$0xff]   ;;  %v2999_v58 = vld [vmem:[%s3337_s17 + $0x48] ss:$16 sps:$4 sm:$0xff]  }
  0x17   : > { %2926 = vmatpush3.bf16.msra.mxu1 %v2947_v9  ;;  %2539 = vmatpush3.bf16.msra.mxu0 %v2947_v9  ;;  %v3000_v42 = vld [vmem:[%s3337_s17 + $0x64] ss:$16 sps:$4 sm:$0xff]   ;;  %v3002_v48 = vld [vmem:[%s3337_s17 + $0x60] ss:$16 sps:$4 sm:$0xff]   ;;  %v3003_v59 = vld [vmem:[%s3337_s17 + $0x6c] ss:$16 sps:$4 sm:$0xff]  }
  0x18   : > { %2919 = vmatprep.subr.bf16.mxu1 %v2948_v10  ;;  %2540 = vmatprep.subr.bf16.mxu0 %v2948_v10  ;;  %v3006_v49 = vld [vmem:[%s3337_s17 + $0x84] ss:$16 sps:$4 sm:$0xff]   ;;  %v3008_v52 = vld [vmem:[%s3337_s17 + $0x80] ss:$16 sps:$4 sm:$0xff]   ;;  %v3005_v62 = vld [vmem:[%s3337_s17 + $0x68] ss:$16 sps:$4 sm:$0xff]  }
  0x19   : > { %v3012_v53 = vld [vmem:[%s3337_s17 + $0xa4] ss:$16 sps:$4 sm:$0xff]   ;;  %v3014_v56 = vld [vmem:[%s3337_s17 + $0xa0] ss:$16 sps:$4 sm:$0xff]   ;;  %v3009_v63 = vld [vmem:[%s3337_s17 + $0x8c] ss:$16 sps:$4 sm:$0xff]  }
  0x1a   : > { %v3018_v57 = vld [vmem:[%s3337_s17 + $0xc4] ss:$16 sps:$4 sm:$0xff]   ;;  %v3020_v60 = vld [vmem:[%s3337_s17 + $0xc0] ss:$16 sps:$4 sm:$0xff]   ;;  %v3011_v2 = vld [vmem:[%s3337_s17 + $0x88] ss:$16 sps:$4 sm:$0xff]  }
  0x1b   : > { %2927 = vmatpush3.bf16.msra.mxu1 %v2949_v12  ;;  %2541 = vmatpush3.bf16.msra.mxu0 %v2949_v12  ;;  %v3024_v61 = vld [vmem:[%s3337_s17 + $0xe4] ss:$16 sps:$4 sm:$0xff]   ;;  %v3026_v0 = vld [vmem:[%s3337_s17 + $0xe0] ss:$16 sps:$4 sm:$0xff]   ;;  %v3015_v3 = vld [vmem:[%s3337_s17 + $0xac] ss:$16 sps:$4 sm:$0xff]  }
  0x1c   : > { %2920 = vmatprep.subr.bf16.mxu1 %v2950_v13  ;;  %2542 = vmatprep.subr.bf16.mxu0 %v2950_v13  ;;  %v3030_v1 = vld [vmem:[%s3337_s17 + $0x104] ss:$16 sps:$4 sm:$0xff]   ;;  %v3032_v4 = vld [vmem:[%s3337_s17 + $0x100] ss:$16 sps:$4 sm:$0xff]   ;;  %v3017_v6 = vld [vmem:[%s3337_s17 + $0xa8] ss:$16 sps:$4 sm:$0xff]  }
  0x1d   : > { %v3036_v5 = vld [vmem:[%s3337_s17 + $0x124] ss:$16 sps:$4 sm:$0xff]   ;;  %v3021_v7 = vld [vmem:[%s3337_s17 + $0xcc] ss:$16 sps:$4 sm:$0xff]   ;;  %v3038_v8 = vld [vmem:[%s3337_s17 + $0x120] ss:$16 sps:$4 sm:$0xff]  }
  0x1e   : > { %v3042_v9 = vld [vmem:[%s3337_s17 + $0x144] ss:$16 sps:$4 sm:$0xff]   ;;  %v3023_v10 = vld [vmem:[%s3337_s17 + $0xc8] ss:$16 sps:$4 sm:$0xff]   ;;  %v3027_v11 = vld [vmem:[%s3337_s17 + $0xec] ss:$16 sps:$4 sm:$0xff]  }
  0x1f   : > { %2928 = vmatpush3.bf16.msra.mxu1 %v2951_v14  ;;  %2543 = vmatpush3.bf16.msra.mxu0 %v2951_v14  ;;  %v3044_v12 = vld [vmem:[%s3337_s17 + $0x140] ss:$16 sps:$4 sm:$0xff]   ;;  %v3048_v13 = vld [vmem:[%s3337_s17 + $0x164] ss:$16 sps:$4 sm:$0xff]   ;;  %v3029_v14 = vld [vmem:[%s3337_s17 + $0xe8] ss:$16 sps:$4 sm:$0xff]  }
  0x20   : > { %2921 = vmatprep.subr.bf16.mxu1 %v2952_v15  ;;  %2544 = vmatprep.subr.bf16.mxu0 %v2952_v15  ;;  %v3033_v15 = vld [vmem:[%s3337_s17 + $0x10c] ss:$16 sps:$4 sm:$0xff]  }
  0x21   : > { %v3039_v26 = vld [vmem:[%s3337_s17 + $0x12c] ss:$16 sps:$4 sm:$0xff]  }
  0x23   : > { %2929 = vmatpush3.bf16.msra.mxu1 %v2953_v16  ;;  %2545 = vmatpush3.bf16.msra.mxu0 %v2953_v16  ;;  %v1247_v16 = vld [vmem:[%s4222_s3] sm:$0xff] }
  0x24   : > { %2642 = vmatprep.subr.bf16.mxu1 %v2957_v17  ;;  %v1248_v17 = vld [vmem:[%s4222_s3 + $0x8] sm:$0xff] }
  0x26   : > { %1022 = vmatmul.mubr.bf16.vlgmr.msra.gmra.mrb[0].mxu1 %v2954_v18  ;;  %926 = vmatmul.mubr.bf16.vlgmr.msra.gmra.mrb[0].mxu0 %v2981_v25  ;;  %v1359_v18 = vmul.f32 %v1247_v16, %v1247_v16  ;;  %v1250_v25 = vld [vmem:[%s4222_s3 + $0x18] sm:$0xff] }
  0x27   : > { %2643 = vmatpush3.bf16.msra.mxu1 %v2958_v19  ;;  %1029 = vmatprep.mubr.bf16.mxu1 %v2961_v20  ;;  %v1360_v19 = vmul.f32 %v1248_v17, %v1248_v17  ;;  %v2882_v20 = vpack.c.bf16 %v1248_v17, %v1247_v16 }
  0x28   : > { %2644 = vmatprep.subr.bf16.mxu1 %v2959_v21  ;;  %933 = vmatprep.mubr.bf16.mxu0 %v2988_v30  ;;  %v3050_v21 = vld [vmem:[%s3337_s17 + $0x160] ss:$16 sps:$4 sm:$0xff]  }
  0x29   : > { %2883 = vmatprep.subr.bf16.mxu0 %v2882_v20 }
  0x2a   : > { %2885 = vmatpush3.bf16.msra.mxu0 %v2882_v20  ;;  %v3062_v20 = vld [vmem:[%s3337_s17 + $0x1c8] ss:$16 sps:$4 sm:$0xff]  }
  0x2b   : > { %2645 = vmatpush3.bf16.msra.mxu1 %v2960_v22  ;;  %v1375_v22 = vadd.f32 %v1360_v19, %v1359_v18  ;;  %v3059_v18 = vld [vmem:[%s3337_s17 + $0x1a8] ss:$16 sps:$4 sm:$0xff]   ;;  %v3060_v19 = vld [vmem:[%s3337_s17 + $0x1cc] ss:$16 sps:$4 sm:$0xff]  }
  0x2c   : > { %2646 = vmatprep.subr.bf16.mxu1 %v2964_v24  ;;  %v1249_v24 = vld [vmem:[%s4222_s3 + $0x10] sm:$0xff] }
  0x2d   : > { %v1361_v30 = vmul.f32 %v1249_v24, %v1249_v24 }
  0x2e   : > { %1030 = vmatmul.mubr.bf16.gmra.mrb[4].mxu1 %v2963_v23  ;;  %934 = vmatmul.mubr.bf16.gmra.mrb[4].mxu0 %v2990_v33  ;;  %v3035_v23 = vld [vmem:[%s3337_s17 + $0x108] ss:$16 sps:$4 sm:$0xff]  }
  0x2f   : > { %2647 = vmatpush3.bf16.msra.mxu1 %v2965_v27  ;;  %1037 = vmatprep.mubr.bf16.mxu1 %v2968_v29  ;;  %v2886_v27 = vpack.c.bf16 %v1250_v25, %v1249_v24  ;;  %v1252_v29 = vld [vmem:[%s4222_s3 + $0x28] sm:$0xff]  ;;  %v1376_v33 = vadd.f32 %v1375_v22, %v1361_v30 }
  0x30   : > { %2648 = vmatprep.subr.bf16.mxu1 %v2966_v28  ;;  %941 = vmatprep.mubr.bf16.mxu0 %v2994_v34  ;;  %v1251_v28 = vld [vmem:[%s4222_s3 + $0x20] sm:$0xff]  ;;  %v3065_v22 = vld [vmem:[%s3337_s17 + $0x1e8] ss:$16 sps:$4 sm:$0xff]  }
  0x31   : > { %2887 = vmatprep.subr.bf16.mxu0 %v2886_v27  ;;  %v1363_v34 = vmul.f32 %v1251_v28, %v1251_v28 }
  0x32   : > { %2889 = vmatpush3.bf16.msra.mxu0 %v2886_v27 }
  0x33   : > { %2649 = vmatpush3.bf16.msra.mxu1 %v2967_v31  ;;  %v1362_v31 = vmul.f32 %v1250_v25, %v1250_v25 }
  0x34   : > { %2650 = vmatprep.subr.bf16.mxu1 %v2971_v32  ;;  %v2890_v32 = vpack.c.bf16 %v1252_v29, %v1251_v28 }
  0x36   : > { %1038 = vmatmul.mubr.bf16.gmra.mrb[8].mxu1 %v2970_v35  ;;  %942 = vmatmul.mubr.bf16.gmra.mrb[8].mxu0 %v2996_v41  ;;  %v3041_v35 = vld [vmem:[%s3337_s17 + $0x128] ss:$16 sps:$4 sm:$0xff]  }
  0x37   : > { %2651 = vmatpush3.bf16.msra.mxu1 %v2972_v36  ;;  %1045 = vmatprep.mubr.bf16.mxu1 %v2975_v37  ;;  %v1253_v36 = vld [vmem:[%s4222_s3 + $0x30] sm:$0xff]  ;;  %v1254_v37 = vld [vmem:[%s4222_s3 + $0x38] sm:$0xff] }
  0x38   : > { %2652 = vmatprep.subr.bf16.mxu1 %v2973_v38  ;;  %949 = vmatprep.mubr.bf16.mxu0 %v3000_v42  ;;  %v3045_v38 = vld [vmem:[%s3337_s17 + $0x14c] ss:$16 sps:$4 sm:$0xff]   ;;  %v2894_v41 = vpack.c.bf16 %v1254_v37, %v1253_v36 }
  0x39   : > { %2891 = vmatprep.subr.bf16.mxu0 %v2890_v32 }
  0x3a   : > { %2893 = vmatpush3.bf16.msra.mxu0 %v2890_v32 }
  0x3b   : > { %2653 = vmatpush3.bf16.msra.mxu1 %v2974_v39  ;;  %v1377_v39 = vadd.f32 %v1376_v33, %v1362_v31  ;;  %2895 = vmatprep.subr.bf16.mxu0 %v2894_v41 }
  0x3c   : > { %2654 = vmatprep.subr.bf16.mxu1 %v2978_v40  ;;  %v1364_v40 = vmul.f32 %v1252_v29, %v1252_v29 }
  0x3d   : > { %v1378_v42 = vadd.f32 %v1377_v39, %v1363_v34 }
  0x3e   : > { %1046 = vmatmul.mubr.bf16.gmra.mrb[12].mxu1 %v2977_v43  ;;  %950 = vmatmul.mubr.bf16.gmra.mrb[12].mxu0 %v3002_v48  ;;  %v1255_v43 = vld [vmem:[%s4222_s3 + $0x40] sm:$0xff] }
  0x3f   : > { %2655 = vmatpush3.bf16.msra.mxu1 %v2979_v44  ;;  %1086 = vmatprep.mubr.bf16.mxu1 %v2987_v45  ;;  %v1256_v44 = vld [vmem:[%s4222_s3 + $0x48] sm:$0xff]  ;;  %v1379_v45 = vadd.f32 %v1378_v42, %v1364_v40 }
  0x40   : > { %2656 = vmatprep.subr.bf16.mxu1 %v2980_v46  ;;  %957 = vmatprep.mubr.bf16.mxu0 %v3006_v49  ;;  %v1365_v46 = vmul.f32 %v1253_v36, %v1253_v36  ;;  %v2898_v48 = vpack.c.bf16 %v1256_v44, %v1255_v43 }
  0x41   : > { %2897 = vmatpush3.bf16.msra.mxu0 %v2894_v41 }
  0x42   : > { %v1380_v49 = vadd.f32 %v1379_v45, %v1365_v46  ;;  %2899 = vmatprep.subr.bf16.mxu0 %v2898_v48 }
  0x43   : > { %2657 = vmatpush3.bf16.msra.mxu1 %v2984_v47  ;;  %v1366_v47 = vmul.f32 %v1254_v37, %v1254_v37 }
  0x45   : > { %2901 = vmatpush3.bf16.msra.mxu0 %v2898_v48 }
  0x46   : > { %1087 = vmatmul.mubr.bf16.vlgmr.msra.gmra.mrb[16].mxu1 %v2985_v50  ;;  %958 = vmatmul.mubr.bf16.gmra.mrb[16].mxu0 %v3008_v52  ;;  %v1367_v50 = vmul.f32 %v1255_v43, %v1255_v43  ;;  %v1257_v52 = vld [vmem:[%s4222_s3 + $0x50] sm:$0xff] }
  0x47   : > { %1094 = vmatprep.mubr.bf16.mxu1 %v2991_v51  ;;  %965 = vmatprep.mubr.bf16.mxu0 %v3012_v53  ;;  %v3047_v51 = vld [vmem:[%s3337_s17 + $0x148] ss:$16 sps:$4 sm:$0xff]  }
  0x48   : > { %v1258_v53 = vld [vmem:[%s4222_s3 + $0x58] sm:$0xff] }
  0x4e   : > { %1095 = vmatmul.mubr.bf16.gmra.mrb[20].mxu1 %v2993_v54  ;;  %966 = vmatmul.mubr.bf16.gmra.mrb[20].mxu0 %v3014_v56  ;;  %v3051_v54 = vld [vmem:[%s3337_s17 + $0x16c] ss:$16 sps:$4 sm:$0xff]   ;;  %v1368_v56 = vmul.f32 %v1256_v44, %v1256_v44 }
  0x4f   : > { %1102 = vmatprep.mubr.bf16.mxu1 %v2997_v55  ;;  %973 = vmatprep.mubr.bf16.mxu0 %v3018_v57  ;;  %v1381_v55 = vadd.f32 %v1380_v49, %v1366_v47  ;;  %v2902_v57 = vpack.c.bf16 %v1258_v53, %v1257_v52 }
  0x51   : > { %2903 = vmatprep.subr.bf16.mxu0 %v2902_v57 }
  0x52   : > { %2905 = vmatpush3.bf16.msra.mxu0 %v2902_v57 }
  0x56   : > { %1103 = vmatmul.mubr.bf16.gmra.mrb[24].mxu1 %v2999_v58  ;;  %974 = vmatmul.mubr.bf16.gmra.mrb[24].mxu0 %v3020_v60  ;;  %v1382_v58 = vadd.f32 %v1381_v55, %v1367_v50  ;;  %v1260_v60 = vld [vmem:[%s4222_s3 + $0x68] sm:$0xff] }
  0x57   : > { %1110 = vmatprep.mubr.bf16.mxu1 %v3003_v59  ;;  %981 = vmatprep.mubr.bf16.mxu0 %v3024_v61  ;;  %v1259_v59 = vld [vmem:[%s4222_s3 + $0x60] sm:$0xff] }
  0x58   : > { %v1383_v61 = vadd.f32 %v1382_v58, %v1368_v56 }
  0x5e   : > { %1111 = vmatmul.mubr.bf16.gmra.mrb[28].mxu1 %v3005_v62  ;;  %982 = vmatmul.mubr.bf16.gmra.mrb[28].mxu0 %v3026_v0  ;;  %v1369_v62 = vmul.f32 %v1257_v52, %v1257_v52  ;;  %v2906_v0 = vpack.c.bf16 %v1260_v60, %v1259_v59 }
  0x5f   : > { %1118 = vmatprep.mubr.bf16.mxu1 %v3009_v63  ;;  %989 = vmatprep.mubr.bf16.mxu0 %v3030_v1  ;;  %v1370_v63 = vmul.f32 %v1258_v53, %v1258_v53 }
  0x60   : > { %v1384_v1 = vadd.f32 %v1383_v61, %v1369_v62  ;;  %2907 = vmatprep.subr.bf16.mxu0 %v2906_v0 }
  0x61   : > { %2909 = vmatpush3.bf16.msra.mxu0 %v2906_v0 }
  0x66   : > { %1119 = vmatmul.mubr.bf16.gmra.mrb[32].mxu1 %v3011_v2  ;;  %990 = vmatmul.mubr.bf16.gmra.mrb[32].mxu0 %v3032_v4  ;;  %v1371_v2 = vmul.f32 %v1259_v59, %v1259_v59  ;;  %v1261_v4 = vld [vmem:[%s4222_s3 + $0x70] sm:$0xff] }
  0x67   : > { %1126 = vmatprep.mubr.bf16.mxu1 %v3015_v3  ;;  %997 = vmatprep.mubr.bf16.mxu0 %v3036_v5  ;;  %v3053_v3 = vld [vmem:[%s3337_s17 + $0x168] ss:$16 sps:$4 sm:$0xff]  }
  0x68   : > { %v1262_v5 = vld [vmem:[%s4222_s3 + $0x78] sm:$0xff] }
  0x6e   : > { %1127 = vmatmul.mubr.bf16.gmra.mrb[36].mxu1 %v3017_v6  ;;  %998 = vmatmul.mubr.bf16.gmra.mrb[36].mxu0 %v3038_v8  ;;  %v3054_v6 = vld [vmem:[%s3337_s17 + $0x18c] ss:$16 sps:$4 sm:$0xff]   ;;  %v1372_v8 = vmul.f32 %v1260_v60, %v1260_v60 }
  0x6f   : > { %1134 = vmatprep.mubr.bf16.mxu1 %v3021_v7  ;;  %1005 = vmatprep.mubr.bf16.mxu0 %v3042_v9  ;;  %v1385_v7 = vadd.f32 %v1384_v1, %v1370_v63  ;;  %v2910_v9 = vpack.c.bf16 %v1262_v5, %v1261_v4 }
  0x71   : > { %2911 = vmatprep.subr.bf16.mxu0 %v2910_v9 }
  0x72   : > { %2913 = vmatpush3.bf16.msra.mxu0 %v2910_v9 }
  0x76   : > { %1135 = vmatmul.mubr.bf16.gmra.mrb[40].mxu1 %v3023_v10  ;;  %1006 = vmatmul.mubr.bf16.gmra.mrb[40].mxu0 %v3044_v12  ;;  %v1386_v10 = vadd.f32 %v1385_v7, %v1371_v2  ;;  %v1373_v12 = vmul.f32 %v1261_v4, %v1261_v4  ;;  %v3541_v2 = vld [vmem:[%s4221_s2] ss:$0 sm:$0xff] }
  0x77   : > { %1142 = vmatprep.mubr.bf16.mxu1 %v3027_v11  ;;  %1013 = vmatprep.mubr.bf16.mxu0 %v3048_v13  ;;  %v1374_v13 = vmul.f32 %v1262_v5, %v1262_v5 }
  0x78   : > { %v1387_v11 = vadd.f32 %v1386_v10, %v1372_v8 }
  0x7a   : > { %v1388_v16 = vadd.f32 %v1387_v11, %v1373_v12 }
  0x7c   : > { %v3515_v17 = vadd.f32 %v1388_v16, %v1374_v13 }
  0x7e   : > { %1143 = vmatmul.mubr.bf16.gmra.mrb[44].mxu1 %v3029_v14  ;;  %1014 = vmatmul.mubr.bf16.gmra.mrb[44].mxu0 %v3050_v21  ;;  %v3056_v14 = vld [vmem:[%s3337_s17 + $0x188] ss:$16 sps:$4 sm:$0xff]   ;;  %v3063_v21 = vld [vmem:[%s3337_s17 + $0x1ec] ss:$16 sps:$4 sm:$0xff]  }
  0x7f   : > { %1150 = vmatprep.mubr.bf16.mxu1 %v3033_v15  ;;  %v3057_v15 = vld [vmem:[%s3337_s17 + $0x1ac] ss:$16 sps:$4 sm:$0xff]  }
  0x86   : > { %1151 = vmatmul.mubr.bf16.gmra.mrb[48].mxu1 %v3035_v23 }
  0x87   : > { %1158 = vmatprep.mubr.bf16.mxu1 %v3039_v26 }
  0x8e   : > { %1159 = vmatmul.mubr.bf16.gmra.mrb[52].mxu1 %v3041_v35 }
  0x8f   : > { %1166 = vmatprep.mubr.bf16.mxu1 %v3045_v38 }
  0x96   : > { %1167 = vmatmul.mubr.bf16.gmra.mrb[56].mxu1 %v3047_v51 }
  0x97   : > { %1174 = vmatprep.mubr.bf16.mxu1 %v3051_v54 }
  0x9e   : > { %1175 = vmatmul.mubr.bf16.gmra.mrb[60].mxu1 %v3053_v3 }
  0x9f   : > { %1182 = vmatprep.mubr.bf16.mxu1 %v3054_v6 }
  0xa6   : > { %1183 = vmatmul.mubr.bf16.gmra.mrb[64].mxu1 %v3056_v14 }
  0xa7   : > { %1190 = vmatprep.mubr.bf16.mxu1 %v3057_v15 }
  0xae   : > { %1191 = vmatmul.mubr.bf16.gmra.mrb[68].mxu1 %v3059_v18 }
  0xaf   : > { %1198 = vmatprep.mubr.bf16.mxu1 %v3060_v19 }
  0xb6   : > { %1199 = vmatmul.mubr.bf16.gmra.mrb[72].mxu1 %v3062_v20 }
  0xb7   : > { %1206 = vmatprep.mubr.bf16.mxu1 %v3063_v21 }
  0xbe   : > { %1207 = vmatmul.mubr.bf16.gmra.mrb[76].mxu1 %v3065_v22 }
  0xf9   : > { %v2618_v23 = vpop.f32.mrb[0].mxu1  ;;  %v2546_v29 = vpop.f32.mrb[0].mxu0 }
  0xfa   : > { %v2619_v24 = vpop.f32.mrb[1].mxu1  ;;  %v2547_v30 = vpop.f32.mrb[1].mxu0 }
  0xfb   : > { %v3522_v25 = vadd.f32 %v2619_v24, %v2618_v23  ;;  %v2621_v26 = vpop.f32.mrb[2].mxu1  ;;  %v2548_v32 = vadd.f32 %v2547_v30, %v2546_v29  ;;  %v2549_v33 = vpop.f32.mrb[2].mxu0 }
  0xfc   : > { %v2622_v27 = vpop.f32.mrb[3].mxu1  ;;  %v2550_v35 = vpop.f32.mrb[3].mxu0 }
  0xfd   : > { %v3524_v28 = vadd.f32 %v2622_v27, %v2621_v26  ;;  %v2551_v38 = vadd.f32 %v2550_v35, %v2549_v33  ;;  %v928_v4 = vadd.f32 %v2548_v32, %v3541_v2 }
  0xff   : > { %v931_v10 = vadd.f32 %v2551_v38, %v3541_v2 }
 0x101   : > { %v2624_v31 = vpop.f32.mrb[4].mxu1  ;;  %v2552_v41 = vpop.f32.mrb[4].mxu0 }
 0x102   : > { %v2625_v34 = vpop.f32.mrb[5].mxu1  ;;  %v2553_v42 = vpop.f32.mrb[5].mxu0 }
 0x103   : > { %v3526_v36 = vadd.f32 %v2625_v34, %v2624_v31  ;;  %v2627_v37 = vpop.f32.mrb[6].mxu1  ;;  %v2554_v44 = vadd.f32 %v2553_v42, %v2552_v41  ;;  %v2555_v45 = vpop.f32.mrb[6].mxu0 }
 0x104   : > { %v2628_v39 = vpop.f32.mrb[7].mxu1  ;;  %v2556_v47 = vpop.f32.mrb[7].mxu0 }
 0x105   : > { %v3528_v40 = vadd.f32 %v2628_v39, %v2627_v37  ;;  %v2557_v50 = vadd.f32 %v2556_v47, %v2555_v45  ;;  %v936_v22 = vadd.f32 %v2554_v44, %v3541_v2 }
 0x107   : > { %v939_v30 = vadd.f32 %v2557_v50, %v3541_v2 }
 0x109   : > { %v2630_v43 = vpop.f32.mrb[8].mxu1  ;;  %v2558_v53 = vpop.f32.mrb[8].mxu0 }
 0x10a   : > { %v2631_v46 = vpop.f32.mrb[9].mxu1  ;;  %v2559_v54 = vpop.f32.mrb[9].mxu0 }
 0x10b   : > { %v3530_v48 = vadd.f32 %v2631_v46, %v2630_v43  ;;  %v2633_v49 = vpop.f32.mrb[10].mxu1  ;;  %v2560_v56 = vadd.f32 %v2559_v54, %v2558_v53  ;;  %v2561_v57 = vpop.f32.mrb[10].mxu0 }
 0x10c   : > { %v2634_v51 = vpop.f32.mrb[11].mxu1  ;;  %v2562_v59 = vpop.f32.mrb[11].mxu0 }
 0x10d   : > { %v3532_v52 = vadd.f32 %v2634_v51, %v2633_v49  ;;  %v2563_v62 = vadd.f32 %v2562_v59, %v2561_v57  ;;  %v944_v44 = vadd.f32 %v2560_v56, %v3541_v2 }
 0x10f   : > { %v947_v51 = vadd.f32 %v2563_v62, %v3541_v2 }
 0x111   : > { %v2636_v55 = vpop.f32.mrb[12].mxu1  ;;  %v2564_v1 = vpop.f32.mrb[12].mxu0 }
 0x112   : > { %v2637_v58 = vpop.f32.mrb[13].mxu1  ;;  %v2565_v3 = vpop.f32.mrb[13].mxu0 }
 0x113   : > { %v3534_v60 = vadd.f32 %v2637_v58, %v2636_v55  ;;  %v2639_v61 = vpop.f32.mrb[14].mxu1  ;;  %v3545_v6 = vadd.f32 %v2565_v3, %v2564_v1  ;;  %v2567_v7 = vpop.f32.mrb[14].mxu0 }
 0x114   : > { %v2640_v63 = vpop.f32.mrb[15].mxu1  ;;  %v2568_v9 = vpop.f32.mrb[15].mxu0 }
 0x115   : > { %v3536_v0 = vadd.f32 %v2640_v63, %v2639_v61  ;;  %v3548_v13 = vadd.f32 %v2568_v9, %v2567_v7 }
 0x119   : > { %v2658_v5 = vpop.f32.mrb[16].mxu1  ;;  %v2570_v20 = vpop.f32.mrb[16].mxu0 }
 0x11a   : > { %v2659_v8 = vpop.f32.mrb[17].mxu1  ;;  %v2571_v21 = vpop.f32.mrb[17].mxu0 }
 0x11b   : > { %v2660_v11 = vadd.f32 %v2659_v8, %v2658_v5  ;;  %v2661_v12 = vpop.f32.mrb[18].mxu1  ;;  %v3560_v24 = vadd.f32 %v2571_v21, %v2570_v20  ;;  %v2573_v26 = vpop.f32.mrb[18].mxu0 }
 0x11c   : > { %v2662_v14 = vpop.f32.mrb[19].mxu1  ;;  %v2574_v29 = vpop.f32.mrb[19].mxu0 }
 0x11d   : > { %v1089_v15 = vadd.f32 %v2660_v11, %v928_v4  ;;  %v2663_v16 = vadd.f32 %v2662_v14, %v2661_v12  ;;  %v3563_v34 = vadd.f32 %v2574_v29, %v2573_v26  ;;  %v952_v4 = vadd.f32 %v3545_v6, %v3541_v2 }
 0x11e   : > { %v955_v11 = vadd.f32 %v3548_v13, %v3541_v2 }
 0x11f   : > { %1215 = vst [vmem:[%s3555_s11] sm:$0xff] %v1089_v15  ;;  %v1092_v18 = vadd.f32 %v2663_v16, %v931_v10  ;;  %2834 = vmatprep.mubr.f32.mxu0 %v1089_v15  ;;  %v1263_v19 = vmul.f32 %v1089_v15, %v1089_v15 }
 0x121   : > { %1216 = vst [vmem:[%s3555_s11 + $0x8] sm:$0xff] %v1092_v18  ;;  %v2664_v23 = vpop.f32.mrb[20].mxu1  ;;  %2835 = vmatmul.mubr.f32.vlgmr.msra.gmra.mrb[48].mxu0 %v1092_v18  ;;  %1295 = vadd.xlane.f32.xlu0 %v1263_v19  ;;  %v1264_v33 = vmul.f32 %v1092_v18, %v1092_v18  ;;  %v2576_v42 = vpop.f32.mrb[20].mxu0 }
 0x122   : > { %v2665_v27 = vpop.f32.mrb[21].mxu1  ;;  %v2577_v43 = vpop.f32.mrb[21].mxu0 }
 0x123   : > { %v2666_v31 = vadd.f32 %v2665_v27, %v2664_v23  ;;  %v2667_v32 = vpop.f32.mrb[22].mxu1  ;;  %v3568_v46 = vadd.f32 %v2577_v43, %v2576_v42  ;;  %v2579_v47 = vpop.f32.mrb[22].mxu0  ;;  %v960_v23 = vadd.f32 %v3560_v24, %v3541_v2 }
 0x124   : > { %v2668_v35 = vpop.f32.mrb[23].mxu1  ;;  %v2580_v50 = vpop.f32.mrb[23].mxu0 }
 0x125   : > { %v1097_v37 = vadd.f32 %v2666_v31, %v936_v22  ;;  %v2669_v38 = vadd.f32 %v2668_v35, %v2667_v32  ;;  %1297 = vadd.xlane.f32.xlu0 %v1264_v33  ;;  %v3571_v57 = vadd.f32 %v2580_v50, %v2579_v47  ;;  %v963_v32 = vadd.f32 %v3563_v34, %v3541_v2 }
 0x127   : > { %1217 = vst [vmem:[%s3555_s11 + $0x10] sm:$0xff] %v1097_v37  ;;  %v1100_v39 = vadd.f32 %v2669_v38, %v939_v30  ;;  %2837 = vmatprep.mubr.f32.mxu0 %v1097_v37  ;;  %v1265_v41 = vmul.f32 %v1097_v37, %v1097_v37 }
 0x129   : > { %1218 = vst [vmem:[%s3555_s11 + $0x18] sm:$0xff] %v1100_v39  ;;  %v2670_v45 = vpop.f32.mrb[24].mxu1  ;;  %1299 = vadd.xlane.f32.xlu1 %v1265_v41  ;;  %2838 = vmatmul.mubr.f32.gmra.mrb[50].mxu0 %v1100_v39  ;;  %v1266_v55 = vmul.f32 %v1100_v39, %v1100_v39  ;;  %v2582_v1 = vpop.f32.mrb[24].mxu0 }
 0x12a   : > { %v2671_v49 = vpop.f32.mrb[25].mxu1  ;;  %v2583_v3 = vpop.f32.mrb[25].mxu0 }
 0x12b   : > { %v2672_v53 = vadd.f32 %v2671_v49, %v2670_v45  ;;  %v2673_v54 = vpop.f32.mrb[26].mxu1  ;;  %v3577_v7 = vadd.f32 %v2583_v3, %v2582_v1  ;;  %v2585_v8 = vpop.f32.mrb[26].mxu0  ;;  %v968_v45 = vadd.f32 %v3568_v46, %v3541_v2 }
 0x12c   : > { %v2674_v58 = vpop.f32.mrb[27].mxu1  ;;  %v2586_v10 = vpop.f32.mrb[27].mxu0 }
 0x12d   : > { %v1105_v59 = vadd.f32 %v2672_v53, %v944_v44  ;;  %v2675_v56 = vadd.f32 %v2674_v58, %v2673_v54  ;;  %1301 = vadd.xlane.f32.xlu1 %v1266_v55  ;;  %v3581_v15 = vadd.f32 %v2586_v10, %v2585_v8  ;;  %v971_v54 = vadd.f32 %v3571_v57, %v3541_v2 }
 0x12f   : > { %1219 = vst [vmem:[%s3555_s11 + $0x20] sm:$0xff] %v1105_v59  ;;  %v1108_v61 = vadd.f32 %v2675_v56, %v947_v51  ;;  %2840 = vmatprep.mubr.f32.mxu0 %v1105_v59  ;;  %v1267_v63 = vmul.f32 %v1105_v59, %v1105_v59 }
 0x131   : > { %1220 = vst [vmem:[%s3555_s11 + $0x28] sm:$0xff] %v1108_v61  ;;  %v2676_v62 = vpop.f32.mrb[28].mxu1  ;;  %2841 = vmatmul.mubr.f32.gmra.mrb[52].mxu0 %v1108_v61  ;;  %1303 = vadd.xlane.f32.xlu0 %v1267_v63  ;;  %v1268_v5 = vmul.f32 %v1108_v61, %v1108_v61  ;;  %v2588_v21 = vpop.f32.mrb[28].mxu0 }
 0x132   : > { %v2677_v9 = vpop.f32.mrb[29].mxu1  ;;  %v2589_v22 = vpop.f32.mrb[29].mxu0 }
 0x133   : > { %v2678_v12 = vadd.f32 %v2677_v9, %v2676_v62  ;;  %v2679_v14 = vpop.f32.mrb[30].mxu1  ;;  %1305 = vadd.xlane.f32.xlu1 %v1268_v5  ;;  %v3587_v27 = vadd.f32 %v2589_v22, %v2588_v21  ;;  %v2591_v29 = vpop.f32.mrb[30].mxu0  ;;  %v976_v62 = vadd.f32 %v3577_v7, %v3541_v2 }
 0x134   : > { %v2680_v6 = vpop.f32.mrb[31].mxu1  ;;  %v2592_v31 = vpop.f32.mrb[31].mxu0 }
 0x135   : > { %v1113_v16 = vadd.f32 %v2678_v12, %v952_v4  ;;  %v2681_v18 = vadd.f32 %v2680_v6, %v2679_v14  ;;  %v3591_v37 = vadd.f32 %v2592_v31, %v2591_v29  ;;  %v979_v12 = vadd.f32 %v3581_v15, %v3541_v2 }
 0x137   : > { %1221 = vst [vmem:[%s3555_s11 + $0x30] sm:$0xff] %v1113_v16  ;;  %v1116_v19 = vadd.f32 %v2681_v18, %v955_v11  ;;  %2843 = vmatprep.mubr.f32.mxu0 %v1113_v16  ;;  %v1269_v20 = vmul.f32 %v1113_v16, %v1113_v16 }
 0x139   : > { %1222 = vst [vmem:[%s3555_s11 + $0x38] sm:$0xff] %v1116_v19  ;;  %v2682_v26 = vpop.f32.mrb[32].mxu1  ;;  %2844 = vmatmul.mubr.f32.gmra.mrb[54].mxu0 %v1116_v19  ;;  %1307 = vadd.xlane.f32.xlu0 %v1269_v20  ;;  %v1270_v13 = vmul.f32 %v1116_v19, %v1116_v19  ;;  %v2594_v43 = vpop.f32.mrb[32].mxu0 }
 0x13a   : > { %v2683_v30 = vpop.f32.mrb[33].mxu1  ;;  %v2595_v44 = vpop.f32.mrb[33].mxu0 }
 0x13b   : > { %v2684_v33 = vadd.f32 %v2683_v30, %v2682_v26  ;;  %v2685_v35 = vpop.f32.mrb[34].mxu1  ;;  %1309 = vadd.xlane.f32.xlu1 %v1270_v13  ;;  %v3597_v49 = vadd.f32 %v2595_v44, %v2594_v43  ;;  %v2597_v50 = vpop.f32.mrb[34].mxu0  ;;  %v984_v26 = vadd.f32 %v3587_v27, %v3541_v2 }
 0x13c   : > { %v2686_v24 = vpop.f32.mrb[35].mxu1  ;;  %v2598_v53 = vpop.f32.mrb[35].mxu0 }
 0x13d   : > { %v1121_v38 = vadd.f32 %v2684_v33, %v960_v23  ;;  %v2687_v39 = vadd.f32 %v2686_v24, %v2685_v35  ;;  %v3601_v59 = vadd.f32 %v2598_v53, %v2597_v50  ;;  %v987_v33 = vadd.f32 %v3591_v37, %v3541_v2 }
 0x13f   : > { %1223 = vst [vmem:[%s3555_s11 + $0x40] sm:$0xff] %v1121_v38  ;;  %v1124_v41 = vadd.f32 %v2687_v39, %v963_v32  ;;  %2846 = vmatprep.mubr.f32.mxu0 %v1121_v38  ;;  %v1271_v42 = vmul.f32 %v1121_v38, %v1121_v38 }
 0x141   : > { %1224 = vst [vmem:[%s3555_s11 + $0x48] sm:$0xff] %v1124_v41  ;;  %v2688_v47 = vpop.f32.mrb[36].mxu1  ;;  %2847 = vmatmul.mubr.f32.gmra.mrb[56].mxu0 %v1124_v41  ;;  %1311 = vadd.xlane.f32.xlu0 %v1271_v42  ;;  %v1272_v34 = vmul.f32 %v1124_v41, %v1124_v41  ;;  %v2600_v3 = vpop.f32.mrb[36].mxu0 }
 0x142   : > { %v2689_v51 = vpop.f32.mrb[37].mxu1  ;;  %v2601_v4 = vpop.f32.mrb[37].mxu0 }
 0x143   : > { %v2690_v55 = vadd.f32 %v2689_v51, %v2688_v47  ;;  %v2691_v58 = vpop.f32.mrb[38].mxu1  ;;  %1313 = vadd.xlane.f32.xlu1 %v1272_v34  ;;  %v3607_v8 = vadd.f32 %v2601_v4, %v2600_v3  ;;  %v2603_v9 = vpop.f32.mrb[38].mxu0  ;;  %v992_v47 = vadd.f32 %v3597_v49, %v3541_v2 }
 0x144   : > { %v2692_v46 = vpop.f32.mrb[39].mxu1  ;;  %v2604_v11 = vpop.f32.mrb[39].mxu0 }
 0x145   : > { %v1129_v56 = vadd.f32 %v2690_v55, %v968_v45  ;;  %v2693_v61 = vadd.f32 %v2692_v46, %v2691_v58  ;;  %v3611_v16 = vadd.f32 %v2604_v11, %v2603_v9  ;;  %v995_v55 = vadd.f32 %v3601_v59, %v3541_v2 }
 0x146   : > { %v1000_v4 = vadd.f32 %v3607_v8, %v3541_v2 }
 0x147   : > { %1225 = vst [vmem:[%s3555_s11 + $0x50] sm:$0xff] %v1129_v56  ;;  %v1132_v63 = vadd.f32 %v2693_v61, %v971_v54  ;;  %2849 = vmatprep.mubr.f32.mxu0 %v1129_v56  ;;  %v1273_v1 = vmul.f32 %v1129_v56, %v1129_v56 }
 0x149   : > { %1226 = vst [vmem:[%s3555_s11 + $0x58] sm:$0xff] %v1132_v63  ;;  %v2694_v5 = vpop.f32.mrb[40].mxu1  ;;  %2850 = vmatmul.mubr.f32.gmra.mrb[58].mxu0 %v1132_v63  ;;  %1315 = vadd.xlane.f32.xlu0 %v1273_v1  ;;  %v1274_v57 = vmul.f32 %v1132_v63, %v1132_v63  ;;  %v2606_v22 = vpop.f32.mrb[40].mxu0 }
 0x14a   : > { %v2695_v10 = vpop.f32.mrb[41].mxu1  ;;  %v2607_v23 = vpop.f32.mrb[41].mxu0 }
 0x14b   : > { %v2696_v14 = vadd.f32 %v2695_v10, %v2694_v5  ;;  %v2697_v6 = vpop.f32.mrb[42].mxu1  ;;  %1317 = vadd.xlane.f32.xlu1 %v1274_v57  ;;  %v2608_v29 = vadd.f32 %v2607_v23, %v2606_v22  ;;  %v2609_v30 = vpop.f32.mrb[42].mxu0  ;;  %v1003_v57 = vadd.f32 %v3611_v16, %v3541_v2 }
 0x14c   : > { %v2698_v7 = vpop.f32.mrb[43].mxu1  ;;  %v2610_v32 = vpop.f32.mrb[43].mxu0 }
 0x14d   : > { %v1137_v18 = vadd.f32 %v2696_v14, %v976_v62  ;;  %v2699_v19 = vadd.f32 %v2698_v7, %v2697_v6  ;;  %v2611_v38 = vadd.f32 %v2610_v32, %v2609_v30  ;;  %v1008_v7 = vadd.f32 %v2608_v29, %v3541_v2 }
 0x14f   : > { %1227 = vst [vmem:[%s3555_s11 + $0x60] sm:$0xff] %v1137_v18  ;;  %v1140_v20 = vadd.f32 %v2699_v19, %v979_v12  ;;  %2852 = vmatprep.mubr.f32.mxu0 %v1137_v18  ;;  %v1275_v21 = vmul.f32 %v1137_v18, %v1137_v18 }
 0x151   : > { %1228 = vst [vmem:[%s3555_s11 + $0x68] sm:$0xff] %v1140_v20  ;;  %v2700_v13 = vpop.f32.mrb[44].mxu1  ;;  %2853 = vmatmul.mubr.f32.gmra.mrb[60].mxu0 %v1140_v20  ;;  %1319 = vadd.xlane.f32.xlu0 %v1275_v21  ;;  %v1276_v15 = vmul.f32 %v1140_v20, %v1140_v20  ;;  %v2612_v44 = vpop.f32.mrb[44].mxu0  ;;  %v1011_v20 = vadd.f32 %v2611_v38, %v3541_v2 }
 0x152   : > { %v2701_v31 = vpop.f32.mrb[45].mxu1  ;;  %v2613_v45 = vpop.f32.mrb[45].mxu0 }
 0x153   : > { %v2702_v35 = vadd.f32 %v2701_v31, %v2700_v13  ;;  %v2703_v24 = vpop.f32.mrb[46].mxu1  ;;  %1321 = vadd.xlane.f32.xlu1 %v1276_v15  ;;  %v2614_v50 = vadd.f32 %v2613_v45, %v2612_v44  ;;  %v2615_v51 = vpop.f32.mrb[46].mxu0 }
 0x154   : > { %v2704_v39 = vpop.f32.mrb[47].mxu1  ;;  %v2616_v54 = vpop.f32.mrb[47].mxu0 }
 0x155   : > { %v1145_v41 = vadd.f32 %v2702_v35, %v984_v26  ;;  %v2705_v27 = vadd.f32 %v2704_v39, %v2703_v24  ;;  %v2617_v56 = vadd.f32 %v2616_v54, %v2615_v51  ;;  %v1016_v29 = vadd.f32 %v2614_v50, %v3541_v2 }
 0x157   : > { %1229 = vst [vmem:[%s3555_s11 + $0x70] sm:$0xff] %v1145_v41  ;;  %v1148_v42 = vadd.f32 %v2705_v27, %v987_v33  ;;  %2855 = vmatprep.mubr.f32.mxu0 %v1145_v41  ;;  %v1277_v43 = vmul.f32 %v1145_v41, %v1145_v41  ;;  %v1019_v35 = vadd.f32 %v2617_v56, %v3541_v2 }
 0x159   : > { %1230 = vst [vmem:[%s3555_s11 + $0x78] sm:$0xff] %v1148_v42  ;;  %v2706_v34 = vpop.f32.mrb[48].mxu1  ;;  %2856 = vmatmul.mubr.f32.gmra.mrb[62].mxu0 %v1148_v42  ;;  %1323 = vadd.xlane.f32.xlu0 %v1277_v43  ;;  %v1278_v37 = vmul.f32 %v1148_v42, %v1148_v42 }
 0x15a   : > { %v2707_v53 = vpop.f32.mrb[49].mxu1 }
 0x15b   : > { %v2708_v58 = vadd.f32 %v2707_v53, %v2706_v34  ;;  %v2709_v46 = vpop.f32.mrb[50].mxu1  ;;  %1325 = vadd.xlane.f32.xlu1 %v1278_v37  ;;  %v1024_v34 = vadd.f32 %v3522_v25, %v3541_v2  ;;  %v1027_v53 = vadd.f32 %v3524_v28, %v3541_v2 }
 0x15c   : > { %v2710_v61 = vpop.f32.mrb[51].mxu1 }
 0x15d   : > { %v1153_v63 = vadd.f32 %v2708_v58, %v992_v47  ;;  %v2711_v49 = vadd.f32 %v2710_v61, %v2709_v46 }
 0x15f   : > { %1231 = vst [vmem:[%s3555_s11 + $0x80] sm:$0xff] %v1153_v63  ;;  %v1156_v1 = vadd.f32 %v2711_v49, %v995_v55  ;;  %2858 = vmatprep.mubr.f32.mxu0 %v1153_v63  ;;  %v1279_v3 = vmul.f32 %v1153_v63, %v1153_v63  ;;  %v1032_v63 = vadd.f32 %v3526_v36, %v3541_v2 }
 0x161   : > { %1232 = vst [vmem:[%s3555_s11 + $0x88] sm:$0xff] %v1156_v1  ;;  %v2712_v62 = vpop.f32.mrb[52].mxu1  ;;  %2859 = vmatmul.mubr.f32.gmra.mrb[64].mxu0 %v1156_v1  ;;  %1327 = vadd.xlane.f32.xlu0 %v1279_v3  ;;  %v1280_v59 = vmul.f32 %v1156_v1, %v1156_v1  ;;  %v1035_v3 = vadd.f32 %v3528_v40, %v3541_v2 }
 0x162   : > { %v2713_v5 = vpop.f32.mrb[53].mxu1 }
 0x163   : > { %v2714_v9 = vadd.f32 %v2713_v5, %v2712_v62  ;;  %v2715_v10 = vpop.f32.mrb[54].mxu1  ;;  %1329 = vadd.xlane.f32.xlu1 %v1280_v59 }
 0x164   : > { %v2716_v11 = vpop.f32.mrb[55].mxu1 }
 0x165   : > { %v1161_v12 = vadd.f32 %v2714_v9, %v1000_v4  ;;  %v2717_v14 = vadd.f32 %v2716_v11, %v2715_v10  ;;  %v1040_v10 = vadd.f32 %v3530_v48, %v3541_v2 }
 0x167   : > { %1233 = vst [vmem:[%s3555_s11 + $0x90] sm:$0xff] %v1161_v12  ;;  %v1164_v6 = vadd.f32 %v2717_v14, %v1003_v57  ;;  %2861 = vmatprep.mubr.f32.mxu0 %v1161_v12  ;;  %v1281_v8 = vmul.f32 %v1161_v12, %v1161_v12  ;;  %v1043_v14 = vadd.f32 %v3532_v52, %v3541_v2 }
 0x169   : > { %1234 = vst [vmem:[%s3555_s11 + $0x98] sm:$0xff] %v1164_v6  ;;  %v2718_v18 = vpop.f32.mrb[56].mxu1  ;;  %2862 = vmatmul.mubr.f32.gmra.mrb[66].mxu0 %v1164_v6  ;;  %1331 = vadd.xlane.f32.xlu0 %v1281_v8  ;;  %v1282_v19 = vmul.f32 %v1164_v6, %v1164_v6 }
 0x16a   : > { %v2719_v16 = vpop.f32.mrb[57].mxu1 }
 0x16b   : > { %v2720_v21 = vadd.f32 %v2719_v16, %v2718_v18  ;;  %v2721_v22 = vpop.f32.mrb[58].mxu1  ;;  %1333 = vadd.xlane.f32.xlu1 %v1282_v19 }
 0x16c   : > { %v2722_v23 = vpop.f32.mrb[59].mxu1 }
 0x16d   : > { %v1169_v26 = vadd.f32 %v2720_v21, %v1008_v7  ;;  %v2723_v13 = vadd.f32 %v2722_v23, %v2721_v22  ;;  %v1051_v23 = vadd.f32 %v3536_v0, %v3541_v2 }
 0x16f   : > { %1235 = vst [vmem:[%s3555_s11 + $0xa0] sm:$0xff] %v1169_v26  ;;  %v1172_v15 = vadd.f32 %v2723_v13, %v1011_v20  ;;  %2864 = vmatprep.mubr.f32.mxu0 %v1169_v26  ;;  %v1283_v30 = vmul.f32 %v1169_v26, %v1169_v26  ;;  %v1048_v20 = vadd.f32 %v3534_v60, %v3541_v2  ;;  %v1390_v60 = vrot.slane %v3515_v17, 4 }
 0x171   : > { %1236 = vst [vmem:[%s3555_s11 + $0xa8] sm:$0xff] %v1172_v15  ;;  %v2724_v31 = vpop.f32.mrb[60].mxu1  ;;  %2865 = vmatmul.mubr.f32.gmra.mrb[68].mxu0 %v1172_v15  ;;  %1335 = vadd.xlane.f32.xlu0 %v1283_v30  ;;  %v1284_v32 = vmul.f32 %v1172_v15, %v1172_v15 }
 0x172   : > { %v2725_v33 = vpop.f32.mrb[61].mxu1 }
 0x173   : > { %v2726_v24 = vadd.f32 %v2725_v33, %v2724_v31  ;;  %v2727_v38 = vpop.f32.mrb[62].mxu1  ;;  %1337 = vadd.xlane.f32.xlu1 %v1284_v32  ;;  %v1391_v31 = vadd.f32 %v1390_v60, %v3515_v17 }
 0x174   : > { %v2728_v39 = vpop.f32.mrb[63].mxu1 }
 0x175   : > { %v1177_v41 = vadd.f32 %v2726_v24, %v1016_v29  ;;  %v2729_v27 = vadd.f32 %v2728_v39, %v2727_v38  ;;  %v1392_v32 = vrot.slane %v1391_v31, 2 }
 0x177   : > { %1237 = vst [vmem:[%s3555_s11 + $0xb0] sm:$0xff] %v1177_v41  ;;  %v1180_v42 = vadd.f32 %v2729_v27, %v1019_v35  ;;  %2867 = vmatprep.mubr.f32.mxu0 %v1177_v41  ;;  %v1285_v43 = vmul.f32 %v1177_v41, %v1177_v41  ;;  %v1393_v33 = vadd.f32 %v1392_v32, %v1391_v31 }
 0x179   : > { %1238 = vst [vmem:[%s3555_s11 + $0xb8] sm:$0xff] %v1180_v42  ;;  %v2730_v44 = vpop.f32.mrb[64].mxu1  ;;  %2868 = vmatmul.mubr.f32.gmra.mrb[70].mxu0 %v1180_v42  ;;  %1339 = vadd.xlane.f32.xlu0 %v1285_v43  ;;  %v1286_v45 = vmul.f32 %v1180_v42, %v1180_v42  ;;  %v1394_v24 = vrot.slane %v1393_v33, 1 }
 0x17a   : > { %v2731_v47 = vpop.f32.mrb[65].mxu1 }
 0x17b   : > { %v2732_v37 = vadd.f32 %v2731_v47, %v2730_v44  ;;  %v2733_v50 = vpop.f32.mrb[66].mxu1  ;;  %1341 = vadd.xlane.f32.xlu1 %v1286_v45  ;;  %v3667_v0 = vadd.f32 %v1394_v24, %v1393_v33 }
 0x17c   : > { %v2734_v51 = vpop.f32.mrb[67].mxu1 }
 0x17d   : > { %v1185_v54 = vadd.f32 %v2732_v37, %v1024_v34  ;;  %v2735_v55 = vadd.f32 %v2734_v51, %v2733_v50 }
 0x17f   : > { %1239 = vst [vmem:[%s3555_s11 + $0xc0] sm:$0xff] %v1185_v54  ;;  %v1188_v58 = vadd.f32 %v2735_v55, %v1027_v53  ;;  %2870 = vmatprep.mubr.f32.mxu0 %v1185_v54  ;;  %v1287_v46 = vmul.f32 %v1185_v54, %v1185_v54 }
 0x181   : > { %1240 = vst [vmem:[%s3555_s11 + $0xc8] sm:$0xff] %v1188_v58  ;;  %v2736_v56 = vpop.f32.mrb[68].mxu1  ;;  %2871 = vmatmul.mubr.f32.gmra.mrb[72].mxu0 %v1188_v58  ;;  %1343 = vadd.xlane.f32.xlu0 %v1287_v46  ;;  %v1288_v25 = vmul.f32 %v1188_v58, %v1188_v58 }
 0x182   : > { %v2737_v61 = vpop.f32.mrb[69].mxu1 }
 0x183   : > { %v2738_v49 = vadd.f32 %v2737_v61, %v2736_v56  ;;  %v2739_v1 = vpop.f32.mrb[70].mxu1  ;;  %1345 = vadd.xlane.f32.xlu1 %v1288_v25 }
 0x184   : > { %v2740_v28 = vpop.f32.mrb[71].mxu1 }
 0x185   : > { %v1193_v4 = vadd.f32 %v2738_v49, %v1032_v63  ;;  %v2741_v62 = vadd.f32 %v2740_v28, %v2739_v1 }
 0x187   : > { %1241 = vst [vmem:[%s3555_s11 + $0xd0] sm:$0xff] %v1193_v4  ;;  %v1196_v59 = vadd.f32 %v2741_v62, %v1035_v3  ;;  %2873 = vmatprep.mubr.f32.mxu0 %v1193_v4  ;;  %v1289_v5 = vmul.f32 %v1193_v4, %v1193_v4 }
 0x189   : > { %1242 = vst [vmem:[%s3555_s11 + $0xd8] sm:$0xff] %v1196_v59  ;;  %v2742_v57 = vpop.f32.mrb[72].mxu1  ;;  %2874 = vmatmul.mubr.f32.gmra.mrb[74].mxu0 %v1196_v59  ;;  %1347 = vadd.xlane.f32.xlu0 %v1289_v5  ;;  %v1290_v36 = vmul.f32 %v1196_v59, %v1196_v59 }
 0x18a   : > { %v2743_v9 = vpop.f32.mrb[73].mxu1 }
 0x18b   : > { %v2744_v11 = vadd.f32 %v2743_v9, %v2742_v57  ;;  %v2745_v12 = vpop.f32.mrb[74].mxu1  ;;  %1349 = vadd.xlane.f32.xlu1 %v1290_v36 }
 0x18c   : > { %v2746_v40 = vpop.f32.mrb[75].mxu1 }
 0x18d   : > { %v1201_v6 = vadd.f32 %v2744_v11, %v1040_v10  ;;  %v2747_v8 = vadd.f32 %v2746_v40, %v2745_v12 }
 0x18f   : > { %1243 = vst [vmem:[%s3555_s11 + $0xe0] sm:$0xff] %v1201_v6  ;;  %v1204_v7 = vadd.f32 %v2747_v8, %v1043_v14  ;;  %2876 = vmatprep.mubr.f32.mxu0 %v1201_v6  ;;  %v1291_v18 = vmul.f32 %v1201_v6, %v1201_v6 }
 0x191   : > { %1244 = vst [vmem:[%s3555_s11 + $0xe8] sm:$0xff] %v1204_v7  ;;  %v2748_v19 = vpop.f32.mrb[76].mxu1  ;;  %2877 = vmatmul.mubr.f32.gmra.mrb[76].mxu0 %v1204_v7  ;;  %1351 = vadd.xlane.f32.xlu0 %v1291_v18  ;;  %v1292_v48 = vmul.f32 %v1204_v7, %v1204_v7 }
 0x192   : > { %v2749_v16 = vpop.f32.mrb[77].mxu1 }
 0x193   : > { %v2750_v21 = vadd.f32 %v2749_v16, %v2748_v19  ;;  %v2751_v22 = vpop.f32.mrb[78].mxu1  ;;  %1353 = vadd.xlane.f32.xlu1 %v1292_v48  ;;  %v2133_v16 = vlaneseq }
 0x194   : > { %v2752_v52 = vpop.f32.mrb[79].mxu1 }
 0x195   : > { %v1209_v26 = vadd.f32 %v2750_v21, %v1048_v20  ;;  %v2753_v13 = vadd.f32 %v2752_v52, %v2751_v22  ;;  %v3683_v31 = vand.u32 127, %v2133_v16 }
 0x197   : > { %1245 = vst [vmem:[%s3555_s11 + $0xf0] sm:$0xff] %v1209_v26  ;;  %v1212_v15 = vadd.f32 %v2753_v13, %v1051_v23  ;;  %2879 = vmatprep.mubr.f32.mxu0 %v1209_v26  ;;  %v1293_v30 = vmul.f32 %v1209_v26, %v1209_v26  ;;  %vm2135_vm0 = vcmp.lt.s32.totalorder %v3683_v31, 4 }
 0x199   : > { %1246 = vst [vmem:[%s3555_s11 + $0xf8] sm:$0xff] %v1212_v15  ;;  %2880 = vmatmul.mubr.f32.gmra.mrb[78].mxu0 %v1212_v15  ;;  %1355 = vadd.xlane.f32.xlu0 %v1293_v30  ;;  %v1294_v29 = vmul.f32 %v1212_v15, %v1212_v15 }
 0x19b   : > { %1357 = vadd.xlane.f32.xlu1 %v1294_v29 }
 0x1ae   : > { %v1296_v35 = vpop.xlane.xlu0 %1295 }
 0x1af   : > { %v1621_v43 = vadd.f32 %v3667_v0, %v1296_v35 }
 0x1b2   : > { %v1298_v2 = vpop.xlane.xlu0 %1297 }
 0x1b3   : > { %v1622_v41 = vadd.f32 %v3667_v0, %v1298_v2 }
 0x1b6   : > { %v1300_v38 = vpop.xlane.xlu1 %1299 }
 0x1b7   : > { %v1623_v56 = vadd.f32 %v3667_v0, %v1300_v38 }
 0x1ba   : > { %v1302_v17 = vpop.xlane.xlu1 %1301 }
 0x1bb   : > { %v1624_v54 = vadd.f32 %v3667_v0, %v1302_v17 }
 0x1be   : > { %v1304_v4 = vpop.xlane.xlu0 %1303 }
 0x1bf   : > { %v1625_v11 = vadd.f32 %v3667_v0, %v1304_v4 }
 0x1c0   : > { %v1306_v28 = vpop.xlane.xlu1 %1305 }
 0x1c1   : > { %v1626_v57 = vadd.f32 %v3667_v0, %v1306_v28 }
 0x1c6   : > { %v1308_v20 = vpop.xlane.xlu0 %1307 }
 0x1c7   : > { %v1627_v30 = vadd.f32 %v3667_v0, %v1308_v20 }
 0x1c8   : > { %v1310_v19 = vpop.xlane.xlu1 %1309 }
 0x1c9   : > { %v1628_v23 = vadd.f32 %v3667_v0, %v1310_v19 }
 0x1ce   : > { %v1312_v33 = vpop.xlane.xlu0 %1311 }
 0x1d0   : > { %v1314_v35 = vpop.xlane.xlu1 %1313 }
 0x1f4   : > { %v2836_v39 = vpop.f32.mrb[48].mxu0 }
 0x1f5   : > { %v1654_v27 = vmul.f32 2.0, %v2836_v39  ;;  %v1462_v42 = vpop.f32.mrb[49].mxu0 }
 0x1f6   : > { %v1653_v44 = vmul.f32 2.0, %v1462_v42  ;;  %v1630_v42 = vadd.f32 %v3667_v0, %v1314_v35 }
 0x1f7   : > { %v1686_v45 = vsub.f32 %v1622_v41, %v1654_v27  ;;  %v1629_v27 = vadd.f32 %v3667_v0, %v1312_v33 }
 0x1f8   : > { %v1685_v47 = vsub.f32 %v1621_v43, %v1653_v44 }
 0x1f9   : > { %v1718_v34 = vmax.f32 %v1686_v45, 0.0 }
 0x1fa   : > { %v1717_v37 = vmax.f32 %v1685_v47, 0.0 }
 0x1fb   : > { %v1750_v50 = vmul.f32 0.5, %v1718_v34 }
 0x1fc   : > { %v1749_v51 = vmul.f32 0.5, %v1717_v37  ;;  %v2839_v53 = vpop.f32.mrb[50].mxu0 }
 0x1fd   : > { %v1782_v55 = vadd.f32 1.0, %v1750_v50  ;;  %v1656_v58 = vmul.f32 2.0, %v2839_v53  ;;  %v1472_v46 = vpop.f32.mrb[51].mxu0 }
 0x1fe   : > { %v1781_v25 = vadd.f32 1.0, %v1749_v51  ;;  %v1655_v61 = vmul.f32 2.0, %v1472_v46 }
 0x1ff   : > { %3066 = vrcp.f32 %v1782_v55  ;;  %v1688_v63 = vsub.f32 %v1624_v54, %v1656_v58  ;;  %v1316_v54 = vpop.xlane.xlu0 %1315 }
 0x200   : > { %3068 = vrcp.f32 %v1781_v25  ;;  %v1687_v49 = vsub.f32 %v1623_v56, %v1655_v61  ;;  %v1318_v56 = vpop.xlane.xlu1 %1317  ;;  %v1631_v4 = vadd.f32 %v3667_v0, %v1316_v54 }
 0x201   : > { %v1720_v1 = vmax.f32 %v1688_v63, 0.0 }
 0x202   : > { %v1719_v3 = vmax.f32 %v1687_v49, 0.0 }
 0x203   : > { %v1752_v62 = vmul.f32 0.5, %v1720_v1  ;;  %v1320_v19 = vpop.xlane.xlu0 %1319 }
 0x204   : > { %v1751_v59 = vmul.f32 0.5, %v1719_v3  ;;  %v2842_v5 = vpop.f32.mrb[52].mxu0 }
 0x205   : > { %v1784_v36 = vadd.f32 1.0, %v1752_v62  ;;  %v1658_v9 = vmul.f32 2.0, %v2842_v5  ;;  %v1482_v10 = vpop.f32.mrb[53].mxu0 }
 0x206   : > { %v1783_v12 = vadd.f32 1.0, %v1751_v59  ;;  %v1657_v40 = vmul.f32 2.0, %v1482_v10 }
 0x207   : > { %3070 = vrcp.f32 %v1784_v36  ;;  %v1690_v14 = vsub.f32 %v1626_v57, %v1658_v9  ;;  %v1632_v36 = vadd.f32 %v3667_v0, %v1318_v56  ;;  %v1324_v35 = vpop.xlane.xlu0 %1323 }
 0x208   : > { %3072 = vrcp.f32 %v1783_v12  ;;  %v1689_v6 = vsub.f32 %v1625_v11, %v1657_v40 }
 0x209   : > { %v3675_v8 = vpop.eup %3066  ;;  %v1722_v7 = vmax.f32 %v1690_v14, 0.0 }
 0x20a   : > { %v3677_v18 = vpop.eup %3068  ;;  %v1721_v48 = vmax.f32 %v1689_v6, 0.0  ;;  %3074 = vrsqrt.f32 %v3675_v8  ;;  %vm1886_vm1 = vcmp.eq.f32.partialorder %v3675_v8, inf  ;;  %vm1888_vm2 = vcmp.eq.f32.partialorder %v3675_v8, 0.0 }
 0x20b   : > { %v1754_v21 = vmul.f32 0.5, %v1722_v7  ;;  %3076 = vrsqrt.f32 %v3677_v18  ;;  %v1889_v34 = vand.u32 2147483648, %v3675_v8  ;;  %vm1879_vm3 = vcmp.eq.f32.partialorder %v3677_v18, inf }
 0x20c   : > { %v1753_v22 = vmul.f32 0.5, %v1721_v48  ;;  %v2845_v52 = vpop.f32.mrb[54].mxu0  ;;  %vm1881_vm4 = vcmp.eq.f32.partialorder %v3677_v18, 0.0  ;;  %v1882_v63 = vand.u32 2147483648, %v3677_v18 }
 0x20d   : > { %v1786_v26 = vadd.f32 1.0, %v1754_v21  ;;  %v1660_v13 = vmul.f32 2.0, %v2845_v52  ;;  %v1492_v15 = vpop.f32.mrb[55].mxu0 }
 0x20e   : > { %v1785_v29 = vadd.f32 1.0, %v1753_v22  ;;  %v1659_v60 = vmul.f32 2.0, %v1492_v15  ;;  %v1322_v22 = vpop.xlane.xlu1 %1321 }
 0x20f   : > { %3078 = vrcp.f32 %v1786_v26  ;;  %v1692_v32 = vsub.f32 %v1628_v23, %v1660_v13 }
 0x210   : > { %3080 = vrcp.f32 %v1785_v29  ;;  %v1691_v24 = vsub.f32 %v1627_v30, %v1659_v60 }
 0x211   : > { %v3685_v2 = vpop.eup %3070  ;;  %v1724_v38 = vmax.f32 %v1692_v32, 0.0 }
 0x212   : > { %v3687_v39 = vpop.eup %3072  ;;  %v1723_v41 = vmax.f32 %v1691_v24, 0.0  ;;  %3082 = vrsqrt.f32 %v3685_v2  ;;  %vm1900_vm5 = vcmp.eq.f32.partialorder %v3685_v2, inf  ;;  %vm1902_vm6 = vcmp.eq.f32.partialorder %v3685_v2, 0.0 }
 0x213   : > { %v1756_v43 = vmul.f32 0.5, %v1724_v38  ;;  %3084 = vrsqrt.f32 %v3687_v39  ;;  %v1903_v7 = vand.u32 2147483648, %v3685_v2  ;;  %vm1893_vm7 = vcmp.eq.f32.partialorder %v3687_v39, inf }
 0x214   : > { %v3075_v44 = vpop.eup %3074  ;;  %v1755_v45 = vmul.f32 0.5, %v1723_v41  ;;  %v2848_v47 = vpop.f32.mrb[56].mxu0  ;;  %vm1895_vm8 = vcmp.eq.f32.partialorder %v3687_v39, 0.0  ;;  %v1896_v30 = vand.u32 2147483648, %v3687_v39 }
 0x215   : > { %v3077_v17 = vpop.eup %3076  ;;  %v1788_v37 = vadd.f32 1.0, %v1756_v43  ;;  %v1662_v50 = vmul.f32 2.0, %v2848_v47  ;;  %v1502_v51 = vpop.f32.mrb[57].mxu0  ;;  %v1885_v53 = vmul.f32 %v3075_v44, %v3675_v8  ;;  %v1634_v47 = vadd.f32 %v3667_v0, %v1322_v22 }
 0x216   : > { %v1787_v55 = vadd.f32 1.0, %v1755_v45  ;;  %v1661_v58 = vmul.f32 2.0, %v1502_v51  ;;  %v1878_v46 = vmul.f32 %v3077_v17, %v3677_v18  ;;  %v1633_v45 = vadd.f32 %v3667_v0, %v1320_v19 }
 0x217   : > { %3086 = vrcp.f32 %v1788_v37  ;;  %v1694_v25 = vsub.f32 %v1630_v42, %v1662_v50  ;;  %v1887_v61 = vsel %vm1886_vm1, %v3675_v8, %v1885_v53  ;;  %v1326_v42 = vpop.xlane.xlu1 %1325 }
 0x218   : > { %3088 = vrcp.f32 %v1787_v55  ;;  %v1693_v49 = vsub.f32 %v1629_v27, %v1661_v58  ;;  %v1890_v1 = vsel %vm1888_vm2, %v1889_v34, %v1887_v61  ;;  %v1880_v28 = vsel %vm1879_vm3, %v3677_v18, %v1878_v46 }
 0x219   : > { %v3708_v3 = vpop.eup %3078  ;;  %v1726_v62 = vmax.f32 %v1694_v25, 0.0  ;;  %v2102_v59 = vmul.f32 %v3675_v8, %v1890_v1  ;;  %v1883_v5 = vsel %vm1881_vm4, %v1882_v63, %v1880_v28  ;;  %v1636_v53 = vadd.f32 %v3667_v0, %v1326_v42 }
 0x21a   : > { %v3712_v57 = vpop.eup %3080  ;;  %v1725_v9 = vmax.f32 %v1693_v49, 0.0  ;;  %v2101_v10 = vmul.f32 %v3677_v18, %v1883_v5  ;;  %3090 = vrsqrt.f32 %v3708_v3  ;;  %vm1914_vm9 = vcmp.eq.f32.partialorder %v3708_v3, inf }
 0x21b   : > { %v1758_v11 = vmul.f32 0.5, %v1726_v62  ;;  %v3719_v12 = vsel %vm2135_vm0, %v2102_v59, 0.0  ;;  %3092 = vrsqrt.f32 %v3712_v57  ;;  %v1917_v63 = vand.u32 2147483648, %v3708_v3 }
 0x21c   : > { %v3083_v40 = vpop.eup %3082  ;;  %v1757_v14 = vmul.f32 0.5, %v1725_v9  ;;  %v2851_v6 = vpop.f32.mrb[58].mxu0  ;;  %2170 = vadd.xlane.f32.xlu1 %v3719_v12  ;;  %v3726_v8 = vsel %vm2135_vm0, %v2101_v10, 0.0  ;;  %vm1916_vm10 = vcmp.eq.f32.partialorder %v3708_v3, 0.0  ;;  %vm1907_vm11 = vcmp.eq.f32.partialorder %v3712_v57, inf }
 0x21d   : > { %v3085_v18 = vpop.eup %3084  ;;  %v1790_v48 = vadd.f32 1.0, %v1758_v11  ;;  %v1664_v16 = vmul.f32 2.0, %v2851_v6  ;;  %v1512_v20 = vpop.f32.mrb[59].mxu0  ;;  %2168 = vadd.xlane.f32.xlu0 %v3726_v8  ;;  %v1899_v21 = vmul.f32 %v3083_v40, %v3685_v2  ;;  %v1910_v9 = vand.u32 2147483648, %v3712_v57 }
 0x21e   : > { %v1789_v52 = vadd.f32 1.0, %v1757_v14  ;;  %v1663_v23 = vmul.f32 2.0, %v1512_v20  ;;  %v1892_v26 = vmul.f32 %v3085_v18, %v3687_v39  ;;  %vm1909_vm12 = vcmp.eq.f32.partialorder %v3712_v57, 0.0 }
 0x21f   : > { %3094 = vrcp.f32 %v1790_v48  ;;  %v1696_v13 = vsub.f32 %v1632_v36, %v1664_v16  ;;  %v1901_v15 = vsel %vm1900_vm5, %v3685_v2, %v1899_v21 }
 0x220   : > { %3096 = vrcp.f32 %v1789_v52  ;;  %v1695_v29 = vsub.f32 %v1631_v4, %v1663_v23  ;;  %v1904_v60 = vsel %vm1902_vm6, %v1903_v7, %v1901_v15  ;;  %v1894_v32 = vsel %vm1893_vm7, %v3687_v39, %v1892_v26 }
 0x221   : > { %v3742_v33 = vpop.eup %3086  ;;  %v1728_v24 = vmax.f32 %v1696_v13, 0.0  ;;  %v2104_v38 = vmul.f32 %v3685_v2, %v1904_v60  ;;  %v1897_v41 = vsel %vm1895_vm8, %v1896_v30, %v1894_v32  ;;  %v3756_v2 = vadd.f32 %v3667_v0, %v1324_v35  ;;  %v1330_v32 = vpop.xlane.xlu1 %1329 }
 0x222   : > { %v3745_v27 = vpop.eup %3088  ;;  %v1727_v43 = vmax.f32 %v1695_v29, 0.0  ;;  %v2103_v44 = vmul.f32 %v3687_v39, %v1897_v41  ;;  %3098 = vrsqrt.f32 %v3742_v33  ;;  %vm1928_vm13 = vcmp.eq.f32.partialorder %v3742_v33, inf }
 0x223   : > { %v1760_v34 = vmul.f32 0.5, %v1728_v24  ;;  %v3753_v17 = vsel %vm2135_vm0, %v2104_v38, 0.0  ;;  %3100 = vrsqrt.f32 %v3745_v27  ;;  %vm1930_vm14 = vcmp.eq.f32.partialorder %v3742_v33, 0.0 }
 0x224   : > { %v3091_v37 = vpop.eup %3090  ;;  %v1759_v50 = vmul.f32 0.5, %v1727_v43  ;;  %v2854_v51 = vpop.f32.mrb[60].mxu0  ;;  %2174 = vadd.xlane.f32.xlu1 %v3753_v17  ;;  %v3761_v39 = vsel %vm2135_vm0, %v2103_v44, 0.0  ;;  %v1931_v52 = vand.u32 2147483648, %v3742_v33  ;;  %vm1921_vm15 = vcmp.eq.f32.partialorder %v3745_v27, inf }
 0x225   : > { %v1792_v54 = vadd.f32 1.0, %v1760_v34  ;;  %v1666_v55 = vmul.f32 2.0, %v2854_v51  ;;  %v1522_v58 = vpop.f32.mrb[61].mxu0  ;;  %2172 = vadd.xlane.f32.xlu0 %v3761_v39  ;;  %v1913_v46 = vmul.f32 %v3091_v37, %v3708_v3  ;;  %v3093_v56 = vpop.eup %3092  ;;  %v1924_v38 = vand.u32 2147483648, %v3745_v27 }
 0x226   : > { %v1791_v25 = vadd.f32 1.0, %v1759_v50  ;;  %v1665_v61 = vmul.f32 2.0, %v1522_v58  ;;  %v1906_v62 = vmul.f32 %v3093_v56, %v3712_v57  ;;  %vm1923_vm1 = vcmp.eq.f32.partialorder %v3745_v27, 0.0 }
 0x227   : > { %3102 = vrcp.f32 %v1792_v54  ;;  %v1698_v49 = vsub.f32 %v1634_v47, %v1666_v55  ;;  %v1915_v1 = vsel %vm1914_vm9, %v3708_v3, %v1913_v46 }
 0x228   : > { %3104 = vrcp.f32 %v1791_v25  ;;  %v1697_v28 = vsub.f32 %v1633_v45, %v1665_v61  ;;  %v1918_v4 = vsel %vm1916_vm10, %v1917_v63, %v1915_v1  ;;  %v1908_v40 = vsel %vm1907_vm11, %v3712_v57, %v1906_v62 }
 0x229   : > { %v3772_v59 = vpop.eup %3094  ;;  %v1730_v5 = vmax.f32 %v1698_v49, 0.0  ;;  %v2106_v36 = vmul.f32 %v3708_v3, %v1918_v4  ;;  %v1911_v7 = vsel %vm1909_vm12, %v1910_v9, %v1908_v40 }
 0x22a   : > { %v3777_v10 = vpop.eup %3096  ;;  %v1729_v11 = vmax.f32 %v1697_v28, 0.0  ;;  %3106 = vrsqrt.f32 %v3772_v59  ;;  %v2105_v48 = vmul.f32 %v3712_v57, %v1911_v7  ;;  %v1328_v57 = vpop.xlane.xlu0 %1327  ;;  %vm1942_vm2 = vcmp.eq.f32.partialorder %v3772_v59, inf }
 0x22b   : > { %v1762_v14 = vmul.f32 0.5, %v1730_v5  ;;  %v3784_v6 = vsel %vm2135_vm0, %v2106_v36, 0.0  ;;  %3108 = vrsqrt.f32 %v3777_v10  ;;  %v1637_v47 = vadd.f32 %v3667_v0, %v1328_v57  ;;  %v1334_v36 = vpop.xlane.xlu1 %1333 }
 0x22c   : > { %v3099_v3 = vpop.eup %3098  ;;  %v1761_v18 = vmul.f32 0.5, %v1729_v11  ;;  %v2857_v19 = vpop.f32.mrb[62].mxu0  ;;  %2178 = vadd.xlane.f32.xlu1 %v3784_v6  ;;  %v3795_v15 = vsel %vm2135_vm0, %v2105_v48, 0.0  ;;  %vm1944_vm3 = vcmp.eq.f32.partialorder %v3772_v59, 0.0  ;;  %v1945_v1 = vand.u32 2147483648, %v3772_v59 }
 0x22d   : > { %v1794_v16 = vadd.f32 1.0, %v1762_v14  ;;  %v1668_v20 = vmul.f32 2.0, %v2857_v19  ;;  %v1532_v21 = vpop.f32.mrb[63].mxu0  ;;  %v1927_v22 = vmul.f32 %v3099_v3, %v3742_v33  ;;  %v3101_v23 = vpop.eup %3100  ;;  %2176 = vadd.xlane.f32.xlu0 %v3795_v15  ;;  %vm1935_vm4 = vcmp.eq.f32.partialorder %v3777_v10, inf }
 0x22e   : > { %v1793_v26 = vadd.f32 1.0, %v1761_v18  ;;  %v1667_v13 = vmul.f32 2.0, %v1532_v21  ;;  %v1920_v60 = vmul.f32 %v3101_v23, %v3745_v27  ;;  %v1332_v28 = vpop.xlane.xlu0 %1331  ;;  %v1938_v40 = vand.u32 2147483648, %v3777_v10 }
 0x22f   : > { %3110 = vrcp.f32 %v1794_v16  ;;  %v1700_v30 = vsub.f32 %v1636_v53, %v1668_v20  ;;  %v1929_v29 = vsel %vm1928_vm13, %v3742_v33, %v1927_v22  ;;  %vm1937_vm5 = vcmp.eq.f32.partialorder %v3777_v10, 0.0 }
 0x230   : > { %3112 = vrcp.f32 %v1793_v26  ;;  %v1699_v35 = vsub.f32 %v3756_v2, %v1667_v13  ;;  %v1932_v24 = vsel %vm1930_vm14, %v1931_v52, %v1929_v29  ;;  %v1922_v44 = vsel %vm1921_vm15, %v3745_v27, %v1920_v60 }
 0x231   : > { %v3807_v41 = vpop.eup %3102  ;;  %v1732_v42 = vmax.f32 %v1700_v30, 0.0  ;;  %v2108_v43 = vmul.f32 %v3742_v33, %v1932_v24  ;;  %v1925_v37 = vsel %vm1923_vm1, %v1924_v38, %v1922_v44  ;;  %v1638_v2 = vadd.f32 %v3667_v0, %v1330_v32 }
 0x232   : > { %v3812_v45 = vpop.eup %3104  ;;  %v1731_v34 = vmax.f32 %v1699_v35, 0.0  ;;  %3114 = vrsqrt.f32 %v3807_v41  ;;  %v2107_v33 = vmul.f32 %v3745_v27, %v1925_v37  ;;  %v1639_v48 = vadd.f32 %v3667_v0, %v1332_v28 }
 0x233   : > { %v1764_v50 = vmul.f32 0.5, %v1732_v42  ;;  %v3819_v51 = vsel %vm2135_vm0, %v2108_v43, 0.0  ;;  %3116 = vrsqrt.f32 %v3812_v45  ;;  %v1640_v21 = vadd.f32 %v3667_v0, %v1334_v36  ;;  %v1336_v42 = vpop.xlane.xlu0 %1335 }
 0x234   : > { %v3107_v53 = vpop.eup %3106  ;;  %v1763_v54 = vmul.f32 0.5, %v1731_v34  ;;  %v2860_v55 = vpop.f32.mrb[64].mxu0  ;;  %2182 = vadd.xlane.f32.xlu1 %v3819_v51  ;;  %v3828_v25 = vsel %vm2135_vm0, %v2107_v33, 0.0  ;;  %vm1956_vm6 = vcmp.eq.f32.partialorder %v3807_v41, inf  ;;  %vm1958_vm7 = vcmp.eq.f32.partialorder %v3807_v41, 0.0 }
 0x235   : > { %v1796_v58 = vadd.f32 1.0, %v1764_v50  ;;  %v1670_v46 = vmul.f32 2.0, %v2860_v55  ;;  %v1542_v56 = vpop.f32.mrb[65].mxu0  ;;  %v1941_v27 = vmul.f32 %v3107_v53, %v3772_v59  ;;  %v3109_v61 = vpop.eup %3108  ;;  %2180 = vadd.xlane.f32.xlu0 %v3828_v25  ;;  %v1959_v38 = vand.u32 2147483648, %v3807_v41 }
 0x236   : > { %v1795_v63 = vadd.f32 1.0, %v1763_v54  ;;  %v1669_v49 = vmul.f32 2.0, %v1542_v56  ;;  %v1934_v5 = vmul.f32 %v3109_v61, %v3777_v10  ;;  %vm1949_vm8 = vcmp.eq.f32.partialorder %v3812_v45, inf  ;;  %v1338_v34 = vpop.xlane.xlu1 %1337 }
 0x237   : > { %3118 = vrcp.f32 %v1796_v58  ;;  %v1702_v4 = vsub.f32 %v1638_v2, %v1670_v46  ;;  %v1943_v62 = vsel %vm1942_vm2, %v3772_v59, %v1941_v27  ;;  %v1952_v50 = vand.u32 2147483648, %v3812_v45 }
 0x238   : > { %3120 = vrcp.f32 %v1795_v63  ;;  %v1701_v9 = vsub.f32 %v1637_v47, %v1669_v49  ;;  %v1946_v11 = vsel %vm1944_vm3, %v1945_v1, %v1943_v62  ;;  %v1936_v18 = vsel %vm1935_vm4, %v3777_v10, %v1934_v5 }
 0x239   : > { %v3841_v14 = vpop.eup %3110  ;;  %v1734_v7 = vmax.f32 %v1702_v4, 0.0  ;;  %v2110_v3 = vmul.f32 %v3772_v59, %v1946_v11  ;;  %v1939_v20 = vsel %vm1937_vm5, %v1938_v40, %v1936_v18  ;;  %vm1951_vm9 = vcmp.eq.f32.partialorder %v3812_v45, 0.0  ;;  %v1340_v18 = vpop.xlane.xlu0 %1339 }
 0x23a   : > { %v3846_v19 = vpop.eup %3112  ;;  %v1733_v16 = vmax.f32 %v1701_v9, 0.0  ;;  %3122 = vrsqrt.f32 %v3841_v14  ;;  %v2109_v59 = vmul.f32 %v3777_v10, %v1939_v20  ;;  %v1641_v46 = vadd.f32 %v3667_v0, %v1336_v42 }
 0x23b   : > { %v1766_v22 = vmul.f32 0.5, %v1734_v7  ;;  %v3853_v52 = vsel %vm2135_vm0, %v2110_v3, 0.0  ;;  %3124 = vrsqrt.f32 %v3846_v19  ;;  %v1642_v61 = vadd.f32 %v3667_v0, %v1338_v34 }
 0x23c   : > { %v3115_v23 = vpop.eup %3114  ;;  %v1765_v26 = vmul.f32 0.5, %v1733_v16  ;;  %v2863_v13 = vpop.f32.mrb[66].mxu0  ;;  %2186 = vadd.xlane.f32.xlu1 %v3853_v52  ;;  %v3862_v60 = vsel %vm2135_vm0, %v2109_v59, 0.0  ;;  %vm1970_vm10 = vcmp.eq.f32.partialorder %v3841_v14, inf  ;;  %vm1972_vm11 = vcmp.eq.f32.partialorder %v3841_v14, 0.0 }
 0x23d   : > { %v1798_v57 = vadd.f32 1.0, %v1766_v22  ;;  %v1672_v30 = vmul.f32 2.0, %v2863_v13  ;;  %v1552_v29 = vpop.f32.mrb[67].mxu0  ;;  %v1955_v10 = vmul.f32 %v3115_v23, %v3807_v41  ;;  %v3117_v32 = vpop.eup %3116  ;;  %2184 = vadd.xlane.f32.xlu0 %v3862_v60  ;;  %v1973_v3 = vand.u32 2147483648, %v3841_v14 }
 0x23e   : > { %v1797_v35 = vadd.f32 1.0, %v1765_v26  ;;  %v1671_v24 = vmul.f32 2.0, %v1552_v29  ;;  %v1948_v47 = vmul.f32 %v3117_v32, %v3812_v45  ;;  %vm1963_vm12 = vcmp.eq.f32.partialorder %v3846_v19, inf }
 0x23f   : > { %3126 = vrcp.f32 %v1798_v57  ;;  %v1704_v43 = vsub.f32 %v1640_v21, %v1672_v30  ;;  %v1957_v44 = vsel %vm1956_vm6, %v3807_v41, %v1955_v10  ;;  %v1342_v21 = vpop.xlane.xlu1 %1341  ;;  %v1966_v23 = vand.u32 2147483648, %v3846_v19 }
 0x240   : > { %3128 = vrcp.f32 %v1797_v35  ;;  %v1703_v37 = vsub.f32 %v1639_v48, %v1671_v24  ;;  %v1960_v2 = vsel %vm1958_vm7, %v1959_v38, %v1957_v44  ;;  %v1950_v55 = vsel %vm1949_vm8, %v3812_v45, %v1948_v47 }
 0x241   : > { %v3875_v33 = vpop.eup %3118  ;;  %v1736_v53 = vmax.f32 %v1704_v43, 0.0  ;;  %v2112_v54 = vmul.f32 %v3807_v41, %v1960_v2  ;;  %v1953_v27 = vsel %vm1951_vm9, %v1952_v50, %v1950_v55  ;;  %vm1965_vm13 = vcmp.eq.f32.partialorder %v3846_v19, 0.0 }
 0x242   : > { %v3880_v58 = vpop.eup %3120  ;;  %v1735_v56 = vmax.f32 %v1703_v37, 0.0  ;;  %3130 = vrsqrt.f32 %v3875_v33  ;;  %v2111_v41 = vmul.f32 %v3812_v45, %v1953_v27  ;;  %v1643_v10 = vadd.f32 %v3667_v0, %v1340_v18 }
 0x243   : > { %v1768_v63 = vmul.f32 0.5, %v1736_v53  ;;  %v3887_v49 = vsel %vm2135_vm0, %v2112_v54, 0.0  ;;  %3132 = vrsqrt.f32 %v3880_v58  ;;  %v1644_v24 = vadd.f32 %v3667_v0, %v1342_v21 }
 0x244   : > { %v3123_v1 = vpop.eup %3122  ;;  %v1767_v28 = vmul.f32 0.5, %v1735_v56  ;;  %v2866_v4 = vpop.f32.mrb[68].mxu0  ;;  %2190 = vadd.xlane.f32.xlu1 %v3887_v49  ;;  %v3896_v9 = vsel %vm2135_vm0, %v2111_v41, 0.0  ;;  %vm1984_vm14 = vcmp.eq.f32.partialorder %v3875_v33, inf  ;;  %vm1986_vm15 = vcmp.eq.f32.partialorder %v3875_v33, 0.0 }
 0x245   : > { %v1800_v62 = vadd.f32 1.0, %v1768_v63  ;;  %v1674_v5 = vmul.f32 2.0, %v2866_v4  ;;  %v1562_v36 = vpop.f32.mrb[69].mxu0  ;;  %v1969_v45 = vmul.f32 %v3123_v1, %v3841_v14  ;;  %v3125_v11 = vpop.eup %3124  ;;  %2188 = vadd.xlane.f32.xlu0 %v3896_v9  ;;  %vm1977_vm1 = vcmp.eq.f32.partialorder %v3880_v58, inf }
 0x246   : > { %v1799_v40 = vadd.f32 1.0, %v1767_v28  ;;  %v1673_v7 = vmul.f32 2.0, %v1562_v36  ;;  %v1962_v20 = vmul.f32 %v3125_v11, %v3846_v19  ;;  %v1344_v56 = vpop.xlane.xlu0 %1343  ;;  %v1346_v41 = vpop.xlane.xlu1 %1345  ;;  %v1980_v4 = vand.u32 2147483648, %v3880_v58 }
 0x247   : > { %3134 = vrcp.f32 %v1800_v62  ;;  %v1706_v48 = vsub.f32 %v1642_v61, %v1674_v5  ;;  %v1971_v16 = vsel %vm1970_vm10, %v3841_v14, %v1969_v45  ;;  %vm1979_vm2 = vcmp.eq.f32.partialorder %v3880_v58, 0.0 }
 0x248   : > { %3136 = vrcp.f32 %v1799_v40  ;;  %v1705_v22 = vsub.f32 %v1641_v46, %v1673_v7  ;;  %v1974_v59 = vsel %vm1972_vm11, %v1973_v3, %v1971_v16  ;;  %v1964_v30 = vsel %vm1963_vm12, %v3846_v19, %v1962_v20 }
 0x249   : > { %v3909_v26 = vpop.eup %3126  ;;  %v1738_v13 = vmax.f32 %v1706_v48, 0.0  ;;  %v2114_v57 = vmul.f32 %v3841_v14, %v1974_v59  ;;  %v1967_v35 = vsel %vm1965_vm13, %v1966_v23, %v1964_v30  ;;  %v1987_v46 = vand.u32 2147483648, %v3875_v33 }
 0x24a   : > { %v3914_v29 = vpop.eup %3128  ;;  %v1737_v32 = vmax.f32 %v1705_v22, 0.0  ;;  %3138 = vrsqrt.f32 %v3909_v26  ;;  %v2113_v14 = vmul.f32 %v3846_v19, %v1967_v35  ;;  %v1645_v40 = vadd.f32 %v3667_v0, %v1344_v56 }
 0x24b   : > { %v1770_v38 = vmul.f32 0.5, %v1738_v13  ;;  %v3921_v42 = vsel %vm2135_vm0, %v2114_v57, 0.0  ;;  %3140 = vrsqrt.f32 %v3914_v29  ;;  %v1646_v18 = vadd.f32 %v3667_v0, %v1346_v41 }
 0x24c   : > { %v3131_v43 = vpop.eup %3130  ;;  %v1769_v44 = vmul.f32 0.5, %v1737_v32  ;;  %v2869_v47 = vpop.f32.mrb[70].mxu0  ;;  %2194 = vadd.xlane.f32.xlu1 %v3921_v42  ;;  %v3930_v50 = vsel %vm2135_vm0, %v2113_v14, 0.0  ;;  %vm1998_vm3 = vcmp.eq.f32.partialorder %v3909_v26, inf  ;;  %vm2000_vm4 = vcmp.eq.f32.partialorder %v3909_v26, 0.0 }
 0x24d   : > { %v1802_v34 = vadd.f32 1.0, %v1770_v38  ;;  %v1676_v37 = vmul.f32 2.0, %v2869_v47  ;;  %v1572_v2 = vpop.f32.mrb[71].mxu0  ;;  %v1983_v19 = vmul.f32 %v3131_v43, %v3875_v33  ;;  %v3133_v53 = vpop.eup %3132  ;;  %2192 = vadd.xlane.f32.xlu0 %v3930_v50  ;;  %v2001_v35 = vand.u32 2147483648, %v3909_v26 }
 0x24e   : > { %v1801_v54 = vadd.f32 1.0, %v1769_v44  ;;  %v1675_v55 = vmul.f32 2.0, %v1572_v2  ;;  %v1976_v63 = vmul.f32 %v3133_v53, %v3880_v58  ;;  %vm1991_vm5 = vcmp.eq.f32.partialorder %v3914_v29, inf  ;;  %v1350_v44 = vpop.xlane.xlu1 %1349 }
 0x24f   : > { %3142 = vrcp.f32 %v1802_v34  ;;  %v1708_v27 = vsub.f32 %v1644_v24, %v1676_v37  ;;  %v1985_v61 = vsel %vm1984_vm14, %v3875_v33, %v1983_v19  ;;  %v1348_v24 = vpop.xlane.xlu0 %1347  ;;  %v1994_v37 = vand.u32 2147483648, %v3914_v29 }
 0x250   : > { %3144 = vrcp.f32 %v1801_v54  ;;  %v1707_v1 = vsub.f32 %v1643_v10, %v1675_v55  ;;  %v1988_v28 = vsel %vm1986_vm15, %v1987_v46, %v1985_v61  ;;  %v1978_v45 = vsel %vm1977_vm1, %v3880_v58, %v1976_v63 }
 0x251   : > { %v3943_v62 = vpop.eup %3134  ;;  %v1740_v5 = vmax.f32 %v1708_v27, 0.0  ;;  %v2116_v36 = vmul.f32 %v3875_v33, %v1988_v28  ;;  %v1981_v3 = vsel %vm1979_vm2, %v1980_v4, %v1978_v45  ;;  %vm1993_vm6 = vcmp.eq.f32.partialorder %v3914_v29, 0.0 }
 0x252   : > { %v3948_v11 = vpop.eup %3136  ;;  %v1739_v7 = vmax.f32 %v1707_v1, 0.0  ;;  %3146 = vrsqrt.f32 %v3943_v62  ;;  %v2115_v33 = vmul.f32 %v3880_v58, %v1981_v3  ;;  %v1647_v46 = vadd.f32 %v3667_v0, %v1348_v24 }
 0x253   : > { %v1772_v48 = vmul.f32 0.5, %v1740_v5  ;;  %v3955_v16 = vsel %vm2135_vm0, %v2116_v36, 0.0  ;;  %3148 = vrsqrt.f32 %v3948_v11  ;;  %v1648_v61 = vadd.f32 %v3667_v0, %v1350_v44 }
 0x254   : > { %v3139_v20 = vpop.eup %3138  ;;  %v1771_v21 = vmul.f32 0.5, %v1739_v7  ;;  %v2872_v22 = vpop.f32.mrb[72].mxu0  ;;  %2198 = vadd.xlane.f32.xlu1 %v3955_v16  ;;  %v3964_v57 = vsel %vm2135_vm0, %v2115_v33, 0.0  ;;  %vm2012_vm7 = vcmp.eq.f32.partialorder %v3943_v62, inf  ;;  %vm2014_vm8 = vcmp.eq.f32.partialorder %v3943_v62, 0.0 }
 0x255   : > { %v1804_v59 = vadd.f32 1.0, %v1772_v48  ;;  %v1678_v23 = vmul.f32 2.0, %v2872_v22  ;;  %v1582_v13 = vpop.f32.mrb[73].mxu0  ;;  %v1997_v58 = vmul.f32 %v3139_v20, %v3909_v26  ;;  %v3141_v30 = vpop.eup %3140  ;;  %2196 = vadd.xlane.f32.xlu0 %v3964_v57  ;;  %v2015_v48 = vand.u32 2147483648, %v3943_v62 }
 0x256   : > { %v1803_v10 = vadd.f32 1.0, %v1771_v21  ;;  %v1677_v32 = vmul.f32 2.0, %v1582_v13  ;;  %v1990_v43 = vmul.f32 %v3141_v30, %v3914_v29  ;;  %vm2005_vm9 = vcmp.eq.f32.partialorder %v3948_v11, inf  ;;  %v1352_v33 = vpop.xlane.xlu0 %1351 }
 0x257   : > { %3150 = vrcp.f32 %v1804_v59  ;;  %v1710_v38 = vsub.f32 %v1646_v18, %v1678_v23  ;;  %v1999_v14 = vsel %vm1998_vm3, %v3909_v26, %v1997_v58  ;;  %v1354_v59 = vpop.xlane.xlu1 %1353  ;;  %v2008_v58 = vand.u32 2147483648, %v3948_v11 }
 0x258   : > { %3152 = vrcp.f32 %v1803_v10  ;;  %v1709_v47 = vsub.f32 %v1645_v40, %v1677_v32  ;;  %v2002_v34 = vsel %vm2000_vm4, %v2001_v35, %v1999_v14  ;;  %v1992_v54 = vsel %vm1991_vm5, %v3914_v29, %v1990_v43 }
 0x259   : > { %v3977_v2 = vpop.eup %3142  ;;  %v1742_v19 = vmax.f32 %v1710_v38, 0.0  ;;  %v2118_v53 = vmul.f32 %v3909_v26, %v2002_v34  ;;  %v1995_v27 = vsel %vm1993_vm6, %v1994_v37, %v1992_v54  ;;  %vm2007_vm10 = vcmp.eq.f32.partialorder %v3948_v11, 0.0 }
 0x25a   : > { %v3982_v55 = vpop.eup %3144  ;;  %v1741_v56 = vmax.f32 %v1709_v47, 0.0  ;;  %3154 = vrsqrt.f32 %v3977_v2  ;;  %v2117_v26 = vmul.f32 %v3914_v29, %v1995_v27  ;;  %v1649_v38 = vadd.f32 %v3667_v0, %v1352_v33 }
 0x25b   : > { %v1774_v63 = vmul.f32 0.5, %v1742_v19  ;;  %v3989_v41 = vsel %vm2135_vm0, %v2118_v53, 0.0  ;;  %3156 = vrsqrt.f32 %v3982_v55  ;;  %v1650_v44 = vadd.f32 %v3667_v0, %v1354_v59 }
 0x25c   : > { %v3147_v1 = vpop.eup %3146  ;;  %v1773_v28 = vmul.f32 0.5, %v1741_v56  ;;  %v2875_v4 = vpop.f32.mrb[74].mxu0  ;;  %2202 = vadd.xlane.f32.xlu1 %v3989_v41  ;;  %v3998_v40 = vsel %vm2135_vm0, %v2117_v26, 0.0  ;;  %vm2026_vm11 = vcmp.eq.f32.partialorder %v3977_v2, inf  ;;  %vm2028_vm12 = vcmp.eq.f32.partialorder %v3977_v2, 0.0 }
 0x25d   : > { %v1806_v5 = vadd.f32 1.0, %v1774_v63  ;;  %v1680_v36 = vmul.f32 2.0, %v2875_v4  ;;  %v1592_v45 = vpop.f32.mrb[75].mxu0  ;;  %v2011_v29 = vmul.f32 %v3147_v1, %v3943_v62  ;;  %v3149_v7 = vpop.eup %3148  ;;  %2200 = vadd.xlane.f32.xlu0 %v3998_v40  ;;  %v2029_v1 = vand.u32 2147483648, %v3977_v2 }
 0x25e   : > { %v1805_v3 = vadd.f32 1.0, %v1773_v28  ;;  %v1679_v18 = vmul.f32 2.0, %v1592_v45  ;;  %v2004_v22 = vmul.f32 %v3149_v7, %v3948_v11  ;;  %vm2019_vm13 = vcmp.eq.f32.partialorder %v3982_v55, inf  ;;  %v1356_v28 = vpop.xlane.xlu0 %1355  ;;  %v1358_v45 = vpop.xlane.xlu1 %1357 }
 0x25f   : > { %3158 = vrcp.f32 %v1806_v5  ;;  %v1712_v20 = vsub.f32 %v1648_v61, %v1680_v36  ;;  %v2013_v21 = vsel %vm2012_vm7, %v3943_v62, %v2011_v29  ;;  %vm2021_vm14 = vcmp.eq.f32.partialorder %v3982_v55, 0.0 }
 0x260   : > { %3160 = vrcp.f32 %v1805_v3  ;;  %v1711_v23 = vsub.f32 %v1647_v46, %v1679_v18  ;;  %v2016_v13 = vsel %vm2014_vm8, %v2015_v48, %v2013_v21  ;;  %v2006_v35 = vsel %vm2005_vm9, %v3948_v11, %v2004_v22 }
 0x261   : > { %v4011_v30 = vpop.eup %3150  ;;  %v1744_v10 = vmax.f32 %v1712_v20, 0.0  ;;  %v2120_v32 = vmul.f32 %v3943_v62, %v2016_v13  ;;  %v2009_v43 = vsel %vm2007_vm10, %v2008_v58, %v2006_v35  ;;  %v2022_v3 = vand.u32 2147483648, %v3982_v55 }
 0x262   : > { %v4016_v24 = vpop.eup %3152  ;;  %v1743_v14 = vmax.f32 %v1711_v23, 0.0  ;;  %3162 = vrsqrt.f32 %v4011_v30  ;;  %v2119_v62 = vmul.f32 %v3948_v11, %v2009_v43  ;;  %v1651_v22 = vadd.f32 %v3667_v0, %v1356_v28 }
 0x263   : > { %v1776_v47 = vmul.f32 0.5, %v1744_v10  ;;  %v4023_v34 = vsel %vm2135_vm0, %v2120_v32, 0.0  ;;  %3164 = vrsqrt.f32 %v4016_v24  ;;  %v1652_v13 = vadd.f32 %v3667_v0, %v1358_v45 }
 0x264   : > { %v3155_v37 = vpop.eup %3154  ;;  %v1775_v19 = vmul.f32 0.5, %v1743_v14  ;;  %v2878_v53 = vpop.f32.mrb[76].mxu0  ;;  %2206 = vadd.xlane.f32.xlu1 %v4023_v34  ;;  %v4032_v27 = vsel %vm2135_vm0, %v2119_v62, 0.0  ;;  %vm2040_vm15 = vcmp.eq.f32.partialorder %v4011_v30, inf  ;;  %vm2042_vm1 = vcmp.eq.f32.partialorder %v4011_v30, 0.0 }
 0x265   : > { %v1808_v54 = vadd.f32 1.0, %v1776_v47  ;;  %v1682_v46 = vmul.f32 2.0, %v2878_v53  ;;  %v1602_v56 = vpop.f32.mrb[77].mxu0  ;;  %v2025_v11 = vmul.f32 %v3155_v37, %v3977_v2  ;;  %v3157_v61 = vpop.eup %3156  ;;  %2204 = vadd.xlane.f32.xlu0 %v4032_v27  ;;  %vm2033_vm2 = vcmp.eq.f32.partialorder %v4016_v24, inf }
 0x266   : > { %v1807_v63 = vadd.f32 1.0, %v1775_v19  ;;  %v1681_v26 = vmul.f32 2.0, %v1602_v56  ;;  %v2018_v36 = vmul.f32 %v3157_v61, %v3982_v55  ;;  %v2043_v19 = vand.u32 2147483648, %v4011_v30 }
 0x267   : > { %3166 = vrcp.f32 %v1808_v54  ;;  %v1714_v4 = vsub.f32 %v1650_v44, %v1682_v46  ;;  %v2027_v5 = vsel %vm2026_vm11, %v3977_v2, %v2025_v11  ;;  %v2036_v61 = vand.u32 2147483648, %v4016_v24 }
 0x268   : > { %3168 = vrcp.f32 %v1807_v63  ;;  %v1713_v29 = vsub.f32 %v1649_v38, %v1681_v26  ;;  %v2030_v7 = vsel %vm2028_vm12, %v2029_v1, %v2027_v5  ;;  %v2020_v20 = vsel %vm2019_vm13, %v3982_v55, %v2018_v36 }
 0x269   : > { %v4045_v18 = vpop.eup %3158  ;;  %v1746_v48 = vmax.f32 %v1714_v4, 0.0  ;;  %v2122_v33 = vmul.f32 %v3977_v2, %v2030_v7  ;;  %v2023_v23 = vsel %vm2021_vm14, %v2022_v3, %v2020_v20  ;;  %vm2035_vm3 = vcmp.eq.f32.partialorder %v4016_v24, 0.0 }
 0x26a   : > { %v4050_v21 = vpop.eup %3160  ;;  %v1745_v59 = vmax.f32 %v1713_v29, 0.0  ;;  %3170 = vrsqrt.f32 %v4045_v18  ;;  %v2121_v2 = vmul.f32 %v3982_v55, %v2023_v23  ;;  %vm2054_vm4 = vcmp.eq.f32.partialorder %v4045_v18, inf }
 0x26b   : > { %v1778_v58 = vmul.f32 0.5, %v1746_v48  ;;  %v4057_v10 = vsel %vm2135_vm0, %v2122_v33, 0.0  ;;  %3172 = vrsqrt.f32 %v4050_v21  ;;  %vm2056_vm5 = vcmp.eq.f32.partialorder %v4045_v18, 0.0 }
 0x26c   : > { %v3163_v32 = vpop.eup %3162  ;;  %v1777_v35 = vmul.f32 0.5, %v1745_v59  ;;  %v2881_v38 = vpop.f32.mrb[78].mxu0  ;;  %2210 = vadd.xlane.f32.xlu1 %v4057_v10  ;;  %v4066_v44 = vsel %vm2135_vm0, %v2121_v2, 0.0  ;;  %vm2047_vm6 = vcmp.eq.f32.partialorder %v4050_v21, inf  ;;  %v2050_v2 = vand.u32 2147483648, %v4050_v21 }
 0x26d   : > { %v1810_v14 = vadd.f32 1.0, %v1778_v58  ;;  %v1684_v0 = vmul.f32 2.0, %v2881_v38  ;;  %v1612_v43 = vpop.f32.mrb[79].mxu0  ;;  %v2039_v55 = vmul.f32 %v3163_v32, %v4011_v30  ;;  %v3165_v47 = vpop.eup %3164  ;;  %2208 = vadd.xlane.f32.xlu0 %v4066_v44  ;;  %vm2049_vm7 = vcmp.eq.f32.partialorder %v4050_v21, 0.0 }
 0x26e   : > { %v1809_v62 = vadd.f32 1.0, %v1777_v35  ;;  %v1683_v37 = vmul.f32 2.0, %v1612_v43  ;;  %v2032_v46 = vmul.f32 %v3165_v47, %v4016_v24 }
 0x26f   : > { %3174 = vrcp.f32 %v1810_v14  ;;  %v1716_v53 = vsub.f32 %v1652_v13, %v1684_v0  ;;  %v2041_v54 = vsel %vm2040_vm15, %v4011_v30, %v2039_v55 }
 0x270   : > { %3176 = vrcp.f32 %v1809_v62  ;;  %v1715_v56 = vsub.f32 %v1651_v22, %v1683_v37  ;;  %v2044_v11 = vsel %vm2042_vm1, %v2043_v19, %v2041_v54  ;;  %v2034_v28 = vsel %vm2033_vm2, %v4016_v24, %v2032_v46 }
 0x271   : > { %v3167_v63 = vpop.eup %3166  ;;  %v1748_v26 = vmax.f32 %v1716_v53, 0.0  ;;  %v2124_v1 = vmul.f32 %v4011_v30, %v2044_v11  ;;  %v2037_v36 = vsel %vm2035_vm3, %v2036_v61, %v2034_v28 }
 0x272   : > { %v3169_v4 = vpop.eup %3168  ;;  %v1747_v5 = vmax.f32 %v1715_v56, 0.0  ;;  %3178 = vrsqrt.f32 %v3167_v63  ;;  %v2123_v7 = vmul.f32 %v4016_v24, %v2037_v36  ;;  %v2057_v24 = vand.u32 2147483648, %v4045_v18 }
 0x273   : > { %v1780_v45 = vmul.f32 0.5, %v1748_v26  ;;  %v4084_v29 = vsel %vm2135_vm0, %v2124_v1, 0.0  ;;  %3180 = vrsqrt.f32 %v3169_v4  ;;  %vm2068_vm8 = vcmp.eq.f32.partialorder %v3167_v63, inf }
 0x274   : > { %v3171_v3 = vpop.eup %3170  ;;  %v1779_v48 = vmul.f32 0.5, %v1747_v5  ;;  %2214 = vadd.xlane.f32.xlu1 %v4084_v29  ;;  %v4090_v33 = vsel %vm2135_vm0, %v2123_v7, 0.0  ;;  %v2071_v19 = vand.u32 2147483648, %v3167_v63  ;;  %vm2070_vm9 = vcmp.eq.f32.partialorder %v3167_v63, 0.0 }
 0x275   : > { %v1812_v30 = vadd.f32 1.0, %v1780_v45  ;;  %v2053_v20 = vmul.f32 %v3171_v3, %v4045_v18  ;;  %v3173_v22 = vpop.eup %3172  ;;  %2212 = vadd.xlane.f32.xlu0 %v4090_v33  ;;  %vm2061_vm10 = vcmp.eq.f32.partialorder %v3169_v4, inf  ;;  %vm2063_vm11 = vcmp.eq.f32.partialorder %v3169_v4, 0.0 }
 0x276   : > { %v1811_v59 = vadd.f32 1.0, %v1779_v48  ;;  %v2046_v13 = vmul.f32 %v3173_v22, %v4050_v21 }
 0x277   : > { %3182 = vrcp.f32 %v1812_v30  ;;  %v2055_v23 = vsel %vm2054_vm4, %v4045_v18, %v2053_v20 }
 0x278   : > { %3184 = vrcp.f32 %v1811_v59  ;;  %v2058_v58 = vsel %vm2056_vm5, %v2057_v24, %v2055_v23  ;;  %v2048_v38 = vsel %vm2047_vm6, %v4050_v21, %v2046_v13 }
 0x279   : > { %v3175_v32 = vpop.eup %3174  ;;  %v2126_v35 = vmul.f32 %v4045_v18, %v2058_v58  ;;  %v2051_v0 = vsel %vm2049_vm7, %v2050_v2, %v2048_v38 }
 0x27a   : > { %v3177_v14 = vpop.eup %3176  ;;  %3186 = vrsqrt.f32 %v3175_v32  ;;  %v2125_v55 = vmul.f32 %v4050_v21, %v2051_v0  ;;  %v2064_v21 = vand.u32 2147483648, %v3169_v4  ;;  %vm2082_vm12 = vcmp.eq.f32.partialorder %v3175_v32, inf }
 0x27b   : > { %v4106_v43 = vsel %vm2135_vm0, %v2126_v35, 0.0  ;;  %3188 = vrsqrt.f32 %v3177_v14  ;;  %v2085_v3 = vand.u32 2147483648, %v3175_v32  ;;  %vm2084_vm13 = vcmp.eq.f32.partialorder %v3175_v32, 0.0 }
 0x27c   : > { %v3179_v47 = vpop.eup %3178  ;;  %2218 = vadd.xlane.f32.xlu1 %v4106_v43  ;;  %v4112_v18 = vsel %vm2135_vm0, %v2125_v55, 0.0  ;;  %vm2075_vm14 = vcmp.eq.f32.partialorder %v3177_v14, inf  ;;  %v2078_v20 = vand.u32 2147483648, %v3177_v14  ;;  %vm2077_vm15 = vcmp.eq.f32.partialorder %v3177_v14, 0.0 }
 0x27d   : > { %v2067_v62 = vmul.f32 %v3179_v47, %v3167_v63  ;;  %v3181_v37 = vpop.eup %3180  ;;  %2216 = vadd.xlane.f32.xlu0 %v4112_v18 }
 0x27e   : > { %v2060_v54 = vmul.f32 %v3181_v37, %v3169_v4 }
 0x27f   : > { %v2069_v53 = vsel %vm2068_vm8, %v3167_v63, %v2067_v62 }
 0x280   : > { %v2072_v46 = vsel %vm2070_vm9, %v2071_v19, %v2069_v53  ;;  %v2062_v61 = vsel %vm2061_vm10, %v3169_v4, %v2060_v54 }
 0x281   : > { %v3183_v56 = vpop.eup %3182  ;;  %v2128_v11 = vmul.f32 %v3167_v63, %v2072_v46  ;;  %v2065_v1 = vsel %vm2063_vm11, %v2064_v21, %v2062_v61 }
 0x282   : > { %v3185_v26 = vpop.eup %3184  ;;  %3190 = vrsqrt.f32 %v3183_v56  ;;  %v2127_v5 = vmul.f32 %v3169_v4, %v2065_v1  ;;  %vm2096_vm1 = vcmp.eq.f32.partialorder %v3183_v56, inf  ;;  %v2099_v0 = vand.u32 2147483648, %v3183_v56 }
 0x283   : > { %v4117_v28 = vsel %vm2135_vm0, %v2128_v11, 0.0  ;;  %3192 = vrsqrt.f32 %v3185_v26  ;;  %vm2098_vm2 = vcmp.eq.f32.partialorder %v3183_v56, 0.0  ;;  %vm2089_vm3 = vcmp.eq.f32.partialorder %v3185_v26, inf }
 0x284   : > { %v3187_v36 = vpop.eup %3186  ;;  %2222 = vadd.xlane.f32.xlu1 %v4117_v28  ;;  %v4122_v7 = vsel %vm2135_vm0, %v2127_v5, 0.0  ;;  %vm2091_vm4 = vcmp.eq.f32.partialorder %v3185_v26, 0.0 }
 0x285   : > { %v3189_v45 = vpop.eup %3188  ;;  %v2081_v63 = vmul.f32 %v3187_v36, %v3175_v32  ;;  %2220 = vadd.xlane.f32.xlu0 %v4122_v7 }
 0x286   : > { %v2074_v48 = vmul.f32 %v3189_v45, %v3177_v14 }
 0x287   : > { %v2083_v30 = vsel %vm2082_vm12, %v3175_v32, %v2081_v63 }
 0x288   : > { %v2086_v4 = vsel %vm2084_vm13, %v2085_v3, %v2083_v30  ;;  %v2076_v22 = vsel %vm2075_vm14, %v3177_v14, %v2074_v48 }
 0x289   : > { %v2130_v59 = vmul.f32 %v3175_v32, %v2086_v4  ;;  %v2079_v24 = vsel %vm2077_vm15, %v2078_v20, %v2076_v22 }
 0x28a   : > { %v2129_v23 = vmul.f32 %v3177_v14, %v2079_v24  ;;  %v2092_v14 = vand.u32 2147483648, %v3185_v26 }
 0x28b   : > { %v4127_v13 = vsel %vm2135_vm0, %v2130_v59, 0.0 }
 0x28c   : > { %v3191_v58 = vpop.eup %3190  ;;  %2226 = vadd.xlane.f32.xlu1 %v4127_v13  ;;  %v4132_v2 = vsel %vm2135_vm0, %v2129_v23, 0.0 }
 0x28d   : > { %v3193_v35 = vpop.eup %3192  ;;  %2224 = vadd.xlane.f32.xlu0 %v4132_v2  ;;  %v2095_v38 = vmul.f32 %v3191_v58, %v3183_v56 }
 0x28e   : > { %v2088_v32 = vmul.f32 %v3193_v35, %v3185_v26 }
 0x28f   : > { %v2097_v55 = vsel %vm2096_vm1, %v3183_v56, %v2095_v38 }
 0x290   : > { %v2100_v47 = vsel %vm2098_vm2, %v2099_v0, %v2097_v55  ;;  %v2090_v62 = vsel %vm2089_vm3, %v3185_v26, %v2088_v32 }
 0x291   : > { %v2132_v37 = vmul.f32 %v3183_v56, %v2100_v47  ;;  %v2093_v19 = vsel %vm2091_vm4, %v2092_v14, %v2090_v62 }
 0x292   : > { %v2131_v53 = vmul.f32 %v3185_v26, %v2093_v19 }
 0x293   : > { %v4137_v54 = vsel %vm2135_vm0, %v2132_v37, 0.0 }
 0x294   : > { %2230 = vadd.xlane.f32.xlu1 %v4137_v54  ;;  %v4142_v46 = vsel %vm2135_vm0, %v2131_v53, 0.0 }
 0x295   : > { %2228 = vadd.xlane.f32.xlu0 %v4142_v46 }
 0x2a9   : > { %v2171_v21 = vpop.xlane.xlu1 %2170 }
 0x2aa   : > { %3194 = vrcp.f32 %v2171_v21  ;;  %v2169_v11 = vpop.xlane.xlu0 %2168 }
 0x2ab   : > { %3196 = vrcp.f32 %v2169_v11 }
 0x2b1   : > { %v2175_v56 = vpop.xlane.xlu1 %2174 }
 0x2b2   : > { %3198 = vrcp.f32 %v2175_v56  ;;  %v2173_v61 = vpop.xlane.xlu0 %2172 }
 0x2b3   : > { %3200 = vrcp.f32 %v2173_v61 }
 0x2b4   : > { %v3195_v26 = vpop.eup %3194 }
 0x2b5   : > { %v3197_v31 = vpop.eup %3196  ;;  %v2235_v1 = vmul.f32 %v3195_v26, %v3719_v12 }
 0x2b6   : > { %v2233_v5 = vmul.f32 %v3197_v31, %v3726_v8 }
 0x2b7   : > { %2297 = vst [vmem:[%s4150_s14 + $0x8] sm:$0xff] %v2235_v1 }
 0x2b8   : > { %2296 = vst [vmem:[%s4150_s14] sm:$0xff] %v2233_v5 }
 0x2b9   : > { %v2179_v36 = vpop.xlane.xlu1 %2178 }
 0x2ba   : > { %3202 = vrcp.f32 %v2179_v36  ;;  %v2177_v63 = vpop.xlane.xlu0 %2176 }
 0x2bb   : > { %3204 = vrcp.f32 %v2177_v63 }
 0x2bc   : > { %v3199_v45 = vpop.eup %3198 }
 0x2bd   : > { %v3201_v3 = vpop.eup %3200  ;;  %v2239_v48 = vmul.f32 %v3199_v45, %v3753_v17 }
 0x2be   : > { %v2237_v30 = vmul.f32 %v3201_v3, %v3761_v39 }
 0x2bf   : > { %2299 = vst [vmem:[%s4150_s14 + $0x18] sm:$0xff] %v2239_v48 }
 0x2c0   : > { %2298 = vst [vmem:[%s4150_s14 + $0x10] sm:$0xff] %v2237_v30 }
 0x2c1   : > { %v2183_v20 = vpop.xlane.xlu1 %2182 }
 0x2c2   : > { %3206 = vrcp.f32 %v2183_v20  ;;  %v2181_v12 = vpop.xlane.xlu0 %2180 }
 0x2c3   : > { %3208 = vrcp.f32 %v2181_v12 }
 0x2c4   : > { %v3203_v8 = vpop.eup %3202 }
 0x2c5   : > { %v2243_v4 = vmul.f32 %v3203_v8, %v3784_v6  ;;  %v3205_v22 = vpop.eup %3204 }
 0x2c6   : > { %v2241_v59 = vmul.f32 %v3205_v22, %v3795_v15 }
 0x2c7   : > { %2301 = vst [vmem:[%s4150_s14 + $0x28] sm:$0xff] %v2243_v4 }
 0x2c8   : > { %2300 = vst [vmem:[%s4150_s14 + $0x20] sm:$0xff] %v2241_v59 }
 0x2c9   : > { %v2187_v24 = vpop.xlane.xlu1 %2186 }
 0x2ca   : > { %3210 = vrcp.f32 %v2187_v24  ;;  %v2185_v17 = vpop.xlane.xlu0 %2184 }
 0x2cb   : > { %3212 = vrcp.f32 %v2185_v17 }
 0x2cc   : > { %v3207_v39 = vpop.eup %3206 }
 0x2cd   : > { %v2247_v23 = vmul.f32 %v3207_v39, %v3819_v51  ;;  %v3209_v58 = vpop.eup %3208 }
 0x2ce   : > { %v2245_v35 = vmul.f32 %v3209_v58, %v3828_v25 }
 0x2cf   : > { %2303 = vst [vmem:[%s4150_s14 + $0x38] sm:$0xff] %v2247_v23 }
 0x2d0   : > { %2302 = vst [vmem:[%s4150_s14 + $0x30] sm:$0xff] %v2245_v35 }
 0x2d1   : > { %v2191_v6 = vpop.xlane.xlu1 %2190 }
 0x2d2   : > { %3214 = vrcp.f32 %v2191_v6  ;;  %v2189_v38 = vpop.xlane.xlu0 %2188 }
 0x2d3   : > { %3216 = vrcp.f32 %v2189_v38 }
 0x2d4   : > { %v3211_v15 = vpop.eup %3210 }
 0x2d5   : > { %v2251_v0 = vmul.f32 %v3211_v15, %v3853_v52  ;;  %v3213_v32 = vpop.eup %3212 }
 0x2d6   : > { %v2249_v55 = vmul.f32 %v3213_v32, %v3862_v60 }
 0x2d7   : > { %2305 = vst [vmem:[%s4150_s14 + $0x48] sm:$0xff] %v2251_v0 }
 0x2d8   : > { %2304 = vst [vmem:[%s4150_s14 + $0x40] sm:$0xff] %v2249_v55 }
 0x2d9   : > { %v2195_v51 = vpop.xlane.xlu1 %2194 }
 0x2da   : > { %3218 = vrcp.f32 %v2195_v51  ;;  %v2193_v14 = vpop.xlane.xlu0 %2192 }
 0x2db   : > { %3220 = vrcp.f32 %v2193_v14 }
 0x2dc   : > { %v3215_v25 = vpop.eup %3214 }
 0x2dd   : > { %v2255_v47 = vmul.f32 %v3215_v25, %v3887_v49  ;;  %v3217_v62 = vpop.eup %3216 }
 0x2de   : > { %v2253_v37 = vmul.f32 %v3217_v62, %v3896_v9 }
 0x2df   : > { %2307 = vst [vmem:[%s4150_s14 + $0x58] sm:$0xff] %v2255_v47 }
 0x2e0   : > { %2306 = vst [vmem:[%s4150_s14 + $0x50] sm:$0xff] %v2253_v37 }
 0x2e1   : > { %v2199_v52 = vpop.xlane.xlu1 %2198 }
 0x2e2   : > { %3222 = vrcp.f32 %v2199_v52  ;;  %v2197_v19 = vpop.xlane.xlu0 %2196 }
 0x2e3   : > { %3224 = vrcp.f32 %v2197_v19 }
 0x2e4   : > { %v3219_v60 = vpop.eup %3218 }
 0x2e5   : > { %v2259_v53 = vmul.f32 %v3219_v60, %v3921_v42  ;;  %v3221_v21 = vpop.eup %3220 }
 0x2e6   : > { %v2257_v11 = vmul.f32 %v3221_v21, %v3930_v50 }
 0x2e7   : > { %2309 = vst [vmem:[%s4150_s14 + $0x68] sm:$0xff] %v2259_v53 }
 0x2e8   : > { %2308 = vst [vmem:[%s4150_s14 + $0x60] sm:$0xff] %v2257_v11 }
 0x2e9   : > { %v2203_v49 = vpop.xlane.xlu1 %2202 }
 0x2ea   : > { %3226 = vrcp.f32 %v2203_v49  ;;  %v2201_v56 = vpop.xlane.xlu0 %2200 }
 0x2eb   : > { %3228 = vrcp.f32 %v2201_v56 }
 0x2ec   : > { %v3223_v9 = vpop.eup %3222 }
 0x2ed   : > { %v2263_v61 = vmul.f32 %v3223_v9, %v3955_v16  ;;  %v3225_v26 = vpop.eup %3224 }
 0x2ee   : > { %v2261_v31 = vmul.f32 %v3225_v26, %v3964_v57 }
 0x2ef   : > { %2311 = vst [vmem:[%s4150_s14 + $0x78] sm:$0xff] %v2263_v61 }
 0x2f0   : > { %2310 = vst [vmem:[%s4150_s14 + $0x70] sm:$0xff] %v2261_v31 }
 0x2f1   : > { %v2207_v42 = vpop.xlane.xlu1 %2206 }
 0x2f2   : > { %3230 = vrcp.f32 %v2207_v42  ;;  %v2205_v1 = vpop.xlane.xlu0 %2204 }
 0x2f3   : > { %3232 = vrcp.f32 %v2205_v1 }
 0x2f4   : > { %v3227_v50 = vpop.eup %3226 }
 0x2f5   : > { %v2267_v5 = vmul.f32 %v3227_v50, %v3989_v41  ;;  %v3229_v36 = vpop.eup %3228 }
 0x2f6   : > { %v2265_v45 = vmul.f32 %v3229_v36, %v3998_v40 }
 0x2f7   : > { %2313 = vst [vmem:[%s4150_s14 + $0x88] sm:$0xff] %v2267_v5 }
 0x2f8   : > { %2312 = vst [vmem:[%s4150_s14 + $0x80] sm:$0xff] %v2265_v45 }
 0x2f9   : > { %v2211_v16 = vpop.xlane.xlu1 %2210 }
 0x2fa   : > { %3234 = vrcp.f32 %v2211_v16  ;;  %v2209_v63 = vpop.xlane.xlu0 %2208 }
 0x2fb   : > { %3236 = vrcp.f32 %v2209_v63 }
 0x2fc   : > { %v3231_v57 = vpop.eup %3230 }
 0x2fd   : > { %v2271_v3 = vmul.f32 %v3231_v57, %v4023_v34  ;;  %v3233_v48 = vpop.eup %3232 }
 0x2fe   : > { %v2269_v30 = vmul.f32 %v3233_v48, %v4032_v27 }
 0x2ff   : > { %2315 = vst [vmem:[%s4150_s14 + $0x98] sm:$0xff] %v2271_v3 }
 0x300   : > { %2314 = vst [vmem:[%s4150_s14 + $0x90] sm:$0xff] %v2269_v30 }
 0x301   : > { %v2215_v41 = vpop.xlane.xlu1 %2214 }
 0x302   : > { %3238 = vrcp.f32 %v2215_v41  ;;  %v2213_v20 = vpop.xlane.xlu0 %2212 }
 0x303   : > { %3240 = vrcp.f32 %v2213_v20 }
 0x304   : > { %v3235_v40 = vpop.eup %3234 }
 0x305   : > { %v2275_v12 = vmul.f32 %v3235_v40, %v4057_v10  ;;  %v3237_v8 = vpop.eup %3236 }
 0x306   : > { %v2273_v4 = vmul.f32 %v3237_v8, %v4066_v44 }
 0x307   : > { %2317 = vst [vmem:[%s4150_s14 + $0xa8] sm:$0xff] %v2275_v12 }
 0x308   : > { %2316 = vst [vmem:[%s4150_s14 + $0xa0] sm:$0xff] %v2273_v4 }
 0x309   : > { %v2219_v34 = vpop.xlane.xlu1 %2218 }
 0x30a   : > { %3242 = vrcp.f32 %v2219_v34  ;;  %v2217_v22 = vpop.xlane.xlu0 %2216 }
 0x30b   : > { %3244 = vrcp.f32 %v2217_v22 }
 0x30c   : > { %v3239_v27 = vpop.eup %3238 }
 0x30d   : > { %v2279_v59 = vmul.f32 %v3239_v27, %v4084_v29  ;;  %v3241_v24 = vpop.eup %3240 }
 0x30e   : > { %v2277_v17 = vmul.f32 %v3241_v24, %v4090_v33 }
 0x30f   : > { %2319 = vst [vmem:[%s4150_s14 + $0xb8] sm:$0xff] %v2279_v59 }
 0x310   : > { %2318 = vst [vmem:[%s4150_s14 + $0xb0] sm:$0xff] %v2277_v17 }
 0x311   : > { %v2223_v10 = vpop.xlane.xlu1 %2222 }
 0x312   : > { %3246 = vrcp.f32 %v2223_v10  ;;  %v2221_v39 = vpop.xlane.xlu0 %2220 }
 0x313   : > { %3248 = vrcp.f32 %v2221_v39 }
 0x314   : > { %v3243_v44 = vpop.eup %3242 }
 0x315   : > { %v2283_v23 = vmul.f32 %v3243_v44, %v4106_v43  ;;  %v3245_v58 = vpop.eup %3244 }
 0x316   : > { %v2281_v35 = vmul.f32 %v3245_v58, %v4112_v18 }
 0x317   : > { %2321 = vst [vmem:[%s4150_s14 + $0xc8] sm:$0xff] %v2283_v23 }
 0x318   : > { %2320 = vst [vmem:[%s4150_s14 + $0xc0] sm:$0xff] %v2281_v35 }
 0x319   : > { %v2227_v29 = vpop.xlane.xlu1 %2226 }
 0x31a   : > { %3250 = vrcp.f32 %v2227_v29  ;;  %v2225_v6 = vpop.xlane.xlu0 %2224 }
 0x31b   : > { %3252 = vrcp.f32 %v2225_v6 }
 0x31c   : > { %v3247_v33 = vpop.eup %3246 }
 0x31d   : > { %v2287_v38 = vmul.f32 %v3247_v33, %v4117_v28  ;;  %v3249_v15 = vpop.eup %3248 }
 0x31e   : > { %v2285_v0 = vmul.f32 %v3249_v15, %v4122_v7 }
 0x31f   : > { %2323 = vst [vmem:[%s4150_s14 + $0xd8] sm:$0xff] %v2287_v38 }
 0x320   : > { %2322 = vst [vmem:[%s4150_s14 + $0xd0] sm:$0xff] %v2285_v0 }
 0x321   : > { %v2231_v43 = vpop.xlane.xlu1 %2230 }
 0x322   : > { %3254 = vrcp.f32 %v2231_v43  ;;  %v2229_v18 = vpop.xlane.xlu0 %2228 }
 0x323   : > { %3256 = vrcp.f32 %v2229_v18 }
 0x324   : > { %v3251_v32 = vpop.eup %3250 }
 0x325   : > { %v3253_v55 = vpop.eup %3252  ;;  %v2291_v51 = vmul.f32 %v3251_v32, %v4127_v13 }
 0x326   : > { %v2289_v14 = vmul.f32 %v3253_v55, %v4132_v2 }
 0x327   : > { %2325 = vst [vmem:[%s4150_s14 + $0xe8] sm:$0xff] %v2291_v51 }
 0x328   : > { %2324 = vst [vmem:[%s4150_s14 + $0xe0] sm:$0xff] %v2289_v14 }
 0x32c   : > { %v3255_v28 = vpop.eup %3254 }
 0x32d   : > { %v3257_v25 = vpop.eup %3256  ;;  %v2295_v47 = vmul.f32 %v3255_v28, %v4137_v54 }
 0x32e   : > { %v2293_v7 = vmul.f32 %v3257_v25, %v4142_v46 }
 0x32f   : > { %2327 = vst [vmem:[%s4150_s14 + $0xf8] sm:$0xff] %v2295_v47 }
 0x330   : > { %2326 = vst [vmem:[%s4150_s14 + $0xf0] sm:$0xff] %v2293_v7 }
 0x331 PF: > { %s16_s18 = sadd.s32 1, %s3264_s18  }
 0x332   : > { %p13_p4 = scmp.ge.s32.totalorder %s16_s18, 4  }
 0x334   :  { %15 = sbr.rel (!%p13_p4) target bundleno = 1 (0x1), region = 78 }

// kernel: encoder_forward.4
= control target key start
LH: loop header
LB: loop body
LE: loop exit
PB: predicated region body
PF: predicated region fallthrough
CT: control target
= control target key end

     0   :  { %s2501_s15 = smov 0   ;;  %s2811_s0 = inlined_call_operand.vmem [shape: bf16[512,512], index: 0, kind: input, shape index: {}]   ;;  %s2812_s1 = inlined_call_operand.vmem [shape: bf16[512,128], index: 1, kind: input, shape index: {}]   ;;  %s2813_s2 = inlined_call_operand.vmem [shape: f32[1,128], index: 2, kind: input, shape index: {}]   ;;  %s2814_s3 = inlined_call_operand.vmem [shape: f32[128,128], index: 3, kind: input, shape index: {}]   ;;  %s2815_s4 = inlined_call_operand.vmem [shape: bf16[512,128], index: 4, kind: output, shape index: {}]  }
   0x1 LB: > { %s1663_s16 = sadd.s32 4294967295, %s2474_s15   ;;  %p1667_p0 = scmp.ge.s32.totalorder %s2474_s15, 1  ;;  %s2474_s15 = sphi %s2501_s15, %s14_s15  }
   0x2   : > { %p164_p1 = scmp.lt.s32.totalorder %s2474_s15, 3 }
   0x4   : > { %p165_p2 = pnand %p1667_p0, %p164_p1 }
   0x5   : > { %v2340_v0 = vld [vmem:[%s2812_s1 + $0x40] sm:$0xff] (!%p165_p2)   ;;  %s1668_s19 = sshll.u32 (!%p165_p2), %s1663_s16, 5  ;;  %v2342_v2 = vld [vmem:[%s2812_s1 + $0x48] sm:$0xff] (!%p165_p2)   ;;  %v2344_v4 = vld [vmem:[%s2812_s1 + $0x50] sm:$0xff] (!%p165_p2)  }
   0x6   : > { %168 = sbr.rel (%p165_p2) target bundleno = 627 (0x273), region = 36  ;;  %v2341_v1 = vld [vmem:[%s2812_s1] sm:$0xff] (!%p165_p2)   ;;  %2316 = vmatprep.subr.bf16.mxu1 (!%p165_p2), %v2340_v0  ;;  %1932 = vmatprep.subr.bf16.mxu0 (!%p165_p2), %v2340_v0  ;;  %v2343_v3 = vld [vmem:[%s2812_s1 + $0x8] sm:$0xff] (!%p165_p2)   ;;  %p192_p3 = scmp.lt.s32.totalorder (!%p165_p2), %s1668_s19, 63  ;;  %v2345_v5 = vld [vmem:[%s2812_s1 + $0x10] sm:$0xff] (!%p165_p2)  }
   0x7   : > { %2324 = vmatpush3.bf16.msra.mxu1 (!%p165_p2), %v2341_v1  ;;  %1933 = vmatpush3.bf16.msra.mxu0 (!%p165_p2), %v2341_v1  ;;  %v2346_v6 = vld [vmem:[%s2812_s1 + $0x58] sm:$0xff] (!%p165_p2)   ;;  %v2348_v8 = vld [vmem:[%s2812_s1 + $0x60] sm:$0xff] (!%p165_p2)   ;;  %v2350_v10 = vld [vmem:[%s2812_s1 + $0x68] sm:$0xff] (!%p165_p2)  }
   0x8   : > { %2317 = vmatprep.subr.bf16.mxu1 (!%p165_p2), %v2342_v2  ;;  %1934 = vmatprep.subr.bf16.mxu0 (!%p165_p2), %v2342_v2  ;;  %v2347_v7 = vld [vmem:[%s2812_s1 + $0x18] sm:$0xff] (!%p165_p2)   ;;  %v2349_v9 = vld [vmem:[%s2812_s1 + $0x20] sm:$0xff] (!%p165_p2)   ;;  %v2351_v12 = vld [vmem:[%s2812_s1 + $0x28] sm:$0xff] (!%p165_p2)  }
   0x9   : > { %v2352_v13 = vld [vmem:[%s2812_s1 + $0x70] sm:$0xff] (!%p165_p2)   ;;  %v2354_v15 = vld [vmem:[%s2812_s1 + $0x78] sm:$0xff] (!%p165_p2)   ;;  %v2359_v17 = vld [vmem:[%s2812_s1 + $0xc0] sm:$0xff] (!%p165_p2)  }
   0xa   : > { %v2353_v14 = vld [vmem:[%s2812_s1 + $0x30] sm:$0xff] (!%p165_p2)   ;;  %v2355_v16 = vld [vmem:[%s2812_s1 + $0x38] sm:$0xff] (!%p165_p2)   ;;  %v2360_v19 = vld [vmem:[%s2812_s1 + $0x80] sm:$0xff] (!%p165_p2)  }
   0xb   : > { %2325 = vmatpush3.bf16.msra.mxu1 (!%p165_p2), %v2343_v3  ;;  %1935 = vmatpush3.bf16.msra.mxu0 (!%p165_p2), %v2343_v3  ;;  %v2361_v21 = vld [vmem:[%s2812_s1 + $0xc8] sm:$0xff] (!%p165_p2)   ;;  %v2366_v24 = vld [vmem:[%s2812_s1 + $0xd0] sm:$0xff] (!%p165_p2)   ;;  %v2368_v28 = vld [vmem:[%s2812_s1 + $0xd8] sm:$0xff] (!%p165_p2)  }
   0xc   : > { %2318 = vmatprep.subr.bf16.mxu1 (!%p165_p2), %v2344_v4  ;;  %1936 = vmatprep.subr.bf16.mxu0 (!%p165_p2), %v2344_v4  ;;  %v2362_v22 = vld [vmem:[%s2812_s1 + $0x88] sm:$0xff] (!%p165_p2)   ;;  %v2367_v27 = vld [vmem:[%s2812_s1 + $0x90] sm:$0xff] (!%p165_p2)   ;;  %v2369_v31 = vld [vmem:[%s2812_s1 + $0x98] sm:$0xff] (!%p165_p2)  }
   0xd   : > { %s2817_s19 = smov (!%p192_p3, %s1668_s19), 63  ;;  %v2373_v32 = vld [vmem:[%s2812_s1 + $0xe0] sm:$0xff]   ;;  %v2375_v38 = vld [vmem:[%s2812_s1 + $0xe8] sm:$0xff]   ;;  %v2380_v40 = vld [vmem:[%s2812_s1 + $0xf0] sm:$0xff]  }
   0xe   : > { %s1804_s8 = sshll.u32 %s2817_s19, 4  ;;  %v2374_v36 = vld [vmem:[%s2812_s1 + $0xa0] sm:$0xff]   ;;  %v2376_v39 = vld [vmem:[%s2812_s1 + $0xa8] sm:$0xff]   ;;  %v2381_v44 = vld [vmem:[%s2812_s1 + $0xb0] sm:$0xff]   ;;  %s1672_s26 = sshll.u32 %s2817_s19, 2 }
   0xf   : > { %2326 = vmatpush3.bf16.msra.mxu1 %v2345_v5  ;;  %1937 = vmatpush3.bf16.msra.mxu0 %v2345_v5  ;;  %s2542_s13 = scalar_lea.vmem %s2811_s0, %s1804_s8  ;;  %v2382_v46 = vld [vmem:[%s2812_s1 + $0xf8] sm:$0xff]   ;;  %s2790_s29 = scalar_lea.vmem %s2815_s4, %s1672_s26 }
  0x10   : > { %2319 = vmatprep.subr.bf16.mxu1 %v2346_v6  ;;  %1938 = vmatprep.subr.bf16.mxu0 %v2346_v6  ;;  %v2358_v11 = vld [vmem:[%s2542_s13 + $0x184] ss:$16 sps:$4 sm:$0xff]   ;;  %v2356_v18 = vld [vmem:[%s2542_s13 + $0x180] ss:$16 sps:$4 sm:$0xff]   ;;  %v2389_v45 = vld [vmem:[%s2542_s13 + $0xc] ss:$16 sps:$4 sm:$0xff]  }
  0x11   : > { %980 = vmatprep.mubr.bf16.mxu1 %v2358_v11  ;;  %v2363_v20 = vld [vmem:[%s2542_s13 + $0x1a4] ss:$16 sps:$4 sm:$0xff]   ;;  %v2365_v23 = vld [vmem:[%s2542_s13 + $0x1a0] ss:$16 sps:$4 sm:$0xff]   ;;  %v2386_v47 = vld [vmem:[%s2812_s1 + $0xb8] sm:$0xff]  }
  0x12   : > { %v2383_v25 = vld [vmem:[%s2542_s13] ss:$16 sps:$4 sm:$0xff]   ;;  %v2385_v26 = vld [vmem:[%s2542_s13 + $0x4] ss:$16 sps:$4 sm:$0xff]   ;;  %v2387_v50 = vld [vmem:[%s2542_s13 + $0x8] ss:$16 sps:$4 sm:$0xff]  }
  0x13   : > { %2327 = vmatpush3.bf16.msra.mxu1 %v2347_v7  ;;  %1939 = vmatpush3.bf16.msra.mxu0 %v2347_v7  ;;  %v2370_v29 = vld [vmem:[%s2542_s13 + $0x1c4] ss:$16 sps:$4 sm:$0xff]   ;;  %v2392_v33 = vld [vmem:[%s2542_s13 + $0x20] ss:$16 sps:$4 sm:$0xff]   ;;  %v2393_v51 = vld [vmem:[%s2542_s13 + $0x2c] ss:$16 sps:$4 sm:$0xff]  }
  0x14   : > { %2320 = vmatprep.subr.bf16.mxu1 %v2348_v8  ;;  %1940 = vmatprep.subr.bf16.mxu0 %v2348_v8  ;;  %v2390_v30 = vld [vmem:[%s2542_s13 + $0x24] ss:$16 sps:$4 sm:$0xff]   ;;  %v2372_v35 = vld [vmem:[%s2542_s13 + $0x1c0] ss:$16 sps:$4 sm:$0xff]   ;;  %v2395_v54 = vld [vmem:[%s2542_s13 + $0x28] ss:$16 sps:$4 sm:$0xff]  }
  0x15   : > { %884 = vmatprep.mubr.bf16.mxu0 %v2385_v26  ;;  %v2396_v34 = vld [vmem:[%s2542_s13 + $0x44] ss:$16 sps:$4 sm:$0xff]   ;;  %v2398_v41 = vld [vmem:[%s2542_s13 + $0x40] ss:$16 sps:$4 sm:$0xff]   ;;  %v2399_v55 = vld [vmem:[%s2542_s13 + $0x4c] ss:$16 sps:$4 sm:$0xff]  }
  0x16   : > { %v2377_v37 = vld [vmem:[%s2542_s13 + $0x1e4] ss:$16 sps:$4 sm:$0xff]   ;;  %v2379_v43 = vld [vmem:[%s2542_s13 + $0x1e0] ss:$16 sps:$4 sm:$0xff]   ;;  %v2401_v58 = vld [vmem:[%s2542_s13 + $0x48] ss:$16 sps:$4 sm:$0xff]  }
  0x17   : > { %2328 = vmatpush3.bf16.msra.mxu1 %v2349_v9  ;;  %1941 = vmatpush3.bf16.msra.mxu0 %v2349_v9  ;;  %v2402_v42 = vld [vmem:[%s2542_s13 + $0x64] ss:$16 sps:$4 sm:$0xff]   ;;  %v2404_v48 = vld [vmem:[%s2542_s13 + $0x60] ss:$16 sps:$4 sm:$0xff]   ;;  %v2405_v59 = vld [vmem:[%s2542_s13 + $0x6c] ss:$16 sps:$4 sm:$0xff]  }
  0x18   : > { %2321 = vmatprep.subr.bf16.mxu1 %v2350_v10  ;;  %1942 = vmatprep.subr.bf16.mxu0 %v2350_v10  ;;  %v2408_v49 = vld [vmem:[%s2542_s13 + $0x84] ss:$16 sps:$4 sm:$0xff]   ;;  %v2410_v52 = vld [vmem:[%s2542_s13 + $0x80] ss:$16 sps:$4 sm:$0xff]   ;;  %v2407_v62 = vld [vmem:[%s2542_s13 + $0x68] ss:$16 sps:$4 sm:$0xff]  }
  0x19   : > { %v2414_v53 = vld [vmem:[%s2542_s13 + $0xa4] ss:$16 sps:$4 sm:$0xff]   ;;  %v2416_v56 = vld [vmem:[%s2542_s13 + $0xa0] ss:$16 sps:$4 sm:$0xff]   ;;  %v2411_v63 = vld [vmem:[%s2542_s13 + $0x8c] ss:$16 sps:$4 sm:$0xff]  }
  0x1a   : > { %v2420_v57 = vld [vmem:[%s2542_s13 + $0xc4] ss:$16 sps:$4 sm:$0xff]   ;;  %v2422_v60 = vld [vmem:[%s2542_s13 + $0xc0] ss:$16 sps:$4 sm:$0xff]   ;;  %v2413_v2 = vld [vmem:[%s2542_s13 + $0x88] ss:$16 sps:$4 sm:$0xff]  }
  0x1b   : > { %2329 = vmatpush3.bf16.msra.mxu1 %v2351_v12  ;;  %1943 = vmatpush3.bf16.msra.mxu0 %v2351_v12  ;;  %v2426_v61 = vld [vmem:[%s2542_s13 + $0xe4] ss:$16 sps:$4 sm:$0xff]   ;;  %v2428_v0 = vld [vmem:[%s2542_s13 + $0xe0] ss:$16 sps:$4 sm:$0xff]   ;;  %v2417_v3 = vld [vmem:[%s2542_s13 + $0xac] ss:$16 sps:$4 sm:$0xff]  }
  0x1c   : > { %2322 = vmatprep.subr.bf16.mxu1 %v2352_v13  ;;  %1944 = vmatprep.subr.bf16.mxu0 %v2352_v13  ;;  %v2432_v1 = vld [vmem:[%s2542_s13 + $0x104] ss:$16 sps:$4 sm:$0xff]   ;;  %v2434_v4 = vld [vmem:[%s2542_s13 + $0x100] ss:$16 sps:$4 sm:$0xff]   ;;  %v2419_v6 = vld [vmem:[%s2542_s13 + $0xa8] ss:$16 sps:$4 sm:$0xff]  }
  0x1d   : > { %v2438_v5 = vld [vmem:[%s2542_s13 + $0x124] ss:$16 sps:$4 sm:$0xff]   ;;  %v2423_v7 = vld [vmem:[%s2542_s13 + $0xcc] ss:$16 sps:$4 sm:$0xff]   ;;  %v2440_v8 = vld [vmem:[%s2542_s13 + $0x120] ss:$16 sps:$4 sm:$0xff]  }
  0x1e   : > { %v2444_v9 = vld [vmem:[%s2542_s13 + $0x144] ss:$16 sps:$4 sm:$0xff]   ;;  %v2425_v10 = vld [vmem:[%s2542_s13 + $0xc8] ss:$16 sps:$4 sm:$0xff]   ;;  %v2429_v11 = vld [vmem:[%s2542_s13 + $0xec] ss:$16 sps:$4 sm:$0xff]  }
  0x1f   : > { %2330 = vmatpush3.bf16.msra.mxu1 %v2353_v14  ;;  %1945 = vmatpush3.bf16.msra.mxu0 %v2353_v14  ;;  %v2446_v12 = vld [vmem:[%s2542_s13 + $0x140] ss:$16 sps:$4 sm:$0xff]   ;;  %v2450_v13 = vld [vmem:[%s2542_s13 + $0x164] ss:$16 sps:$4 sm:$0xff]   ;;  %v2431_v14 = vld [vmem:[%s2542_s13 + $0xe8] ss:$16 sps:$4 sm:$0xff]  }
  0x20   : > { %2323 = vmatprep.subr.bf16.mxu1 %v2354_v15  ;;  %1946 = vmatprep.subr.bf16.mxu0 %v2354_v15  ;;  %v2435_v15 = vld [vmem:[%s2542_s13 + $0x10c] ss:$16 sps:$4 sm:$0xff]  }
  0x21   : > { %v1211_v26 = vld [vmem:[%s2814_s3 + $0x28] sm:$0xff] }
  0x23   : > { %2331 = vmatpush3.bf16.msra.mxu1 %v2355_v16  ;;  %1947 = vmatpush3.bf16.msra.mxu0 %v2355_v16  ;;  %v1206_v16 = vld [vmem:[%s2814_s3] sm:$0xff] }
  0x24   : > { %2044 = vmatprep.subr.bf16.mxu1 %v2359_v17  ;;  %v1207_v17 = vld [vmem:[%s2814_s3 + $0x8] sm:$0xff] }
  0x26   : > { %981 = vmatmul.mubr.bf16.vlgmr.msra.gmra.mrb[0].mxu1 %v2356_v18  ;;  %885 = vmatmul.mubr.bf16.vlgmr.msra.gmra.mrb[0].mxu0 %v2383_v25  ;;  %v2452_v18 = vld [vmem:[%s2542_s13 + $0x160] ss:$16 sps:$4 sm:$0xff]  }
  0x27   : > { %2045 = vmatpush3.bf16.msra.mxu1 %v2360_v19  ;;  %988 = vmatprep.mubr.bf16.mxu1 %v2363_v20  ;;  %v2284_v19 = vpack.c.bf16 %v1207_v17, %v1206_v16  ;;  %v2437_v20 = vld [vmem:[%s2542_s13 + $0x108] ss:$16 sps:$4 sm:$0xff]   ;;  %v1210_v25 = vld [vmem:[%s2814_s3 + $0x20] sm:$0xff] }
  0x28   : > { %2046 = vmatprep.subr.bf16.mxu1 %v2361_v21  ;;  %892 = vmatprep.mubr.bf16.mxu0 %v2390_v30  ;;  %v2441_v21 = vld [vmem:[%s2542_s13 + $0x12c] ss:$16 sps:$4 sm:$0xff]   ;;  %v1212_v30 = vld [vmem:[%s2814_s3 + $0x30] sm:$0xff] }
  0x29   : > { %2285 = vmatprep.subr.bf16.mxu0 %v2284_v19 }
  0x2a   : > { %2287 = vmatpush3.bf16.msra.mxu0 %v2284_v19 }
  0x2b   : > { %2047 = vmatpush3.bf16.msra.mxu1 %v2362_v22  ;;  %v1208_v22 = vld [vmem:[%s2814_s3 + $0x10] sm:$0xff] }
  0x2c   : > { %2048 = vmatprep.subr.bf16.mxu1 %v2366_v24 }
  0x2e   : > { %989 = vmatmul.mubr.bf16.gmra.mrb[4].mxu1 %v2365_v23  ;;  %893 = vmatmul.mubr.bf16.gmra.mrb[4].mxu0 %v2392_v33  ;;  %v1209_v23 = vld [vmem:[%s2814_s3 + $0x18] sm:$0xff]  ;;  %v1214_v33 = vld [vmem:[%s2814_s3 + $0x40] sm:$0xff] }
  0x2f   : > { %2049 = vmatpush3.bf16.msra.mxu1 %v2367_v27  ;;  %996 = vmatprep.mubr.bf16.mxu1 %v2370_v29  ;;  %v2288_v24 = vpack.c.bf16 %v1209_v23, %v1208_v22  ;;  %v2292_v27 = vpack.c.bf16 %v1211_v26, %v1210_v25  ;;  %v2447_v29 = vld [vmem:[%s2542_s13 + $0x14c] ss:$16 sps:$4 sm:$0xff]  }
  0x30   : > { %2050 = vmatprep.subr.bf16.mxu1 %v2368_v28  ;;  %900 = vmatprep.mubr.bf16.mxu0 %v2396_v34  ;;  %v2443_v28 = vld [vmem:[%s2542_s13 + $0x128] ss:$16 sps:$4 sm:$0xff]  }
  0x31   : > { %2289 = vmatprep.subr.bf16.mxu0 %v2288_v24  ;;  %v1215_v34 = vld [vmem:[%s2814_s3 + $0x48] sm:$0xff] }
  0x32   : > { %2291 = vmatpush3.bf16.msra.mxu0 %v2288_v24 }
  0x33   : > { %2051 = vmatpush3.bf16.msra.mxu1 %v2369_v31  ;;  %2293 = vmatprep.subr.bf16.mxu0 %v2292_v27  ;;  %v1213_v31 = vld [vmem:[%s2814_s3 + $0x38] sm:$0xff] }
  0x34   : > { %2052 = vmatprep.subr.bf16.mxu1 %v2373_v32  ;;  %v2296_v32 = vpack.c.bf16 %v1213_v31, %v1212_v30 }
  0x36   : > { %997 = vmatmul.mubr.bf16.gmra.mrb[8].mxu1 %v2372_v35  ;;  %901 = vmatmul.mubr.bf16.gmra.mrb[8].mxu0 %v2398_v41  ;;  %v2300_v35 = vpack.c.bf16 %v1215_v34, %v1214_v33  ;;  %v1218_v41 = vld [vmem:[%s2814_s3 + $0x60] sm:$0xff] }
  0x37   : > { %2053 = vmatpush3.bf16.msra.mxu1 %v2374_v36  ;;  %1004 = vmatprep.mubr.bf16.mxu1 %v2377_v37  ;;  %v2449_v36 = vld [vmem:[%s2542_s13 + $0x148] ss:$16 sps:$4 sm:$0xff]   ;;  %v2453_v37 = vld [vmem:[%s2542_s13 + $0x16c] ss:$16 sps:$4 sm:$0xff]  }
  0x38   : > { %2054 = vmatprep.subr.bf16.mxu1 %v2375_v38  ;;  %908 = vmatprep.mubr.bf16.mxu0 %v2402_v42  ;;  %v1216_v38 = vld [vmem:[%s2814_s3 + $0x50] sm:$0xff]  ;;  %v1219_v42 = vld [vmem:[%s2814_s3 + $0x68] sm:$0xff] }
  0x39   : > { %2295 = vmatpush3.bf16.msra.mxu0 %v2292_v27 }
  0x3a   : > { %2297 = vmatprep.subr.bf16.mxu0 %v2296_v32 }
  0x3b   : > { %2055 = vmatpush3.bf16.msra.mxu1 %v2376_v39  ;;  %v1217_v39 = vld [vmem:[%s2814_s3 + $0x58] sm:$0xff] }
  0x3c   : > { %2056 = vmatprep.subr.bf16.mxu1 %v2380_v40  ;;  %v2304_v40 = vpack.c.bf16 %v1217_v39, %v1216_v38 }
  0x3d   : > { %2299 = vmatpush3.bf16.msra.mxu0 %v2296_v32 }
  0x3e   : > { %1005 = vmatmul.mubr.bf16.gmra.mrb[12].mxu1 %v2379_v43  ;;  %909 = vmatmul.mubr.bf16.gmra.mrb[12].mxu0 %v2404_v48  ;;  %v2308_v43 = vpack.c.bf16 %v1219_v42, %v1218_v41 }
  0x3f   : > { %2057 = vmatpush3.bf16.msra.mxu1 %v2381_v44  ;;  %1045 = vmatprep.mubr.bf16.mxu1 %v2389_v45  ;;  %v2455_v44 = vld [vmem:[%s2542_s13 + $0x168] ss:$16 sps:$4 sm:$0xff]   ;;  %v2456_v45 = vld [vmem:[%s2542_s13 + $0x18c] ss:$16 sps:$4 sm:$0xff]  }
  0x40   : > { %2058 = vmatprep.subr.bf16.mxu1 %v2382_v46  ;;  %916 = vmatprep.mubr.bf16.mxu0 %v2408_v49  ;;  %v1220_v46 = vld [vmem:[%s2814_s3 + $0x70] sm:$0xff]  ;;  %v2458_v49 = vld [vmem:[%s2542_s13 + $0x188] ss:$16 sps:$4 sm:$0xff]  }
  0x41   : > { %2301 = vmatprep.subr.bf16.mxu0 %v2300_v35 }
  0x42   : > { %2303 = vmatpush3.bf16.msra.mxu0 %v2300_v35  ;;  %v2744_v35 = vld [vmem:[%s2813_s2] ss:$0 sm:$0xff] }
  0x43   : > { %2059 = vmatpush3.bf16.msra.mxu1 %v2386_v47  ;;  %2305 = vmatprep.subr.bf16.mxu0 %v2304_v40  ;;  %v1221_v47 = vld [vmem:[%s2814_s3 + $0x78] sm:$0xff] }
  0x44   : > { %v2312_v48 = vpack.c.bf16 %v1221_v47, %v1220_v46 }
  0x46   : > { %1046 = vmatmul.mubr.bf16.vlgmr.msra.gmra.mrb[16].mxu1 %v2387_v50  ;;  %917 = vmatmul.mubr.bf16.gmra.mrb[16].mxu0 %v2410_v52  ;;  %v2459_v50 = vld [vmem:[%s2542_s13 + $0x1ac] ss:$16 sps:$4 sm:$0xff]  }
  0x47   : > { %1053 = vmatprep.mubr.bf16.mxu1 %v2393_v51  ;;  %924 = vmatprep.mubr.bf16.mxu0 %v2414_v53  ;;  %v2461_v51 = vld [vmem:[%s2542_s13 + $0x1a8] ss:$16 sps:$4 sm:$0xff]   ;;  %v2462_v52 = vld [vmem:[%s2542_s13 + $0x1cc] ss:$16 sps:$4 sm:$0xff]  }
  0x48   : > { %2307 = vmatpush3.bf16.msra.mxu0 %v2304_v40  ;;  %v2464_v53 = vld [vmem:[%s2542_s13 + $0x1c8] ss:$16 sps:$4 sm:$0xff]  }
  0x49   : > { %2309 = vmatprep.subr.bf16.mxu0 %v2308_v43 }
  0x4c   : > { %2311 = vmatpush3.bf16.msra.mxu0 %v2308_v43 }
  0x4d   : > { %2313 = vmatprep.subr.bf16.mxu0 %v2312_v48 }
  0x4e   : > { %1054 = vmatmul.mubr.bf16.gmra.mrb[20].mxu1 %v2395_v54  ;;  %925 = vmatmul.mubr.bf16.gmra.mrb[20].mxu0 %v2416_v56  ;;  %v2465_v54 = vld [vmem:[%s2542_s13 + $0x1ec] ss:$16 sps:$4 sm:$0xff]  }
  0x4f   : > { %1061 = vmatprep.mubr.bf16.mxu1 %v2399_v55  ;;  %932 = vmatprep.mubr.bf16.mxu0 %v2420_v57  ;;  %v2467_v55 = vld [vmem:[%s2542_s13 + $0x1e8] ss:$16 sps:$4 sm:$0xff]  }
  0x50   : > { %2315 = vmatpush3.bf16.msra.mxu0 %v2312_v48 }
  0x56   : > { %1062 = vmatmul.mubr.bf16.gmra.mrb[24].mxu1 %v2401_v58  ;;  %933 = vmatmul.mubr.bf16.gmra.mrb[24].mxu0 %v2422_v60 }
  0x57   : > { %1069 = vmatprep.mubr.bf16.mxu1 %v2405_v59  ;;  %940 = vmatprep.mubr.bf16.mxu0 %v2426_v61 }
  0x5e   : > { %1070 = vmatmul.mubr.bf16.gmra.mrb[28].mxu1 %v2407_v62  ;;  %941 = vmatmul.mubr.bf16.gmra.mrb[28].mxu0 %v2428_v0 }
  0x5f   : > { %1077 = vmatprep.mubr.bf16.mxu1 %v2411_v63  ;;  %948 = vmatprep.mubr.bf16.mxu0 %v2432_v1 }
  0x66   : > { %1078 = vmatmul.mubr.bf16.gmra.mrb[32].mxu1 %v2413_v2  ;;  %949 = vmatmul.mubr.bf16.gmra.mrb[32].mxu0 %v2434_v4 }
  0x67   : > { %1085 = vmatprep.mubr.bf16.mxu1 %v2417_v3  ;;  %956 = vmatprep.mubr.bf16.mxu0 %v2438_v5 }
  0x6e   : > { %1086 = vmatmul.mubr.bf16.gmra.mrb[36].mxu1 %v2419_v6  ;;  %957 = vmatmul.mubr.bf16.gmra.mrb[36].mxu0 %v2440_v8 }
  0x6f   : > { %1093 = vmatprep.mubr.bf16.mxu1 %v2423_v7  ;;  %964 = vmatprep.mubr.bf16.mxu0 %v2444_v9 }
  0x76   : > { %1094 = vmatmul.mubr.bf16.gmra.mrb[40].mxu1 %v2425_v10  ;;  %965 = vmatmul.mubr.bf16.gmra.mrb[40].mxu0 %v2446_v12 }
  0x77   : > { %1101 = vmatprep.mubr.bf16.mxu1 %v2429_v11  ;;  %972 = vmatprep.mubr.bf16.mxu0 %v2450_v13 }
  0x7e   : > { %1102 = vmatmul.mubr.bf16.gmra.mrb[44].mxu1 %v2431_v14  ;;  %973 = vmatmul.mubr.bf16.gmra.mrb[44].mxu0 %v2452_v18 }
  0x7f   : > { %1109 = vmatprep.mubr.bf16.mxu1 %v2435_v15 }
  0x86   : > { %1110 = vmatmul.mubr.bf16.gmra.mrb[48].mxu1 %v2437_v20 }
  0x87   : > { %1117 = vmatprep.mubr.bf16.mxu1 %v2441_v21 }
  0x8e   : > { %1118 = vmatmul.mubr.bf16.gmra.mrb[52].mxu1 %v2443_v28 }
  0x8f   : > { %1125 = vmatprep.mubr.bf16.mxu1 %v2447_v29 }
  0x96   : > { %1126 = vmatmul.mubr.bf16.gmra.mrb[56].mxu1 %v2449_v36 }
  0x97   : > { %1133 = vmatprep.mubr.bf16.mxu1 %v2453_v37 }
  0x9e   : > { %1134 = vmatmul.mubr.bf16.gmra.mrb[60].mxu1 %v2455_v44 }
  0x9f   : > { %1141 = vmatprep.mubr.bf16.mxu1 %v2456_v45 }
  0xa6   : > { %1142 = vmatmul.mubr.bf16.gmra.mrb[64].mxu1 %v2458_v49 }
  0xa7   : > { %1149 = vmatprep.mubr.bf16.mxu1 %v2459_v50 }
  0xae   : > { %1150 = vmatmul.mubr.bf16.gmra.mrb[68].mxu1 %v2461_v51 }
  0xaf   : > { %1157 = vmatprep.mubr.bf16.mxu1 %v2462_v52 }
  0xb6   : > { %1158 = vmatmul.mubr.bf16.gmra.mrb[72].mxu1 %v2464_v53 }
  0xb7   : > { %1165 = vmatprep.mubr.bf16.mxu1 %v2465_v54 }
  0xbe   : > { %1166 = vmatmul.mubr.bf16.gmra.mrb[76].mxu1 %v2467_v55 }
  0xf9   : > { %v2020_v56 = vpop.f32.mrb[0].mxu1  ;;  %v1948_v62 = vpop.f32.mrb[0].mxu0 }
  0xfa   : > { %v2021_v57 = vpop.f32.mrb[1].mxu1  ;;  %v1949_v63 = vpop.f32.mrb[1].mxu0 }
  0xfb   : > { %v2725_v58 = vadd.f32 %v2021_v57, %v2020_v56  ;;  %v2023_v59 = vpop.f32.mrb[2].mxu1  ;;  %v1950_v1 = vadd.f32 %v1949_v63, %v1948_v62  ;;  %v1951_v2 = vpop.f32.mrb[2].mxu0 }
  0xfc   : > { %v2024_v60 = vpop.f32.mrb[3].mxu1  ;;  %v1952_v4 = vpop.f32.mrb[3].mxu0 }
  0xfd   : > { %v2727_v61 = vadd.f32 %v2024_v60, %v2023_v59  ;;  %v1953_v7 = vadd.f32 %v1952_v4, %v1951_v2  ;;  %v887_v37 = vadd.f32 %v1950_v1, %v2744_v35 }
  0xff   : > { %v890_v43 = vadd.f32 %v1953_v7, %v2744_v35 }
 0x101   : > { %v2026_v0 = vpop.f32.mrb[4].mxu1  ;;  %v1954_v10 = vpop.f32.mrb[4].mxu0 }
 0x102   : > { %v2027_v3 = vpop.f32.mrb[5].mxu1  ;;  %v1955_v11 = vpop.f32.mrb[5].mxu0 }
 0x103   : > { %v2729_v5 = vadd.f32 %v2027_v3, %v2026_v0  ;;  %v2029_v6 = vpop.f32.mrb[6].mxu1  ;;  %v1956_v13 = vadd.f32 %v1955_v11, %v1954_v10  ;;  %v1957_v14 = vpop.f32.mrb[6].mxu0 }
 0x104   : > { %v2030_v8 = vpop.f32.mrb[7].mxu1  ;;  %v1958_v16 = vpop.f32.mrb[7].mxu0 }
 0x105   : > { %v2731_v9 = vadd.f32 %v2030_v8, %v2029_v6  ;;  %v1959_v19 = vadd.f32 %v1958_v16, %v1957_v14  ;;  %v895_v55 = vadd.f32 %v1956_v13, %v2744_v35 }
 0x107   : > { %v898_v63 = vadd.f32 %v1959_v19, %v2744_v35 }
 0x109   : > { %v2032_v12 = vpop.f32.mrb[8].mxu1  ;;  %v1960_v22 = vpop.f32.mrb[8].mxu0 }
 0x10a   : > { %v2033_v15 = vpop.f32.mrb[9].mxu1  ;;  %v1961_v23 = vpop.f32.mrb[9].mxu0 }
 0x10b   : > { %v2733_v17 = vadd.f32 %v2033_v15, %v2032_v12  ;;  %v2035_v18 = vpop.f32.mrb[10].mxu1  ;;  %v1962_v25 = vadd.f32 %v1961_v23, %v1960_v22  ;;  %v1963_v26 = vpop.f32.mrb[10].mxu0 }
 0x10c   : > { %v2036_v20 = vpop.f32.mrb[11].mxu1  ;;  %v1964_v28 = vpop.f32.mrb[11].mxu0 }
 0x10d   : > { %v2735_v21 = vadd.f32 %v2036_v20, %v2035_v18  ;;  %v1965_v31 = vadd.f32 %v1964_v28, %v1963_v26  ;;  %v903_v13 = vadd.f32 %v1962_v25, %v2744_v35 }
 0x10f   : > { %v906_v20 = vadd.f32 %v1965_v31, %v2744_v35 }
 0x111   : > { %v2038_v24 = vpop.f32.mrb[12].mxu1  ;;  %v1966_v34 = vpop.f32.mrb[12].mxu0 }
 0x112   : > { %v2039_v27 = vpop.f32.mrb[13].mxu1  ;;  %v1967_v36 = vpop.f32.mrb[13].mxu0 }
 0x113   : > { %v2737_v29 = vadd.f32 %v2039_v27, %v2038_v24  ;;  %v2041_v30 = vpop.f32.mrb[14].mxu1  ;;  %v1968_v39 = vadd.f32 %v1967_v36, %v1966_v34  ;;  %v1969_v40 = vpop.f32.mrb[14].mxu0 }
 0x114   : > { %v2042_v32 = vpop.f32.mrb[15].mxu1  ;;  %v1970_v42 = vpop.f32.mrb[15].mxu0 }
 0x115   : > { %v2739_v33 = vadd.f32 %v2042_v32, %v2041_v30  ;;  %v1971_v46 = vadd.f32 %v1970_v42, %v1969_v40 }
 0x119   : > { %v2060_v38 = vpop.f32.mrb[16].mxu1  ;;  %v1972_v52 = vpop.f32.mrb[16].mxu0 }
 0x11a   : > { %v2061_v41 = vpop.f32.mrb[17].mxu1  ;;  %v1973_v53 = vpop.f32.mrb[17].mxu0 }
 0x11b   : > { %v2062_v44 = vadd.f32 %v2061_v41, %v2060_v38  ;;  %v2063_v45 = vpop.f32.mrb[18].mxu1  ;;  %v1974_v57 = vadd.f32 %v1973_v53, %v1972_v52  ;;  %v1975_v59 = vpop.f32.mrb[18].mxu0 }
 0x11c   : > { %v2064_v47 = vpop.f32.mrb[19].mxu1  ;;  %v1976_v62 = vpop.f32.mrb[19].mxu0 }
 0x11d   : > { %v1048_v48 = vadd.f32 %v2062_v44, %v887_v37  ;;  %v2065_v49 = vadd.f32 %v2064_v47, %v2063_v45  ;;  %v1977_v2 = vadd.f32 %v1976_v62, %v1975_v59  ;;  %v911_v37 = vadd.f32 %v1968_v39, %v2744_v35 }
 0x11f   : > { %v1174_v50 = vmax.f32 %v1048_v48, 0.0  ;;  %v1051_v51 = vadd.f32 %v2065_v49, %v890_v43  ;;  %v914_v43 = vadd.f32 %v1971_v46, %v2744_v35 }
 0x121   : > { %v1175_v54 = vmax.f32 %v1051_v51, 0.0  ;;  %v2066_v56 = vpop.f32.mrb[20].mxu1  ;;  %2236 = vmatprep.mubr.f32.mxu0 %v1174_v50  ;;  %v1978_v10 = vpop.f32.mrb[20].mxu0 }
 0x122   : > { %v2067_v60 = vpop.f32.mrb[21].mxu1  ;;  %v1979_v11 = vpop.f32.mrb[21].mxu0 }
 0x123   : > { %v2068_v0 = vadd.f32 %v2067_v60, %v2066_v56  ;;  %v2069_v1 = vpop.f32.mrb[22].mxu1  ;;  %2237 = vmatmul.mubr.f32.vlgmr.msra.gmra.mrb[48].mxu0 %v1175_v54  ;;  %v1980_v15 = vadd.f32 %v1979_v11, %v1978_v10  ;;  %v1981_v16 = vpop.f32.mrb[22].mxu0 }
 0x124   : > { %v2070_v3 = vpop.f32.mrb[23].mxu1  ;;  %v1982_v19 = vpop.f32.mrb[23].mxu0 }
 0x125   : > { %v1056_v4 = vadd.f32 %v2068_v0, %v895_v55  ;;  %v2071_v6 = vadd.f32 %v2070_v3, %v2069_v1  ;;  %v1983_v24 = vadd.f32 %v1982_v19, %v1981_v16  ;;  %v919_v55 = vadd.f32 %v1974_v57, %v2744_v35 }
 0x127   : > { %v1176_v7 = vmax.f32 %v1056_v4, 0.0  ;;  %v1059_v8 = vadd.f32 %v2071_v6, %v898_v63  ;;  %v922_v63 = vadd.f32 %v1977_v2, %v2744_v35 }
 0x129   : > { %v1177_v12 = vmax.f32 %v1059_v8, 0.0  ;;  %v2072_v14 = vpop.f32.mrb[24].mxu1  ;;  %2239 = vmatprep.mubr.f32.mxu0 %v1176_v7  ;;  %v1984_v34 = vpop.f32.mrb[24].mxu0 }
 0x12a   : > { %v2073_v18 = vpop.f32.mrb[25].mxu1  ;;  %v1985_v36 = vpop.f32.mrb[25].mxu0 }
 0x12b   : > { %v2074_v22 = vadd.f32 %v2073_v18, %v2072_v14  ;;  %v2075_v23 = vpop.f32.mrb[26].mxu1  ;;  %2240 = vmatmul.mubr.f32.gmra.mrb[50].mxu0 %v1177_v12  ;;  %v1986_v40 = vadd.f32 %v1985_v36, %v1984_v34  ;;  %v1987_v41 = vpop.f32.mrb[26].mxu0 }
 0x12c   : > { %v2076_v26 = vpop.f32.mrb[27].mxu1  ;;  %v1988_v31 = vpop.f32.mrb[27].mxu0 }
 0x12d   : > { %v1064_v27 = vadd.f32 %v2074_v22, %v903_v13  ;;  %v2077_v28 = vadd.f32 %v2076_v26, %v2075_v23  ;;  %v1989_v47 = vadd.f32 %v1988_v31, %v1987_v41  ;;  %v927_v13 = vadd.f32 %v1980_v15, %v2744_v35 }
 0x12f   : > { %v1178_v30 = vmax.f32 %v1064_v27, 0.0  ;;  %v1067_v32 = vadd.f32 %v2077_v28, %v906_v20  ;;  %v930_v20 = vadd.f32 %v1983_v24, %v2744_v35 }
 0x131   : > { %v1179_v25 = vmax.f32 %v1067_v32, 0.0  ;;  %v2078_v38 = vpop.f32.mrb[28].mxu1  ;;  %2242 = vmatprep.mubr.f32.mxu0 %v1178_v30  ;;  %v1990_v53 = vpop.f32.mrb[28].mxu0 }
 0x132   : > { %v2079_v42 = vpop.f32.mrb[29].mxu1  ;;  %v1991_v54 = vpop.f32.mrb[29].mxu0 }
 0x133   : > { %v2080_v44 = vadd.f32 %v2079_v42, %v2078_v38  ;;  %v2081_v45 = vpop.f32.mrb[30].mxu1  ;;  %2243 = vmatmul.mubr.f32.gmra.mrb[52].mxu0 %v1179_v25  ;;  %v1992_v59 = vadd.f32 %v1991_v54, %v1990_v53  ;;  %v1993_v60 = vpop.f32.mrb[30].mxu0 }
 0x134   : > { %v2082_v48 = vpop.f32.mrb[31].mxu1  ;;  %v1994_v46 = vpop.f32.mrb[31].mxu0 }
 0x135   : > { %v1072_v49 = vadd.f32 %v2080_v44, %v911_v37  ;;  %v2083_v50 = vadd.f32 %v2082_v48, %v2081_v45  ;;  %v1995_v3 = vadd.f32 %v1994_v46, %v1993_v60  ;;  %v935_v37 = vadd.f32 %v1986_v40, %v2744_v35 }
 0x137   : > { %v1180_v51 = vmax.f32 %v1072_v49, 0.0  ;;  %v1075_v52 = vadd.f32 %v2083_v50, %v914_v43  ;;  %v938_v43 = vadd.f32 %v1989_v47, %v2744_v35 }
 0x139   : > { %v1181_v39 = vmax.f32 %v1075_v52, 0.0  ;;  %v2084_v56 = vpop.f32.mrb[32].mxu1  ;;  %2245 = vmatprep.mubr.f32.mxu0 %v1180_v51  ;;  %v1996_v11 = vpop.f32.mrb[32].mxu0 }
 0x13a   : > { %v2085_v62 = vpop.f32.mrb[33].mxu1  ;;  %v1997_v12 = vpop.f32.mrb[33].mxu0 }
 0x13b   : > { %v2086_v0 = vadd.f32 %v2085_v62, %v2084_v56  ;;  %v2087_v1 = vpop.f32.mrb[34].mxu1  ;;  %2246 = vmatmul.mubr.f32.gmra.mrb[54].mxu0 %v1181_v39  ;;  %v1998_v16 = vadd.f32 %v1997_v12, %v1996_v11  ;;  %v1999_v18 = vpop.f32.mrb[34].mxu0 }
 0x13c   : > { %v2088_v4 = vpop.f32.mrb[35].mxu1  ;;  %v2000_v2 = vpop.f32.mrb[35].mxu0 }
 0x13d   : > { %v1080_v6 = vadd.f32 %v2086_v0, %v919_v55  ;;  %v2089_v7 = vadd.f32 %v2088_v4, %v2087_v1  ;;  %v2001_v26 = vadd.f32 %v2000_v2, %v1999_v18  ;;  %v943_v55 = vadd.f32 %v1992_v59, %v2744_v35 }
 0x13f   : > { %v1182_v8 = vmax.f32 %v1080_v6, 0.0  ;;  %v1083_v10 = vadd.f32 %v2089_v7, %v922_v63  ;;  %v946_v63 = vadd.f32 %v1995_v3, %v2744_v35 }
 0x141   : > { %v1183_v57 = vmax.f32 %v1083_v10, 0.0  ;;  %v2090_v14 = vpop.f32.mrb[36].mxu1  ;;  %2248 = vmatprep.mubr.f32.mxu0 %v1182_v8  ;;  %v2002_v36 = vpop.f32.mrb[36].mxu0 }
 0x142   : > { %v2091_v19 = vpop.f32.mrb[37].mxu1  ;;  %v2003_v25 = vpop.f32.mrb[37].mxu0 }
 0x143   : > { %v2092_v22 = vadd.f32 %v2091_v19, %v2090_v14  ;;  %v2093_v23 = vpop.f32.mrb[38].mxu1  ;;  %2249 = vmatmul.mubr.f32.gmra.mrb[56].mxu0 %v1183_v57  ;;  %v2004_v41 = vadd.f32 %v2003_v25, %v2002_v36  ;;  %v2005_v42 = vpop.f32.mrb[38].mxu0 }
 0x144   : > { %v2094_v27 = vpop.f32.mrb[39].mxu1  ;;  %v2006_v24 = vpop.f32.mrb[39].mxu0 }
 0x145   : > { %v1088_v28 = vadd.f32 %v2092_v22, %v927_v13  ;;  %v2095_v30 = vadd.f32 %v2094_v27, %v2093_v23  ;;  %v2007_v48 = vadd.f32 %v2006_v24, %v2005_v42  ;;  %v951_v13 = vadd.f32 %v1998_v16, %v2744_v35 }
 0x146   : > { %v959_v16 = vadd.f32 %v2004_v41, %v2744_v35 }
 0x147   : > { %v1184_v32 = vmax.f32 %v1088_v28, 0.0  ;;  %v1091_v34 = vadd.f32 %v2095_v30, %v930_v20  ;;  %v954_v20 = vadd.f32 %v2001_v26, %v2744_v35 }
 0x149   : > { %v1185_v15 = vmax.f32 %v1091_v34, 0.0  ;;  %v2096_v38 = vpop.f32.mrb[40].mxu1  ;;  %2251 = vmatprep.mubr.f32.mxu0 %v1184_v32  ;;  %v2008_v54 = vpop.f32.mrb[40].mxu0 }
 0x14a   : > { %v2097_v31 = vpop.f32.mrb[41].mxu1  ;;  %v2009_v39 = vpop.f32.mrb[41].mxu0 }
 0x14b   : > { %v2098_v44 = vadd.f32 %v2097_v31, %v2096_v38  ;;  %v2099_v45 = vpop.f32.mrb[42].mxu1  ;;  %2252 = vmatmul.mubr.f32.gmra.mrb[58].mxu0 %v1185_v15  ;;  %v2010_v60 = vadd.f32 %v2009_v39, %v2008_v54  ;;  %v2011_v62 = vpop.f32.mrb[42].mxu0  ;;  %v962_v38 = vadd.f32 %v2007_v48, %v2744_v35 }
 0x14c   : > { %v2100_v49 = vpop.f32.mrb[43].mxu1  ;;  %v2012_v47 = vpop.f32.mrb[43].mxu0 }
 0x14d   : > { %v1096_v50 = vadd.f32 %v2098_v44, %v935_v37  ;;  %v2101_v51 = vadd.f32 %v2100_v49, %v2099_v45  ;;  %v2013_v4 = vadd.f32 %v2012_v47, %v2011_v62 }
 0x14f   : > { %v1186_v52 = vmax.f32 %v1096_v50, 0.0  ;;  %v1099_v53 = vadd.f32 %v2101_v51, %v938_v43  ;;  %v967_v50 = vadd.f32 %v2010_v60, %v2744_v35  ;;  %v970_v41 = vadd.f32 %v2013_v4, %v2744_v35 }
 0x151   : > { %v1187_v40 = vmax.f32 %v1099_v53, 0.0  ;;  %v2102_v56 = vpop.f32.mrb[44].mxu1  ;;  %2254 = vmatprep.mubr.f32.mxu0 %v1186_v52  ;;  %v2014_v12 = vpop.f32.mrb[44].mxu0 }
 0x152   : > { %v2103_v46 = vpop.f32.mrb[45].mxu1  ;;  %v2015_v57 = vpop.f32.mrb[45].mxu0 }
 0x153   : > { %v2104_v0 = vadd.f32 %v2103_v46, %v2102_v56  ;;  %v2105_v1 = vpop.f32.mrb[46].mxu1  ;;  %2255 = vmatmul.mubr.f32.gmra.mrb[60].mxu0 %v1187_v40  ;;  %v2016_v18 = vadd.f32 %v2015_v57, %v2014_v12  ;;  %v2017_v19 = vpop.f32.mrb[46].mxu0 }
 0x154   : > { %v2106_v6 = vpop.f32.mrb[47].mxu1  ;;  %v2018_v3 = vpop.f32.mrb[47].mxu0 }
 0x155   : > { %v1104_v7 = vadd.f32 %v2104_v0, %v943_v55  ;;  %v2107_v8 = vadd.f32 %v2106_v6, %v2105_v1  ;;  %v2019_v27 = vadd.f32 %v2018_v3, %v2017_v19  ;;  %v975_v46 = vadd.f32 %v2016_v18, %v2744_v35 }
 0x156   : > { %v986_v19 = vadd.f32 %v2727_v61, %v2744_v35 }
 0x157   : > { %v1188_v10 = vmax.f32 %v1104_v7, 0.0  ;;  %v1107_v11 = vadd.f32 %v2107_v8, %v946_v63  ;;  %v978_v60 = vadd.f32 %v2019_v27, %v2744_v35 }
 0x159   : > { %v1189_v59 = vmax.f32 %v1107_v11, 0.0  ;;  %v2108_v14 = vpop.f32.mrb[48].mxu1  ;;  %2257 = vmatprep.mubr.f32.mxu0 %v1188_v10 }
 0x15a   : > { %v2109_v2 = vpop.f32.mrb[49].mxu1 }
 0x15b   : > { %v2110_v22 = vadd.f32 %v2109_v2, %v2108_v14  ;;  %v2111_v23 = vpop.f32.mrb[50].mxu1  ;;  %2258 = vmatmul.mubr.f32.gmra.mrb[62].mxu0 %v1189_v59  ;;  %v983_v59 = vadd.f32 %v2725_v58, %v2744_v35 }
 0x15c   : > { %v2112_v28 = vpop.f32.mrb[51].mxu1 }
 0x15d   : > { %v1112_v30 = vadd.f32 %v2110_v22, %v951_v13  ;;  %v2113_v32 = vadd.f32 %v2112_v28, %v2111_v23 }
 0x15f   : > { %v1190_v34 = vmax.f32 %v1112_v30, 0.0  ;;  %v1115_v36 = vadd.f32 %v2113_v32, %v954_v20  ;;  %v991_v30 = vadd.f32 %v2729_v5, %v2744_v35 }
 0x161   : > { %v1191_v25 = vmax.f32 %v1115_v36, 0.0  ;;  %v2114_v15 = vpop.f32.mrb[52].mxu1  ;;  %2260 = vmatprep.mubr.f32.mxu0 %v1190_v34  ;;  %v994_v36 = vadd.f32 %v2731_v9, %v2744_v35 }
 0x162   : > { %v2115_v37 = vpop.f32.mrb[53].mxu1 }
 0x163   : > { %v2116_v42 = vadd.f32 %v2115_v37, %v2114_v15  ;;  %v2117_v31 = vpop.f32.mrb[54].mxu1  ;;  %2261 = vmatmul.mubr.f32.gmra.mrb[64].mxu0 %v1191_v25 }
 0x164   : > { %v2118_v26 = vpop.f32.mrb[55].mxu1 }
 0x165   : > { %v1120_v24 = vadd.f32 %v2116_v42, %v959_v16  ;;  %v2119_v43 = vadd.f32 %v2118_v26, %v2117_v31  ;;  %v999_v31 = vadd.f32 %v2733_v17, %v2744_v35 }
 0x167   : > { %v1192_v44 = vmax.f32 %v1120_v24, 0.0  ;;  %v1123_v45 = vadd.f32 %v2119_v43, %v962_v38  ;;  %v1002_v43 = vadd.f32 %v2735_v21, %v2744_v35 }
 0x169   : > { %v1193_v49 = vmax.f32 %v1123_v45, 0.0  ;;  %v2120_v51 = vpop.f32.mrb[56].mxu1  ;;  %2263 = vmatprep.mubr.f32.mxu0 %v1192_v44 }
 0x16a   : > { %v2121_v52 = vpop.f32.mrb[57].mxu1 }
 0x16b   : > { %v2122_v53 = vadd.f32 %v2121_v52, %v2120_v51  ;;  %v2123_v54 = vpop.f32.mrb[58].mxu1  ;;  %2264 = vmatmul.mubr.f32.gmra.mrb[66].mxu0 %v1193_v49 }
 0x16c   : > { %v2124_v48 = vpop.f32.mrb[59].mxu1 }
 0x16d   : > { %v1128_v39 = vadd.f32 %v2122_v53, %v967_v50  ;;  %v2125_v40 = vadd.f32 %v2124_v48, %v2123_v54  ;;  %v1010_v48 = vadd.f32 %v2739_v33, %v2744_v35 }
 0x16f   : > { %v1194_v55 = vmax.f32 %v1128_v39, 0.0  ;;  %v1131_v56 = vadd.f32 %v2125_v40, %v970_v41  ;;  %v1007_v41 = vadd.f32 %v2737_v29, %v2744_v35 }
 0x171   : > { %v1195_v62 = vmax.f32 %v1131_v56, 0.0  ;;  %v2126_v47 = vpop.f32.mrb[60].mxu1  ;;  %2266 = vmatprep.mubr.f32.mxu0 %v1194_v55 }
 0x172   : > { %v2127_v63 = vpop.f32.mrb[61].mxu1 }
 0x173   : > { %v2128_v0 = vadd.f32 %v2127_v63, %v2126_v47  ;;  %v2129_v1 = vpop.f32.mrb[62].mxu1  ;;  %2267 = vmatmul.mubr.f32.gmra.mrb[68].mxu0 %v1195_v62 }
 0x174   : > { %v2130_v4 = vpop.f32.mrb[63].mxu1 }
 0x175   : > { %v1136_v6 = vadd.f32 %v2128_v0, %v975_v46  ;;  %v2131_v7 = vadd.f32 %v2130_v4, %v2129_v1 }
 0x177   : > { %v1196_v8 = vmax.f32 %v1136_v6, 0.0  ;;  %v1139_v10 = vadd.f32 %v2131_v7, %v978_v60 }
 0x179   : > { %v1197_v11 = vmax.f32 %v1139_v10, 0.0  ;;  %v2132_v12 = vpop.f32.mrb[64].mxu1  ;;  %2269 = vmatprep.mubr.f32.mxu0 %v1196_v8 }
 0x17a   : > { %v2133_v57 = vpop.f32.mrb[65].mxu1 }
 0x17b   : > { %v2134_v13 = vadd.f32 %v2133_v57, %v2132_v12  ;;  %v2135_v14 = vpop.f32.mrb[66].mxu1  ;;  %2270 = vmatmul.mubr.f32.gmra.mrb[70].mxu0 %v1197_v11 }
 0x17c   : > { %v2136_v18 = vpop.f32.mrb[67].mxu1 }
 0x17d   : > { %v1144_v2 = vadd.f32 %v2134_v13, %v983_v59  ;;  %v2137_v3 = vadd.f32 %v2136_v18, %v2135_v14 }
 0x17f   : > { %v1198_v20 = vmax.f32 %v1144_v2, 0.0  ;;  %v1147_v22 = vadd.f32 %v2137_v3, %v986_v19 }
 0x181   : > { %v1199_v23 = vmax.f32 %v1147_v22, 0.0  ;;  %v2138_v27 = vpop.f32.mrb[68].mxu1  ;;  %2272 = vmatprep.mubr.f32.mxu0 %v1198_v20 }
 0x182   : > { %v2139_v28 = vpop.f32.mrb[69].mxu1 }
 0x183   : > { %v2140_v32 = vadd.f32 %v2139_v28, %v2138_v27  ;;  %v2141_v58 = vpop.f32.mrb[70].mxu1  ;;  %2273 = vmatmul.mubr.f32.gmra.mrb[72].mxu0 %v1199_v23 }
 0x184   : > { %v2142_v34 = vpop.f32.mrb[71].mxu1 }
 0x185   : > { %v1152_v25 = vadd.f32 %v2140_v32, %v991_v30  ;;  %v2143_v61 = vadd.f32 %v2142_v34, %v2141_v58 }
 0x187   : > { %v1200_v16 = vmax.f32 %v1152_v25, 0.0  ;;  %v1155_v15 = vadd.f32 %v2143_v61, %v994_v36 }
 0x189   : > { %v1201_v37 = vmax.f32 %v1155_v15, 0.0  ;;  %v2144_v38 = vpop.f32.mrb[72].mxu1  ;;  %2275 = vmatprep.mubr.f32.mxu0 %v1200_v16 }
 0x18a   : > { %v2145_v42 = vpop.f32.mrb[73].mxu1 }
 0x18b   : > { %v2146_v26 = vadd.f32 %v2145_v42, %v2144_v38  ;;  %v2147_v5 = vpop.f32.mrb[74].mxu1  ;;  %2276 = vmatmul.mubr.f32.gmra.mrb[74].mxu0 %v1201_v37 }
 0x18c   : > { %v2148_v24 = vpop.f32.mrb[75].mxu1 }
 0x18d   : > { %v1160_v44 = vadd.f32 %v2146_v26, %v999_v31  ;;  %v2149_v9 = vadd.f32 %v2148_v24, %v2147_v5 }
 0x18f   : > { %v1202_v45 = vmax.f32 %v1160_v44, 0.0  ;;  %v1163_v49 = vadd.f32 %v2149_v9, %v1002_v43 }
 0x191   : > { %v1203_v50 = vmax.f32 %v1163_v49, 0.0  ;;  %v2150_v51 = vpop.f32.mrb[76].mxu1  ;;  %2278 = vmatprep.mubr.f32.mxu0 %v1202_v45 }
 0x192   : > { %v2151_v52 = vpop.f32.mrb[77].mxu1 }
 0x193   : > { %v2152_v17 = vadd.f32 %v2151_v52, %v2150_v51  ;;  %v2153_v53 = vpop.f32.mrb[78].mxu1  ;;  %2279 = vmatmul.mubr.f32.gmra.mrb[76].mxu0 %v1203_v50 }
 0x194   : > { %v2154_v54 = vpop.f32.mrb[79].mxu1 }
 0x195   : > { %v1168_v21 = vadd.f32 %v2152_v17, %v1007_v41  ;;  %v2155_v39 = vadd.f32 %v2154_v54, %v2153_v53 }
 0x197   : > { %v1204_v40 = vmax.f32 %v1168_v21, 0.0  ;;  %v1171_v55 = vadd.f32 %v2155_v39, %v1010_v48 }
 0x199   : > { %v1205_v56 = vmax.f32 %v1171_v55, 0.0  ;;  %2281 = vmatprep.mubr.f32.mxu0 %v1204_v40 }
 0x19b   : > { %2282 = vmatmul.mubr.f32.gmra.mrb[78].mxu0 %v1205_v56 }
 0x1f6   : > { %v2238_v62 = vpop.f32.mrb[48].mxu0 }
 0x1f7   : > { %v1288_v29 = vpop.f32.mrb[49].mxu0 }
 0x1f8   : > { %v1840_v33 = vpack.c.bf16 %v2238_v62, %v1288_v29 }
 0x1fa   : > { %1841 = vst [vmem:[%s2790_s29] sm:$0xff] %v1840_v33  }
 0x1fe   : > { %v2241_v35 = vpop.f32.mrb[50].mxu0 }
 0x1ff   : > { %v1298_v46 = vpop.f32.mrb[51].mxu0 }
 0x200   : > { %v1845_v47 = vpack.c.bf16 %v2241_v35, %v1298_v46 }
 0x202   : > { %1917 = vst [vmem:[%s2790_s29 + $0x8] sm:$0xff] %v1845_v47  }
 0x206   : > { %v2244_v63 = vpop.f32.mrb[52].mxu0 }
 0x207   : > { %v1308_v60 = vpop.f32.mrb[53].mxu0 }
 0x208   : > { %v1850_v0 = vpack.c.bf16 %v2244_v63, %v1308_v60 }
 0x20a   : > { %1918 = vst [vmem:[%s2790_s29 + $0x10] sm:$0xff] %v1850_v0  }
 0x20e   : > { %v2247_v1 = vpop.f32.mrb[54].mxu0 }
 0x20f   : > { %v1318_v4 = vpop.f32.mrb[55].mxu0 }
 0x210   : > { %v1855_v6 = vpack.c.bf16 %v2247_v1, %v1318_v4 }
 0x212   : > { %1919 = vst [vmem:[%s2790_s29 + $0x18] sm:$0xff] %v1855_v6  }
 0x216   : > { %v2250_v7 = vpop.f32.mrb[56].mxu0 }
 0x217   : > { %v1328_v8 = vpop.f32.mrb[57].mxu0 }
 0x218   : > { %v1860_v10 = vpack.c.bf16 %v2250_v7, %v1328_v8 }
 0x21a   : > { %1920 = vst [vmem:[%s2790_s29 + $0x20] sm:$0xff] %v1860_v10  }
 0x21e   : > { %v2253_v11 = vpop.f32.mrb[58].mxu0 }
 0x21f   : > { %v1338_v12 = vpop.f32.mrb[59].mxu0 }
 0x220   : > { %v1865_v57 = vpack.c.bf16 %v2253_v11, %v1338_v12 }
 0x222   : > { %1921 = vst [vmem:[%s2790_s29 + $0x28] sm:$0xff] %v1865_v57  }
 0x226   : > { %v2256_v59 = vpop.f32.mrb[60].mxu0 }
 0x227   : > { %v1348_v13 = vpop.f32.mrb[61].mxu0 }
 0x228   : > { %v1870_v14 = vpack.c.bf16 %v2256_v59, %v1348_v13 }
 0x22a   : > { %1922 = vst [vmem:[%s2790_s29 + $0x30] sm:$0xff] %v1870_v14  }
 0x22e   : > { %v2259_v18 = vpop.f32.mrb[62].mxu0 }
 0x22f   : > { %v1358_v19 = vpop.f32.mrb[63].mxu0 }
 0x230   : > { %v1875_v2 = vpack.c.bf16 %v2259_v18, %v1358_v19 }
 0x232   : > { %1923 = vst [vmem:[%s2790_s29 + $0x38] sm:$0xff] %v1875_v2  }
 0x236   : > { %v2262_v3 = vpop.f32.mrb[64].mxu0 }
 0x237   : > { %v1368_v20 = vpop.f32.mrb[65].mxu0 }
 0x238   : > { %v1880_v22 = vpack.c.bf16 %v2262_v3, %v1368_v20 }
 0x23a   : > { %1924 = vst [vmem:[%s2790_s29 + $0x40] sm:$0xff] %v1880_v22  }
 0x23e   : > { %v2265_v23 = vpop.f32.mrb[66].mxu0 }
 0x23f   : > { %v1378_v27 = vpop.f32.mrb[67].mxu0 }
 0x240   : > { %v1885_v28 = vpack.c.bf16 %v2265_v23, %v1378_v27 }
 0x242   : > { %1925 = vst [vmem:[%s2790_s29 + $0x48] sm:$0xff] %v1885_v28  }
 0x246   : > { %v2268_v30 = vpop.f32.mrb[68].mxu0 }
 0x247   : > { %v1388_v32 = vpop.f32.mrb[69].mxu0 }
 0x248   : > { %v1890_v58 = vpack.c.bf16 %v2268_v30, %v1388_v32 }
 0x24a   : > { %1926 = vst [vmem:[%s2790_s29 + $0x50] sm:$0xff] %v1890_v58  }
 0x24e   : > { %v2271_v34 = vpop.f32.mrb[70].mxu0 }
 0x24f   : > { %v1398_v36 = vpop.f32.mrb[71].mxu0 }
 0x250   : > { %v1895_v25 = vpack.c.bf16 %v2271_v34, %v1398_v36 }
 0x252   : > { %1927 = vst [vmem:[%s2790_s29 + $0x58] sm:$0xff] %v1895_v25  }
 0x256   : > { %v2274_v61 = vpop.f32.mrb[72].mxu0 }
 0x257   : > { %v1408_v16 = vpop.f32.mrb[73].mxu0 }
 0x258   : > { %v1900_v15 = vpack.c.bf16 %v2274_v61, %v1408_v16 }
 0x25a   : > { %1928 = vst [vmem:[%s2790_s29 + $0x60] sm:$0xff] %v1900_v15  }
 0x25e   : > { %v2277_v37 = vpop.f32.mrb[74].mxu0 }
 0x25f   : > { %v1418_v38 = vpop.f32.mrb[75].mxu0 }
 0x260   : > { %v1905_v42 = vpack.c.bf16 %v2277_v37, %v1418_v38 }
 0x262   : > { %1929 = vst [vmem:[%s2790_s29 + $0x68] sm:$0xff] %v1905_v42  }
 0x266   : > { %v2280_v31 = vpop.f32.mrb[76].mxu0 }
 0x267   : > { %v1428_v26 = vpop.f32.mrb[77].mxu0 }
 0x268   : > { %v1910_v5 = vpack.c.bf16 %v2280_v31, %v1428_v26 }
 0x26a   : > { %1930 = vst [vmem:[%s2790_s29 + $0x70] sm:$0xff] %v1910_v5  }
 0x26e   : > { %v2283_v24 = vpop.f32.mrb[78].mxu0 }
 0x26f   : > { %v1438_v43 = vpop.f32.mrb[79].mxu0 }
 0x270   : > { %v1915_v44 = vpack.c.bf16 %v2283_v24, %v1438_v43 }
 0x272   : > { %1931 = vst [vmem:[%s2790_s29 + $0x78] sm:$0xff] %v1915_v44  }
 0x273 PF: > { %s14_s15 = sadd.s32 1, %s2474_s15  }
 0x274   : > { %p11_p4 = scmp.ge.s32.totalorder %s14_s15, 4  }
 0x276   :  { %13 = sbr.rel (!%p11_p4) target bundleno = 1 (0x1), region = 66 }

</bundles_post_ra>
